<compile_context>
chip_gen: v7x
topology: tpu7x:2x2x1
jax: 0.10.0
libtpu: 0.0.40
codegen_flags: <defaults>
</compile_context>

<pallas_src>
import jax
import jax.numpy as jnp
from jax import lax
from jax.experimental import pallas as pl
from jax.experimental.pallas import tpu as pltpu

EPS = 1e-5          # nn.InstanceNorm2d default eps
NEG_SLOPE = 0.1     # nn.LeakyReLU(negative_slope=0.1)


def _pick_nb(n, max_nb=8):
    """Samples packed per grid step: as many as possible while keeping the grid
    length >= 2 (v7x megacore) and n % nb == 0."""
    best = 1
    for cand in range(2, min(n, max_nb) + 1):
        if n % cand == 0 and n // cand >= 2:
            best = cand
    return best


def _build_rb2_kernel(cin, gr, nb, gs, wl, offs, inv_npix):
    """Fused RB2 kernel; one grid step == nb samples packed on the lane axis.

    gs: global lane slack on each side of the canvas (>= max |tap offset|).
    wl: nb * L interior lane width (multiple of 128).
    """
    use_sel = nb > 1

    def body(m_ref, selT_ref, bc_ref, x_ref, c1_ref, c2_ref, c3_ref,
             w1_ref, w2_ref, o_ref, cat_ref):
        m = m_ref[...]                  # (1, wl) 1.0 on true pixels, else 0.0
        valid = m != 0.0

        def mm(a, b):
            # MXU is <2% utilized here, so HIGHEST (multi-pass f32) is free and
            # keeps f32-level accuracy.
            return jnp.dot(a, b, preferred_element_type=jnp.float32,
                           precision=lax.Precision.HIGHEST)

        def inorm_lrelu(y):
            # InstanceNorm2d(affine=False) over each sample's H*W true pixels,
            # one-pass stats (var = E[y^2] - mean^2, biased), then LeakyReLU.
            # Non-pixel lanes (padding ring, slack, lanes fed by uninitialized
            # scratch slack) are zeroed with a select first, so they can never
            # contaminate the sums (NaN-safe).
            y = jnp.where(valid, y, 0.0)
            if use_sel:
                selT = selT_ref[...]                        # (wl, nb)
                s1 = mm(y, selT)                            # (C, nb)
                s2 = mm(y * y, selT)
            else:
                s1 = jnp.sum(y, axis=1, keepdims=True)      # (C, 1)
                s2 = jnp.sum(y * y, axis=1, keepdims=True)
            mean = s1 * inv_npix
            var = jnp.maximum(s2 * inv_npix - mean * mean, 0.0)
            istd = lax.rsqrt(var + EPS)
            if use_sel:
                bc = bc_ref[...]                            # (nb, wl) block 1-hot
                yn = (y - mm(mean, bc)) * mm(istd, bc)
            else:
                yn = (y - mean) * istd
            return jnp.where(yn >= 0.0, yn, NEG_SLOPE * yn)

        def conv3x3(read_tap, ci, w_ref):
            # 3x3 conv = 9 accumulating (cout, ci) @ (ci, wl) MXU dots; the tap
            # window is read directly from the source ref (no im2col scratch).
            y = None
            for t, off in enumerate(offs):
                d = mm(w_ref[:, t * ci:(t + 1) * ci], read_tap(off))
                y = d if y is None else y + d
            return y

        # c1: 3x3 conv on the input canvas -> x1 (rows [0, gr) of cat)
        x1 = inorm_lrelu(conv3x3(
            lambda o: x_ref[0, :, gs + o:gs + o + wl], cin, c1_ref)) * m
        cat_ref[0:gr, gs:gs + wl] = x1                      # lane-dense store
        # c2: 3x3 conv on x1 -> x2 (rows [gr, 3gr))
        x2 = inorm_lrelu(conv3x3(
            lambda o: cat_ref[0:gr, gs + o:gs + o + wl], gr, c2_ref)) * m
        cat_ref[gr:3 * gr, gs:gs + wl] = x2
        # c3: 3x3 conv on x2 -> x3 (kept as a value: only the head consumes it)
        x3 = inorm_lrelu(conv3x3(
            lambda o: cat_ref[gr:3 * gr, gs + o:gs + o + wl], 2 * gr, c3_ref)) * m

        # head: ac1 over concat([x1,x2,x3]) (x1|x2 contiguous rows of cat, x3 as
        # a value), ac2 over the input, residual add; full-width lane-dense store.
        y1 = (mm(w1_ref[:, 0:3 * gr], cat_ref[0:3 * gr, gs:gs + wl])
              + mm(w1_ref[:, 3 * gr:6 * gr], x3))
        y2 = mm(w2_ref[...], x_ref[0, :, gs:gs + wl])
        o_ref[0] = (inorm_lrelu(y1) + inorm_lrelu(y2)).astype(o_ref.dtype)

    if use_sel:
        def kernel(m_ref, selT_ref, bc_ref, x_ref, c1_ref, c2_ref, c3_ref,
                   w1_ref, w2_ref, o_ref, cat_ref):
            body(m_ref, selT_ref, bc_ref, x_ref, c1_ref, c2_ref, c3_ref,
                 w1_ref, w2_ref, o_ref, cat_ref)
    else:
        def kernel(m_ref, x_ref, c1_ref, c2_ref, c3_ref,
                   w1_ref, w2_ref, o_ref, cat_ref):
            body(m_ref, None, None, x_ref, c1_ref, c2_ref, c3_ref,
                 w1_ref, w2_ref, o_ref, cat_ref)
    return kernel


def rb2_forward(x_nchw, p, max_nb=8):
    """RB2 forward. Input/output are NCHW (PyTorch convention)."""
    N, Cin, H, W = x_nchw.shape
    gr = Cin // 2
    Cout = p['ac1_w'].shape[-1]
    Hp, Wp = H + 2, W + 2
    A = Hp * Wp                                      # padded image, flattened
    # per-sample lane stride: padded image + >= (Wp+1) guard, rounded to 128
    L = ((A + Wp + 1 + 127) // 128) * 128
    GS = ((Wp + 1 + 127) // 128) * 128               # global slack (>= max tap)
    nb = _pick_nb(N, max_nb)
    G = N // nb
    Wl = nb * L                                      # interior lane width
    Wg = GS + Wl + GS                                # full canvas width

    # ---- packed input canvas (G, Cin, Wg): samples side by side on the lane
    # axis.  NCHW is already channel-major; the nb<->Cin transpose is a no-op
    # for nb == 1.
    x = x_nchw.astype(jnp.float32).reshape(G, nb, Cin, H, W)
    x = jnp.transpose(x, (0, 2, 1, 3, 4))                       # (G,Cin,nb,H,W)
    x = jnp.pad(x, ((0, 0), (0, 0), (0, 0), (1, 1), (1, 1)))    # zero pad ring
    x = jnp.pad(x.reshape(G, Cin, nb, A),
                ((0, 0), (0, 0), (0, 0), (0, L - A)))           # per-sample slack
    xc = jnp.pad(x.reshape(G, Cin, Wl), ((0, 0), (0, 0), (GS, GS)))

    # ---- pixel-validity mask / per-sample selectors (tiny, grid-constant)
    lane_valid = jnp.pad(
        jnp.pad(jnp.ones((H, W), jnp.float32), ((1, 1), (1, 1))).reshape(A),
        (0, L - A))                                             # (L,)
    m = jnp.tile(lane_valid, nb).reshape(1, Wl)
    sel_args, sel_specs = (), ()
    if nb > 1:
        onehot = (jnp.arange(Wl)[:, None] // L ==
                  jnp.arange(nb)[None, :]).astype(jnp.float32)  # (Wl, nb)
        selT = onehot * m.reshape(Wl, 1)   # masked per-sample reduction RHS
        bc = jnp.transpose(onehot)         # (nb, Wl) per-sample broadcast RHS
        sel_args = (selT, bc)
        sel_specs = (pl.BlockSpec((Wl, nb), lambda i: (0, 0)),
                     pl.BlockSpec((nb, Wl), lambda i: (0, 0)))

    # ---- weights as (Cout, 9*Cin), column index (kh*3+kw)*Cin + ci.
    # Conv biases are NOT passed: InstanceNorm2d(affine=False) immediately
    # follows every conv, so its mean subtraction cancels any per-channel
    # constant.  NOTE: only valid for norm='inorm' (affine=False).
    def conv_mat(w_hwio):
        co = w_hwio.shape[-1]
        return jnp.transpose(w_hwio, (3, 0, 1, 2)).reshape(co, -1)

    c1m, c2m, c3m = conv_mat(p['c1_w']), conv_mat(p['c2_w']), conv_mat(p['c3_w'])
    w1m = p['ac1_w'].T                               # (Cout, 6*gr)
    w2m = p['ac2_w'].T                               # (Cout, Cin)

    offs = [(kh - 1) * Wp + (kw - 1) for kh in range(3) for kw in range(3)]
    kernel = _build_rb2_kernel(Cin, gr, nb, GS, Wl, offs, 1.0 / float(H * W))

    # TODO(synk): for very large H*W, tile the lane axis into row strips and set
    # vmem_limit_bytes (v7x has only 64 MiB VMEM); not needed at these sizes.
    out = pl.pallas_call(
        kernel,
        out_shape=jax.ShapeDtypeStruct((G, Cout, Wl), jnp.float32),
        grid=(G,),
        in_specs=[pl.BlockSpec((1, Wl), lambda i: (0, 0))]            # mask
                 + list(sel_specs)
                 + [pl.BlockSpec((1, Cin, Wg), lambda i: (i, 0, 0)),  # canvas
                    pl.BlockSpec(c1m.shape, lambda i: (0, 0)),
                    pl.BlockSpec(c2m.shape, lambda i: (0, 0)),
                    pl.BlockSpec(c3m.shape, lambda i: (0, 0)),
                    pl.BlockSpec(w1m.shape, lambda i: (0, 0)),
                    pl.BlockSpec(w2m.shape, lambda i: (0, 0))],
        out_specs=pl.BlockSpec((1, Cout, Wl), lambda i: (i, 0, 0)),
        scratch_shapes=[pltpu.VMEM((3 * gr, Wg), jnp.float32)],       # x1 | x2
        compiler_params=pltpu.CompilerParams(
            dimension_semantics=("parallel",)),
    )(m, *sel_args, xc, c1m, c2m, c3m, w1m, w2m)

    # ---- unpack: (G, Cout, nb*L) -> (N, Cout, H, W), dropping slack + pad ring
    out = out.reshape(G, Cout, nb, L).transpose(0, 2, 1, 3).reshape(N, Cout, L)
    return out[:, :, :A].reshape(N, Cout, Hp, Wp)[:, :, 1:H + 1, 1:W + 1]


def init_params(key, in_channels, out_channels):
    """Deterministic synthetic parameters (shapes match the PyTorch module).

    Biases are kept (and used by the reference) even though the Pallas kernel
    drops them: InstanceNorm(affine=False) makes them mathematical no-ops."""
    gr = in_channels // 2
    ks = jax.random.split(key, 10)

    def conv_w(k, kh, kw, cin, cout):
        scale = 1.0 / float(jnp.sqrt(kh * kw * cin))
        return jax.random.normal(k, (kh, kw, cin, cout), jnp.float32) * scale

    def conv_b(k, cout):
        return jax.random.normal(k, (cout,), jnp.float32) * 0.1

    return {
        'c1_w': conv_w(ks[0], 3, 3, in_channels, gr),   'c1_b': conv_b(ks[1], gr),
        'c2_w': conv_w(ks[2], 3, 3, gr, 2 * gr),        'c2_b': conv_b(ks[3], 2 * gr),
        'c3_w': conv_w(ks[4], 3, 3, 2 * gr, 3 * gr),    'c3_b': conv_b(ks[5], 3 * gr),
        'ac1_w': conv_w(ks[6], 1, 1, 6 * gr, out_channels).reshape(6 * gr, out_channels),
        'ac1_b': conv_b(ks[7], out_channels),
        'ac2_w': conv_w(ks[8], 1, 1, in_channels, out_channels).reshape(in_channels, out_channels),
        'ac2_b': conv_b(ks[9], out_channels),
    }


# ---------------- pure-JAX reference (for correctness check) ----------------
def _ref_basic_conv(x_nhwc, w_hwio, b, pad):
    y = lax.conv_general_dilated(x_nhwc, w_hwio, (1, 1), [(pad, pad), (pad, pad)],
                                 dimension_numbers=('NHWC', 'HWIO', 'NHWC'),
                                 precision=lax.Precision.HIGHEST) + b
    mean = jnp.mean(y, axis=(1, 2), keepdims=True)
    var = jnp.mean((y - mean) ** 2, axis=(1, 2), keepdims=True)
    y = (y - mean) * lax.rsqrt(var + EPS)
    return jnp.where(y >= 0, y, NEG_SLOPE * y)


def ref_rb2(x_nchw, p):
    x = jnp.transpose(x_nchw, (0, 2, 3, 1)).astype(jnp.float32)
    x1 = _ref_basic_conv(x, p['c1_w'], p['c1_b'], 1)
    x2 = _ref_basic_conv(x1, p['c2_w'], p['c2_b'], 1)
    x3 = _ref_basic_conv(x2, p['c3_w'], p['c3_b'], 1)
    cat = jnp.concatenate([x1, x2, x3], axis=-1)
    cout = p['ac1_w'].shape[-1]
    y1 = _ref_basic_conv(cat, p['ac1_w'].reshape(1, 1, -1, cout), p['ac1_b'], 0)
    y2 = _ref_basic_conv(x, p['ac2_w'].reshape(1, 1, -1, cout), p['ac2_b'], 0)
    return jnp.transpose(y1 + y2, (0, 3, 1, 2))


if __name__ == "__main__":
    in_channels, out_channels = 4, 8
    H, W = 16, 16

    key = jax.random.PRNGKey(0)
    k1, k2, kp = jax.random.split(key, 3)
    params = init_params(kp, in_channels, out_channels)

    # case "n2": spec-sized N=2 -> nb=1, grid=(2,)
    # case "n8": N=8 -> nb=4 samples packed per grid step, grid=(2,)
    for name, kx, N in (("n2", k1, 2), ("n8", k2, 8)):
        x = jax.random.normal(kx, (N, in_channels, H, W), jnp.float32)   # NCHW
        out = jax.block_until_ready(rb2_forward(x, params))
        assert out.shape == (N, out_channels, H, W), out.shape

        ref = ref_rb2(x, params)
        max_err = float(jnp.max(jnp.abs(out - ref)))
        if not bool(jnp.allclose(out, ref, atol=2e-3, rtol=2e-3)):
            raise AssertionError(
                f"[{name}] Pallas RB2 mismatch vs reference, max|err|={max_err}")

    print("KERNEL_OK")
</pallas_src>

<mosaic_0001>
module attributes {stable_mosaic.version = 11 : i64} {
  func.func @kernel(%arg0: i32, %arg1: memref<1x384xf32, #tpu.memory_space<vmem>>, %arg2: memref<1x4x640xf32, #tpu.memory_space<vmem>>, %arg3: memref<2x36xf32, #tpu.memory_space<vmem>>, %arg4: memref<4x18xf32, #tpu.memory_space<vmem>>, %arg5: memref<6x36xf32, #tpu.memory_space<vmem>>, %arg6: memref<8x12xf32, #tpu.memory_space<vmem>>, %arg7: memref<8x4xf32, #tpu.memory_space<vmem>>, %arg8: memref<1x8x384xf32, #tpu.memory_space<vmem>>, %arg9: memref<6x640xf32, #tpu.memory_space<vmem>>) attributes {dimension_semantics = [#tpu.dimension_semantics<parallel>], iteration_bounds = array<i64: 2>, scalar_prefetch = 0 : i64, scratch_operands = 1 : i64, tpu.core_type = #tpu.core_type<tc>, window_params = [{pipeline_mode = #tpu.pipeline_mode<synchronous>, transform_indices = @transform_0, window_bounds = array<i64: 1, 384>}, {transform_indices = @transform_1, window_bounds = array<i64: 1, 4, 640>}, {pipeline_mode = #tpu.pipeline_mode<synchronous>, transform_indices = @transform_2, window_bounds = array<i64: 2, 36>}, {pipeline_mode = #tpu.pipeline_mode<synchronous>, transform_indices = @transform_3, window_bounds = array<i64: 4, 18>}, {pipeline_mode = #tpu.pipeline_mode<synchronous>, transform_indices = @transform_4, window_bounds = array<i64: 6, 36>}, {pipeline_mode = #tpu.pipeline_mode<synchronous>, transform_indices = @transform_5, window_bounds = array<i64: 8, 12>}, {pipeline_mode = #tpu.pipeline_mode<synchronous>, transform_indices = @transform_6, window_bounds = array<i64: 8, 4>}, {transform_indices = @transform_7, window_bounds = array<i64: 1, 8, 384>}]} {
    %c0 = arith.constant 0 : index
    %c0_0 = arith.constant 0 : index
    %0 = vector.load %arg1[%c0, %c0_0] : memref<1x384xf32, #tpu.memory_space<vmem>>, vector<1x384xf32>
    %cst = arith.constant 0.000000e+00 : f32
    %1 = vector.broadcast %cst : f32 to vector<1x384xf32>
    %2 = arith.cmpf one, %0, %1 : vector<1x384xf32>
    %c0_1 = arith.constant 0 : index
    %c0_2 = arith.constant 0 : index
    %3 = vector.load %arg3[%c0_1, %c0_2] : memref<2x36xf32, #tpu.memory_space<vmem>>, vector<2x4xf32>
    %c0_3 = arith.constant 0 : index
    %c0_4 = arith.constant 0 : index
    %c109 = arith.constant 109 : index
    %4 = vector.load %arg2[%c0_3, %c0_4, %c109] : memref<1x4x640xf32, #tpu.memory_space<vmem>>, vector<1x4x384xf32>
    %5 = vector.shape_cast %4 : vector<1x4x384xf32> to vector<4x384xf32>
    %cst_5 = arith.constant dense<0.000000e+00> : vector<2x384xf32>
    %6 = tpu.matmul %3, %5, %cst_5 {dimension_numbers = #tpu.dot_dimension_numbers<[1], [0], [0], [1], [0, 0, 1, 1], [], []>, precision = #tpu.contract_precision<fp32>} : vector<2x4xf32>, vector<4x384xf32>, vector<2x384xf32> -> vector<2x384xf32>
    %c0_6 = arith.constant 0 : index
    %c4 = arith.constant 4 : index
    %7 = vector.load %arg3[%c0_6, %c4] : memref<2x36xf32, #tpu.memory_space<vmem>>, vector<2x4xf32>
    %c0_7 = arith.constant 0 : index
    %c0_8 = arith.constant 0 : index
    %c110 = arith.constant 110 : index
    %8 = vector.load %arg2[%c0_7, %c0_8, %c110] : memref<1x4x640xf32, #tpu.memory_space<vmem>>, vector<1x4x384xf32>
    %9 = vector.shape_cast %8 : vector<1x4x384xf32> to vector<4x384xf32>
    %cst_9 = arith.constant dense<0.000000e+00> : vector<2x384xf32>
    %10 = tpu.matmul %7, %9, %cst_9 {dimension_numbers = #tpu.dot_dimension_numbers<[1], [0], [0], [1], [0, 0, 1, 1], [], []>, precision = #tpu.contract_precision<fp32>} : vector<2x4xf32>, vector<4x384xf32>, vector<2x384xf32> -> vector<2x384xf32>
    %11 = arith.addf %6, %10 : vector<2x384xf32>
    %c0_10 = arith.constant 0 : index
    %c8 = arith.constant 8 : index
    %12 = vector.load %arg3[%c0_10, %c8] : memref<2x36xf32, #tpu.memory_space<vmem>>, vector<2x4xf32>
    %c0_11 = arith.constant 0 : index
    %c0_12 = arith.constant 0 : index
    %c111 = arith.constant 111 : index
    %13 = vector.load %arg2[%c0_11, %c0_12, %c111] : memref<1x4x640xf32, #tpu.memory_space<vmem>>, vector<1x4x384xf32>
    %14 = vector.shape_cast %13 : vector<1x4x384xf32> to vector<4x384xf32>
    %cst_13 = arith.constant dense<0.000000e+00> : vector<2x384xf32>
    %15 = tpu.matmul %12, %14, %cst_13 {dimension_numbers = #tpu.dot_dimension_numbers<[1], [0], [0], [1], [0, 0, 1, 1], [], []>, precision = #tpu.contract_precision<fp32>} : vector<2x4xf32>, vector<4x384xf32>, vector<2x384xf32> -> vector<2x384xf32>
    %16 = arith.addf %11, %15 : vector<2x384xf32>
    %c0_14 = arith.constant 0 : index
    %c12 = arith.constant 12 : index
    %17 = vector.load %arg3[%c0_14, %c12] : memref<2x36xf32, #tpu.memory_space<vmem>>, vector<2x4xf32>
    %c0_15 = arith.constant 0 : index
    %c0_16 = arith.constant 0 : index
    %c127 = arith.constant 127 : index
    %18 = vector.load %arg2[%c0_15, %c0_16, %c127] : memref<1x4x640xf32, #tpu.memory_space<vmem>>, vector<1x4x384xf32>
    %19 = vector.shape_cast %18 : vector<1x4x384xf32> to vector<4x384xf32>
    %cst_17 = arith.constant dense<0.000000e+00> : vector<2x384xf32>
    %20 = tpu.matmul %17, %19, %cst_17 {dimension_numbers = #tpu.dot_dimension_numbers<[1], [0], [0], [1], [0, 0, 1, 1], [], []>, precision = #tpu.contract_precision<fp32>} : vector<2x4xf32>, vector<4x384xf32>, vector<2x384xf32> -> vector<2x384xf32>
    %21 = arith.addf %16, %20 : vector<2x384xf32>
    %c0_18 = arith.constant 0 : index
    %c16 = arith.constant 16 : index
    %22 = vector.load %arg3[%c0_18, %c16] : memref<2x36xf32, #tpu.memory_space<vmem>>, vector<2x4xf32>
    %c0_19 = arith.constant 0 : index
    %c0_20 = arith.constant 0 : index
    %c128 = arith.constant 128 : index
    %23 = vector.load %arg2[%c0_19, %c0_20, %c128] : memref<1x4x640xf32, #tpu.memory_space<vmem>>, vector<1x4x384xf32>
    %24 = vector.shape_cast %23 : vector<1x4x384xf32> to vector<4x384xf32>
    %cst_21 = arith.constant dense<0.000000e+00> : vector<2x384xf32>
    %25 = tpu.matmul %22, %24, %cst_21 {dimension_numbers = #tpu.dot_dimension_numbers<[1], [0], [0], [1], [0, 0, 1, 1], [], []>, precision = #tpu.contract_precision<fp32>} : vector<2x4xf32>, vector<4x384xf32>, vector<2x384xf32> -> vector<2x384xf32>
    %26 = arith.addf %21, %25 : vector<2x384xf32>
    %c0_22 = arith.constant 0 : index
    %c20 = arith.constant 20 : index
    %27 = vector.load %arg3[%c0_22, %c20] : memref<2x36xf32, #tpu.memory_space<vmem>>, vector<2x4xf32>
    %c0_23 = arith.constant 0 : index
    %c0_24 = arith.constant 0 : index
    %c129 = arith.constant 129 : index
    %28 = vector.load %arg2[%c0_23, %c0_24, %c129] : memref<1x4x640xf32, #tpu.memory_space<vmem>>, vector<1x4x384xf32>
    %29 = vector.shape_cast %28 : vector<1x4x384xf32> to vector<4x384xf32>
    %cst_25 = arith.constant dense<0.000000e+00> : vector<2x384xf32>
    %30 = tpu.matmul %27, %29, %cst_25 {dimension_numbers = #tpu.dot_dimension_numbers<[1], [0], [0], [1], [0, 0, 1, 1], [], []>, precision = #tpu.contract_precision<fp32>} : vector<2x4xf32>, vector<4x384xf32>, vector<2x384xf32> -> vector<2x384xf32>
    %31 = arith.addf %26, %30 : vector<2x384xf32>
    %c0_26 = arith.constant 0 : index
    %c24 = arith.constant 24 : index
    %32 = vector.load %arg3[%c0_26, %c24] : memref<2x36xf32, #tpu.memory_space<vmem>>, vector<2x4xf32>
    %c0_27 = arith.constant 0 : index
    %c0_28 = arith.constant 0 : index
    %c145 = arith.constant 145 : index
    %33 = vector.load %arg2[%c0_27, %c0_28, %c145] : memref<1x4x640xf32, #tpu.memory_space<vmem>>, vector<1x4x384xf32>
    %34 = vector.shape_cast %33 : vector<1x4x384xf32> to vector<4x384xf32>
    %cst_29 = arith.constant dense<0.000000e+00> : vector<2x384xf32>
    %35 = tpu.matmul %32, %34, %cst_29 {dimension_numbers = #tpu.dot_dimension_numbers<[1], [0], [0], [1], [0, 0, 1, 1], [], []>, precision = #tpu.contract_precision<fp32>} : vector<2x4xf32>, vector<4x384xf32>, vector<2x384xf32> -> vector<2x384xf32>
    %36 = arith.addf %31, %35 : vector<2x384xf32>
    %c0_30 = arith.constant 0 : index
    %c28 = arith.constant 28 : index
    %37 = vector.load %arg3[%c0_30, %c28] : memref<2x36xf32, #tpu.memory_space<vmem>>, vector<2x4xf32>
    %c0_31 = arith.constant 0 : index
    %c0_32 = arith.constant 0 : index
    %c146 = arith.constant 146 : index
    %38 = vector.load %arg2[%c0_31, %c0_32, %c146] : memref<1x4x640xf32, #tpu.memory_space<vmem>>, vector<1x4x384xf32>
    %39 = vector.shape_cast %38 : vector<1x4x384xf32> to vector<4x384xf32>
    %cst_33 = arith.constant dense<0.000000e+00> : vector<2x384xf32>
    %40 = tpu.matmul %37, %39, %cst_33 {dimension_numbers = #tpu.dot_dimension_numbers<[1], [0], [0], [1], [0, 0, 1, 1], [], []>, precision = #tpu.contract_precision<fp32>} : vector<2x4xf32>, vector<4x384xf32>, vector<2x384xf32> -> vector<2x384xf32>
    %41 = arith.addf %36, %40 : vector<2x384xf32>
    %c0_34 = arith.constant 0 : index
    %c32 = arith.constant 32 : index
    %42 = vector.load %arg3[%c0_34, %c32] : memref<2x36xf32, #tpu.memory_space<vmem>>, vector<2x4xf32>
    %c0_35 = arith.constant 0 : index
    %c0_36 = arith.constant 0 : index
    %c147 = arith.constant 147 : index
    %43 = vector.load %arg2[%c0_35, %c0_36, %c147] : memref<1x4x640xf32, #tpu.memory_space<vmem>>, vector<1x4x384xf32>
    %44 = vector.shape_cast %43 : vector<1x4x384xf32> to vector<4x384xf32>
    %cst_37 = arith.constant dense<0.000000e+00> : vector<2x384xf32>
    %45 = tpu.matmul %42, %44, %cst_37 {dimension_numbers = #tpu.dot_dimension_numbers<[1], [0], [0], [1], [0, 0, 1, 1], [], []>, precision = #tpu.contract_precision<fp32>} : vector<2x4xf32>, vector<4x384xf32>, vector<2x384xf32> -> vector<2x384xf32>
    %46 = arith.addf %41, %45 : vector<2x384xf32>
    %cst_38 = arith.constant 0.000000e+00 : f32
    %47 = vector.shape_cast %2 : vector<1x384xi1> to vector<1x384xi1>
    %48 = vector.broadcast %47 : vector<1x384xi1> to vector<2x384xi1>
    %49 = vector.broadcast %cst_38 : f32 to vector<2x384xf32>
    %50 = arith.select %48, %46, %49 : vector<2x384xi1>, vector<2x384xf32>
    %cst_39 = arith.constant dense<0.000000e+00> : vector<2xf32>
    %51 = vector.multi_reduction <add>, %50, %cst_39 [1] : vector<2x384xf32> to vector<2xf32>
    %52 = vector.shape_cast %51 : vector<2xf32> to vector<2x1xf32>
    %53 = arith.mulf %50, %50 : vector<2x384xf32>
    %cst_40 = arith.constant dense<0.000000e+00> : vector<2xf32>
    %54 = vector.multi_reduction <add>, %53, %cst_40 [1] : vector<2x384xf32> to vector<2xf32>
    %55 = vector.shape_cast %54 : vector<2xf32> to vector<2x1xf32>
    %cst_41 = arith.constant 3.906250e-03 : f32
    %56 = vector.broadcast %cst_41 : f32 to vector<2x1xf32>
    %57 = arith.mulf %52, %56 : vector<2x1xf32>
    %cst_42 = arith.constant 3.906250e-03 : f32
    %58 = vector.broadcast %cst_42 : f32 to vector<2x1xf32>
    %59 = arith.mulf %55, %58 : vector<2x1xf32>
    %60 = arith.mulf %57, %57 : vector<2x1xf32>
    %61 = arith.subf %59, %60 : vector<2x1xf32>
    %cst_43 = arith.constant 0.000000e+00 : f32
    %62 = vector.broadcast %cst_43 : f32 to vector<2x1xf32>
    %63 = arith.maximumf %61, %62 : vector<2x1xf32>
    %cst_44 = arith.constant 9.99999974E-6 : f32
    %64 = vector.broadcast %cst_44 : f32 to vector<2x1xf32>
    %65 = arith.addf %63, %64 : vector<2x1xf32>
    %66 = math.rsqrt %65 : vector<2x1xf32>
    %67 = vector.broadcast %57 : vector<2x1xf32> to vector<2x384xf32>
    %68 = arith.subf %50, %67 : vector<2x384xf32>
    %69 = vector.broadcast %66 : vector<2x1xf32> to vector<2x384xf32>
    %70 = arith.mulf %68, %69 : vector<2x384xf32>
    %cst_45 = arith.constant 0.000000e+00 : f32
    %71 = vector.broadcast %cst_45 : f32 to vector<2x384xf32>
    %72 = arith.cmpf oge, %70, %71 : vector<2x384xf32>
    %cst_46 = arith.constant 1.000000e-01 : f32
    %73 = vector.broadcast %cst_46 : f32 to vector<2x384xf32>
    %74 = arith.mulf %73, %70 : vector<2x384xf32>
    %75 = arith.select %72, %70, %74 : vector<2x384xi1>, vector<2x384xf32>
    %76 = vector.broadcast %0 : vector<1x384xf32> to vector<2x384xf32>
    %77 = arith.mulf %75, %76 : vector<2x384xf32>
    %c0_47 = arith.constant 0 : index
    %c128_48 = arith.constant 128 : index
    %78 = vector.load %arg9[%c0_47, %c128_48] : memref<6x640xf32, #tpu.memory_space<vmem>>, vector<2x384xf32>
    tpu.vector_store %arg9[%c0_47, %c128_48], %77 {strides = array<i32>} : memref<6x640xf32, #tpu.memory_space<vmem>>, vector<2x384xf32>,
    %c0_49 = arith.constant 0 : index
    %c0_50 = arith.constant 0 : index
    %79 = vector.load %arg4[%c0_49, %c0_50] : memref<4x18xf32, #tpu.memory_space<vmem>>, vector<4x2xf32>
    %c0_51 = arith.constant 0 : index
    %c109_52 = arith.constant 109 : index
    %80 = vector.load %arg9[%c0_51, %c109_52] : memref<6x640xf32, #tpu.memory_space<vmem>>, vector<2x384xf32>
    %cst_53 = arith.constant dense<0.000000e+00> : vector<4x384xf32>
    %81 = tpu.matmul %79, %80, %cst_53 {dimension_numbers = #tpu.dot_dimension_numbers<[1], [0], [0], [1], [0, 0, 1, 1], [], []>, precision = #tpu.contract_precision<fp32>} : vector<4x2xf32>, vector<2x384xf32>, vector<4x384xf32> -> vector<4x384xf32>
    %c0_54 = arith.constant 0 : index
    %c2 = arith.constant 2 : index
    %82 = vector.load %arg4[%c0_54, %c2] : memref<4x18xf32, #tpu.memory_space<vmem>>, vector<4x2xf32>
    %c0_55 = arith.constant 0 : index
    %c110_56 = arith.constant 110 : index
    %83 = vector.load %arg9[%c0_55, %c110_56] : memref<6x640xf32, #tpu.memory_space<vmem>>, vector<2x384xf32>
    %cst_57 = arith.constant dense<0.000000e+00> : vector<4x384xf32>
    %84 = tpu.matmul %82, %83, %cst_57 {dimension_numbers = #tpu.dot_dimension_numbers<[1], [0], [0], [1], [0, 0, 1, 1], [], []>, precision = #tpu.contract_precision<fp32>} : vector<4x2xf32>, vector<2x384xf32>, vector<4x384xf32> -> vector<4x384xf32>
    %85 = arith.addf %81, %84 : vector<4x384xf32>
    %c0_58 = arith.constant 0 : index
    %c4_59 = arith.constant 4 : index
    %86 = vector.load %arg4[%c0_58, %c4_59] : memref<4x18xf32, #tpu.memory_space<vmem>>, vector<4x2xf32>
    %c0_60 = arith.constant 0 : index
    %c111_61 = arith.constant 111 : index
    %87 = vector.load %arg9[%c0_60, %c111_61] : memref<6x640xf32, #tpu.memory_space<vmem>>, vector<2x384xf32>
    %cst_62 = arith.constant dense<0.000000e+00> : vector<4x384xf32>
    %88 = tpu.matmul %86, %87, %cst_62 {dimension_numbers = #tpu.dot_dimension_numbers<[1], [0], [0], [1], [0, 0, 1, 1], [], []>, precision = #tpu.contract_precision<fp32>} : vector<4x2xf32>, vector<2x384xf32>, vector<4x384xf32> -> vector<4x384xf32>
    %89 = arith.addf %85, %88 : vector<4x384xf32>
    %c0_63 = arith.constant 0 : index
    %c6 = arith.constant 6 : index
    %90 = vector.load %arg4[%c0_63, %c6] : memref<4x18xf32, #tpu.memory_space<vmem>>, vector<4x2xf32>
    %c0_64 = arith.constant 0 : index
    %c127_65 = arith.constant 127 : index
    %91 = vector.load %arg9[%c0_64, %c127_65] : memref<6x640xf32, #tpu.memory_space<vmem>>, vector<2x384xf32>
    %cst_66 = arith.constant dense<0.000000e+00> : vector<4x384xf32>
    %92 = tpu.matmul %90, %91, %cst_66 {dimension_numbers = #tpu.dot_dimension_numbers<[1], [0], [0], [1], [0, 0, 1, 1], [], []>, precision = #tpu.contract_precision<fp32>} : vector<4x2xf32>, vector<2x384xf32>, vector<4x384xf32> -> vector<4x384xf32>
    %93 = arith.addf %89, %92 : vector<4x384xf32>
    %c0_67 = arith.constant 0 : index
    %c8_68 = arith.constant 8 : index
    %94 = vector.load %arg4[%c0_67, %c8_68] : memref<4x18xf32, #tpu.memory_space<vmem>>, vector<4x2xf32>
    %c0_69 = arith.constant 0 : index
    %c128_70 = arith.constant 128 : index
    %95 = vector.load %arg9[%c0_69, %c128_70] : memref<6x640xf32, #tpu.memory_space<vmem>>, vector<2x384xf32>
    %cst_71 = arith.constant dense<0.000000e+00> : vector<4x384xf32>
    %96 = tpu.matmul %94, %95, %cst_71 {dimension_numbers = #tpu.dot_dimension_numbers<[1], [0], [0], [1], [0, 0, 1, 1], [], []>, precision = #tpu.contract_precision<fp32>} : vector<4x2xf32>, vector<2x384xf32>, vector<4x384xf32> -> vector<4x384xf32>
    %97 = arith.addf %93, %96 : vector<4x384xf32>
    %c0_72 = arith.constant 0 : index
    %c10 = arith.constant 10 : index
    %98 = vector.load %arg4[%c0_72, %c10] : memref<4x18xf32, #tpu.memory_space<vmem>>, vector<4x2xf32>
    %c0_73 = arith.constant 0 : index
    %c129_74 = arith.constant 129 : index
    %99 = vector.load %arg9[%c0_73, %c129_74] : memref<6x640xf32, #tpu.memory_space<vmem>>, vector<2x384xf32>
    %cst_75 = arith.constant dense<0.000000e+00> : vector<4x384xf32>
    %100 = tpu.matmul %98, %99, %cst_75 {dimension_numbers = #tpu.dot_dimension_numbers<[1], [0], [0], [1], [0, 0, 1, 1], [], []>, precision = #tpu.contract_precision<fp32>} : vector<4x2xf32>, vector<2x384xf32>, vector<4x384xf32> -> vector<4x384xf32>
    %101 = arith.addf %97, %100 : vector<4x384xf32>
    %c0_76 = arith.constant 0 : index
    %c12_77 = arith.constant 12 : index
    %102 = vector.load %arg4[%c0_76, %c12_77] : memref<4x18xf32, #tpu.memory_space<vmem>>, vector<4x2xf32>
    %c0_78 = arith.constant 0 : index
    %c145_79 = arith.constant 145 : index
    %103 = vector.load %arg9[%c0_78, %c145_79] : memref<6x640xf32, #tpu.memory_space<vmem>>, vector<2x384xf32>
    %cst_80 = arith.constant dense<0.000000e+00> : vector<4x384xf32>
    %104 = tpu.matmul %102, %103, %cst_80 {dimension_numbers = #tpu.dot_dimension_numbers<[1], [0], [0], [1], [0, 0, 1, 1], [], []>, precision = #tpu.contract_precision<fp32>} : vector<4x2xf32>, vector<2x384xf32>, vector<4x384xf32> -> vector<4x384xf32>
    %105 = arith.addf %101, %104 : vector<4x384xf32>
    %c0_81 = arith.constant 0 : index
    %c14 = arith.constant 14 : index
    %106 = vector.load %arg4[%c0_81, %c14] : memref<4x18xf32, #tpu.memory_space<vmem>>, vector<4x2xf32>
    %c0_82 = arith.constant 0 : index
    %c146_83 = arith.constant 146 : index
    %107 = vector.load %arg9[%c0_82, %c146_83] : memref<6x640xf32, #tpu.memory_space<vmem>>, vector<2x384xf32>
    %cst_84 = arith.constant dense<0.000000e+00> : vector<4x384xf32>
    %108 = tpu.matmul %106, %107, %cst_84 {dimension_numbers = #tpu.dot_dimension_numbers<[1], [0], [0], [1], [0, 0, 1, 1], [], []>, precision = #tpu.contract_precision<fp32>} : vector<4x2xf32>, vector<2x384xf32>, vector<4x384xf32> -> vector<4x384xf32>
    %109 = arith.addf %105, %108 : vector<4x384xf32>
    %c0_85 = arith.constant 0 : index
    %c16_86 = arith.constant 16 : index
    %110 = vector.load %arg4[%c0_85, %c16_86] : memref<4x18xf32, #tpu.memory_space<vmem>>, vector<4x2xf32>
    %c0_87 = arith.constant 0 : index
    %c147_88 = arith.constant 147 : index
    %111 = vector.load %arg9[%c0_87, %c147_88] : memref<6x640xf32, #tpu.memory_space<vmem>>, vector<2x384xf32>
    %cst_89 = arith.constant dense<0.000000e+00> : vector<4x384xf32>
    %112 = tpu.matmul %110, %111, %cst_89 {dimension_numbers = #tpu.dot_dimension_numbers<[1], [0], [0], [1], [0, 0, 1, 1], [], []>, precision = #tpu.contract_precision<fp32>} : vector<4x2xf32>, vector<2x384xf32>, vector<4x384xf32> -> vector<4x384xf32>
    %113 = arith.addf %109, %112 : vector<4x384xf32>
    %cst_90 = arith.constant 0.000000e+00 : f32
    %114 = vector.shape_cast %2 : vector<1x384xi1> to vector<1x384xi1>
    %115 = vector.broadcast %114 : vector<1x384xi1> to vector<4x384xi1>
    %116 = vector.broadcast %cst_90 : f32 to vector<4x384xf32>
    %117 = arith.select %115, %113, %116 : vector<4x384xi1>, vector<4x384xf32>
    %cst_91 = arith.constant dense<0.000000e+00> : vector<4xf32>
    %118 = vector.multi_reduction <add>, %117, %cst_91 [1] : vector<4x384xf32> to vector<4xf32>
    %119 = vector.shape_cast %118 : vector<4xf32> to vector<4x1xf32>
    %120 = arith.mulf %117, %117 : vector<4x384xf32>
    %cst_92 = arith.constant dense<0.000000e+00> : vector<4xf32>
    %121 = vector.multi_reduction <add>, %120, %cst_92 [1] : vector<4x384xf32> to vector<4xf32>
    %122 = vector.shape_cast %121 : vector<4xf32> to vector<4x1xf32>
    %cst_93 = arith.constant 3.906250e-03 : f32
    %123 = vector.broadcast %cst_93 : f32 to vector<4x1xf32>
    %124 = arith.mulf %119, %123 : vector<4x1xf32>
    %cst_94 = arith.constant 3.906250e-03 : f32
    %125 = vector.broadcast %cst_94 : f32 to vector<4x1xf32>
    %126 = arith.mulf %122, %125 : vector<4x1xf32>
    %127 = arith.mulf %124, %124 : vector<4x1xf32>
    %128 = arith.subf %126, %127 : vector<4x1xf32>
    %cst_95 = arith.constant 0.000000e+00 : f32
    %129 = vector.broadcast %cst_95 : f32 to vector<4x1xf32>
    %130 = arith.maximumf %128, %129 : vector<4x1xf32>
    %cst_96 = arith.constant 9.99999974E-6 : f32
    %131 = vector.broadcast %cst_96 : f32 to vector<4x1xf32>
    %132 = arith.addf %130, %131 : vector<4x1xf32>
    %133 = math.rsqrt %132 : vector<4x1xf32>
    %134 = vector.broadcast %124 : vector<4x1xf32> to vector<4x384xf32>
    %135 = arith.subf %117, %134 : vector<4x384xf32>
    %136 = vector.broadcast %133 : vector<4x1xf32> to vector<4x384xf32>
    %137 = arith.mulf %135, %136 : vector<4x384xf32>
    %cst_97 = arith.constant 0.000000e+00 : f32
    %138 = vector.broadcast %cst_97 : f32 to vector<4x384xf32>
    %139 = arith.cmpf oge, %137, %138 : vector<4x384xf32>
    %cst_98 = arith.constant 1.000000e-01 : f32
    %140 = vector.broadcast %cst_98 : f32 to vector<4x384xf32>
    %141 = arith.mulf %140, %137 : vector<4x384xf32>
    %142 = arith.select %139, %137, %141 : vector<4x384xi1>, vector<4x384xf32>
    %143 = vector.broadcast %0 : vector<1x384xf32> to vector<4x384xf32>
    %144 = arith.mulf %142, %143 : vector<4x384xf32>
    %c2_99 = arith.constant 2 : index
    %c128_100 = arith.constant 128 : index
    %145 = vector.load %arg9[%c2_99, %c128_100] : memref<6x640xf32, #tpu.memory_space<vmem>>, vector<4x384xf32>
    tpu.vector_store %arg9[%c2_99, %c128_100], %144 {strides = array<i32>} : memref<6x640xf32, #tpu.memory_space<vmem>>, vector<4x384xf32>,
    %c0_101 = arith.constant 0 : index
    %c0_102 = arith.constant 0 : index
    %146 = vector.load %arg5[%c0_101, %c0_102] : memref<6x36xf32, #tpu.memory_space<vmem>>, vector<6x4xf32>
    %c2_103 = arith.constant 2 : index
    %c109_104 = arith.constant 109 : index
    %147 = vector.load %arg9[%c2_103, %c109_104] : memref<6x640xf32, #tpu.memory_space<vmem>>, vector<4x384xf32>
    %cst_105 = arith.constant dense<0.000000e+00> : vector<6x384xf32>
    %148 = tpu.matmul %146, %147, %cst_105 {dimension_numbers = #tpu.dot_dimension_numbers<[1], [0], [0], [1], [0, 0, 1, 1], [], []>, precision = #tpu.contract_precision<fp32>} : vector<6x4xf32>, vector<4x384xf32>, vector<6x384xf32> -> vector<6x384xf32>
    %c0_106 = arith.constant 0 : index
    %c4_107 = arith.constant 4 : index
    %149 = vector.load %arg5[%c0_106, %c4_107] : memref<6x36xf32, #tpu.memory_space<vmem>>, vector<6x4xf32>
    %c2_108 = arith.constant 2 : index
    %c110_109 = arith.constant 110 : index
    %150 = vector.load %arg9[%c2_108, %c110_109] : memref<6x640xf32, #tpu.memory_space<vmem>>, vector<4x384xf32>
    %cst_110 = arith.constant dense<0.000000e+00> : vector<6x384xf32>
    %151 = tpu.matmul %149, %150, %cst_110 {dimension_numbers = #tpu.dot_dimension_numbers<[1], [0], [0], [1], [0, 0, 1, 1], [], []>, precision = #tpu.contract_precision<fp32>} : vector<6x4xf32>, vector<4x384xf32>, vector<6x384xf32> -> vector<6x384xf32>
    %152 = arith.addf %148, %151 : vector<6x384xf32>
    %c0_111 = arith.constant 0 : index
    %c8_112 = arith.constant 8 : index
    %153 = vector.load %arg5[%c0_111, %c8_112] : memref<6x36xf32, #tpu.memory_space<vmem>>, vector<6x4xf32>
    %c2_113 = arith.constant 2 : index
    %c111_114 = arith.constant 111 : index
    %154 = vector.load %arg9[%c2_113, %c111_114] : memref<6x640xf32, #tpu.memory_space<vmem>>, vector<4x384xf32>
    %cst_115 = arith.constant dense<0.000000e+00> : vector<6x384xf32>
    %155 = tpu.matmul %153, %154, %cst_115 {dimension_numbers = #tpu.dot_dimension_numbers<[1], [0], [0], [1], [0, 0, 1, 1], [], []>, precision = #tpu.contract_precision<fp32>} : vector<6x4xf32>, vector<4x384xf32>, vector<6x384xf32> -> vector<6x384xf32>
    %156 = arith.addf %152, %155 : vector<6x384xf32>
    %c0_116 = arith.constant 0 : index
    %c12_117 = arith.constant 12 : index
    %157 = vector.load %arg5[%c0_116, %c12_117] : memref<6x36xf32, #tpu.memory_space<vmem>>, vector<6x4xf32>
    %c2_118 = arith.constant 2 : index
    %c127_119 = arith.constant 127 : index
    %158 = vector.load %arg9[%c2_118, %c127_119] : memref<6x640xf32, #tpu.memory_space<vmem>>, vector<4x384xf32>
    %cst_120 = arith.constant dense<0.000000e+00> : vector<6x384xf32>
    %159 = tpu.matmul %157, %158, %cst_120 {dimension_numbers = #tpu.dot_dimension_numbers<[1], [0], [0], [1], [0, 0, 1, 1], [], []>, precision = #tpu.contract_precision<fp32>} : vector<6x4xf32>, vector<4x384xf32>, vector<6x384xf32> -> vector<6x384xf32>
    %160 = arith.addf %156, %159 : vector<6x384xf32>
    %c0_121 = arith.constant 0 : index
    %c16_122 = arith.constant 16 : index
    %161 = vector.load %arg5[%c0_121, %c16_122] : memref<6x36xf32, #tpu.memory_space<vmem>>, vector<6x4xf32>
    %c2_123 = arith.constant 2 : index
    %c128_124 = arith.constant 128 : index
    %162 = vector.load %arg9[%c2_123, %c128_124] : memref<6x640xf32, #tpu.memory_space<vmem>>, vector<4x384xf32>
    %cst_125 = arith.constant dense<0.000000e+00> : vector<6x384xf32>
    %163 = tpu.matmul %161, %162, %cst_125 {dimension_numbers = #tpu.dot_dimension_numbers<[1], [0], [0], [1], [0, 0, 1, 1], [], []>, precision = #tpu.contract_precision<fp32>} : vector<6x4xf32>, vector<4x384xf32>, vector<6x384xf32> -> vector<6x384xf32>
    %164 = arith.addf %160, %163 : vector<6x384xf32>
    %c0_126 = arith.constant 0 : index
    %c20_127 = arith.constant 20 : index
    %165 = vector.load %arg5[%c0_126, %c20_127] : memref<6x36xf32, #tpu.memory_space<vmem>>, vector<6x4xf32>
    %c2_128 = arith.constant 2 : index
    %c129_129 = arith.constant 129 : index
    %166 = vector.load %arg9[%c2_128, %c129_129] : memref<6x640xf32, #tpu.memory_space<vmem>>, vector<4x384xf32>
    %cst_130 = arith.constant dense<0.000000e+00> : vector<6x384xf32>
    %167 = tpu.matmul %165, %166, %cst_130 {dimension_numbers = #tpu.dot_dimension_numbers<[1], [0], [0], [1], [0, 0, 1, 1], [], []>, precision = #tpu.contract_precision<fp32>} : vector<6x4xf32>, vector<4x384xf32>, vector<6x384xf32> -> vector<6x384xf32>
    %168 = arith.addf %164, %167 : vector<6x384xf32>
    %c0_131 = arith.constant 0 : index
    %c24_132 = arith.constant 24 : index
    %169 = vector.load %arg5[%c0_131, %c24_132] : memref<6x36xf32, #tpu.memory_space<vmem>>, vector<6x4xf32>
    %c2_133 = arith.constant 2 : index
    %c145_134 = arith.constant 145 : index
    %170 = vector.load %arg9[%c2_133, %c145_134] : memref<6x640xf32, #tpu.memory_space<vmem>>, vector<4x384xf32>
    %cst_135 = arith.constant dense<0.000000e+00> : vector<6x384xf32>
    %171 = tpu.matmul %169, %170, %cst_135 {dimension_numbers = #tpu.dot_dimension_numbers<[1], [0], [0], [1], [0, 0, 1, 1], [], []>, precision = #tpu.contract_precision<fp32>} : vector<6x4xf32>, vector<4x384xf32>, vector<6x384xf32> -> vector<6x384xf32>
    %172 = arith.addf %168, %171 : vector<6x384xf32>
    %c0_136 = arith.constant 0 : index
    %c28_137 = arith.constant 28 : index
    %173 = vector.load %arg5[%c0_136, %c28_137] : memref<6x36xf32, #tpu.memory_space<vmem>>, vector<6x4xf32>
    %c2_138 = arith.constant 2 : index
    %c146_139 = arith.constant 146 : index
    %174 = vector.load %arg9[%c2_138, %c146_139] : memref<6x640xf32, #tpu.memory_space<vmem>>, vector<4x384xf32>
    %cst_140 = arith.constant dense<0.000000e+00> : vector<6x384xf32>
    %175 = tpu.matmul %173, %174, %cst_140 {dimension_numbers = #tpu.dot_dimension_numbers<[1], [0], [0], [1], [0, 0, 1, 1], [], []>, precision = #tpu.contract_precision<fp32>} : vector<6x4xf32>, vector<4x384xf32>, vector<6x384xf32> -> vector<6x384xf32>
    %176 = arith.addf %172, %175 : vector<6x384xf32>
    %c0_141 = arith.constant 0 : index
    %c32_142 = arith.constant 32 : index
    %177 = vector.load %arg5[%c0_141, %c32_142] : memref<6x36xf32, #tpu.memory_space<vmem>>, vector<6x4xf32>
    %c2_143 = arith.constant 2 : index
    %c147_144 = arith.constant 147 : index
    %178 = vector.load %arg9[%c2_143, %c147_144] : memref<6x640xf32, #tpu.memory_space<vmem>>, vector<4x384xf32>
    %cst_145 = arith.constant dense<0.000000e+00> : vector<6x384xf32>
    %179 = tpu.matmul %177, %178, %cst_145 {dimension_numbers = #tpu.dot_dimension_numbers<[1], [0], [0], [1], [0, 0, 1, 1], [], []>, precision = #tpu.contract_precision<fp32>} : vector<6x4xf32>, vector<4x384xf32>, vector<6x384xf32> -> vector<6x384xf32>
    %180 = arith.addf %176, %179 : vector<6x384xf32>
    %cst_146 = arith.constant 0.000000e+00 : f32
    %181 = vector.shape_cast %2 : vector<1x384xi1> to vector<1x384xi1>
    %182 = vector.broadcast %181 : vector<1x384xi1> to vector<6x384xi1>
    %183 = vector.broadcast %cst_146 : f32 to vector<6x384xf32>
    %184 = arith.select %182, %180, %183 : vector<6x384xi1>, vector<6x384xf32>
    %cst_147 = arith.constant dense<0.000000e+00> : vector<6xf32>
    %185 = vector.multi_reduction <add>, %184, %cst_147 [1] : vector<6x384xf32> to vector<6xf32>
    %186 = vector.shape_cast %185 : vector<6xf32> to vector<6x1xf32>
    %187 = arith.mulf %184, %184 : vector<6x384xf32>
    %cst_148 = arith.constant dense<0.000000e+00> : vector<6xf32>
    %188 = vector.multi_reduction <add>, %187, %cst_148 [1] : vector<6x384xf32> to vector<6xf32>
    %189 = vector.shape_cast %188 : vector<6xf32> to vector<6x1xf32>
    %cst_149 = arith.constant 3.906250e-03 : f32
    %190 = vector.broadcast %cst_149 : f32 to vector<6x1xf32>
    %191 = arith.mulf %186, %190 : vector<6x1xf32>
    %cst_150 = arith.constant 3.906250e-03 : f32
    %192 = vector.broadcast %cst_150 : f32 to vector<6x1xf32>
    %193 = arith.mulf %189, %192 : vector<6x1xf32>
    %194 = arith.mulf %191, %191 : vector<6x1xf32>
    %195 = arith.subf %193, %194 : vector<6x1xf32>
    %cst_151 = arith.constant 0.000000e+00 : f32
    %196 = vector.broadcast %cst_151 : f32 to vector<6x1xf32>
    %197 = arith.maximumf %195, %196 : vector<6x1xf32>
    %cst_152 = arith.constant 9.99999974E-6 : f32
    %198 = vector.broadcast %cst_152 : f32 to vector<6x1xf32>
    %199 = arith.addf %197, %198 : vector<6x1xf32>
    %200 = math.rsqrt %199 : vector<6x1xf32>
    %201 = vector.broadcast %191 : vector<6x1xf32> to vector<6x384xf32>
    %202 = arith.subf %184, %201 : vector<6x384xf32>
    %203 = vector.broadcast %200 : vector<6x1xf32> to vector<6x384xf32>
    %204 = arith.mulf %202, %203 : vector<6x384xf32>
    %cst_153 = arith.constant 0.000000e+00 : f32
    %205 = vector.broadcast %cst_153 : f32 to vector<6x384xf32>
    %206 = arith.cmpf oge, %204, %205 : vector<6x384xf32>
    %cst_154 = arith.constant 1.000000e-01 : f32
    %207 = vector.broadcast %cst_154 : f32 to vector<6x384xf32>
    %208 = arith.mulf %207, %204 : vector<6x384xf32>
    %209 = arith.select %206, %204, %208 : vector<6x384xi1>, vector<6x384xf32>
    %210 = vector.broadcast %0 : vector<1x384xf32> to vector<6x384xf32>
    %211 = arith.mulf %209, %210 : vector<6x384xf32>
    %c0_155 = arith.constant 0 : index
    %c0_156 = arith.constant 0 : index
    %212 = vector.load %arg6[%c0_155, %c0_156] : memref<8x12xf32, #tpu.memory_space<vmem>>, vector<8x6xf32>
    %c0_157 = arith.constant 0 : index
    %c128_158 = arith.constant 128 : index
    %213 = vector.load %arg9[%c0_157, %c128_158] : memref<6x640xf32, #tpu.memory_space<vmem>>, vector<6x384xf32>
    %cst_159 = arith.constant dense<0.000000e+00> : vector<8x384xf32>
    %214 = tpu.matmul %212, %213, %cst_159 {dimension_numbers = #tpu.dot_dimension_numbers<[1], [0], [0], [1], [0, 0, 1, 1], [], []>, precision = #tpu.contract_precision<fp32>} : vector<8x6xf32>, vector<6x384xf32>, vector<8x384xf32> -> vector<8x384xf32>
    %c0_160 = arith.constant 0 : index
    %c6_161 = arith.constant 6 : index
    %215 = vector.load %arg6[%c0_160, %c6_161] : memref<8x12xf32, #tpu.memory_space<vmem>>, vector<8x6xf32>
    %cst_162 = arith.constant dense<0.000000e+00> : vector<8x384xf32>
    %216 = tpu.matmul %215, %211, %cst_162 {dimension_numbers = #tpu.dot_dimension_numbers<[1], [0], [0], [1], [0, 0, 1, 1], [], []>, precision = #tpu.contract_precision<fp32>} : vector<8x6xf32>, vector<6x384xf32>, vector<8x384xf32> -> vector<8x384xf32>
    %217 = arith.addf %214, %216 : vector<8x384xf32>
    %c0_163 = arith.constant 0 : index
    %c0_164 = arith.constant 0 : index
    %218 = vector.load %arg7[%c0_163, %c0_164] : memref<8x4xf32, #tpu.memory_space<vmem>>, vector<8x4xf32>
    %c0_165 = arith.constant 0 : index
    %c0_166 = arith.constant 0 : index
    %c128_167 = arith.constant 128 : index
    %219 = vector.load %arg2[%c0_165, %c0_166, %c128_167] : memref<1x4x640xf32, #tpu.memory_space<vmem>>, vector<1x4x384xf32>
    %220 = vector.shape_cast %219 : vector<1x4x384xf32> to vector<4x384xf32>
    %cst_168 = arith.constant dense<0.000000e+00> : vector<8x384xf32>
    %221 = tpu.matmul %218, %220, %cst_168 {dimension_numbers = #tpu.dot_dimension_numbers<[1], [0], [0], [1], [0, 0, 1, 1], [], []>, precision = #tpu.contract_precision<fp32>} : vector<8x4xf32>, vector<4x384xf32>, vector<8x384xf32> -> vector<8x384xf32>
    %cst_169 = arith.constant 0.000000e+00 : f32
    %222 = vector.shape_cast %2 : vector<1x384xi1> to vector<1x384xi1>
    %223 = vector.broadcast %222 : vector<1x384xi1> to vector<8x384xi1>
    %224 = vector.broadcast %cst_169 : f32 to vector<8x384xf32>
    %225 = arith.select %223, %217, %224 : vector<8x384xi1>, vector<8x384xf32>
    %cst_170 = arith.constant dense<0.000000e+00> : vector<8xf32>
    %226 = vector.multi_reduction <add>, %225, %cst_170 [1] : vector<8x384xf32> to vector<8xf32>
    %227 = vector.shape_cast %226 : vector<8xf32> to vector<8x1xf32>
    %228 = arith.mulf %225, %225 : vector<8x384xf32>
    %cst_171 = arith.constant dense<0.000000e+00> : vector<8xf32>
    %229 = vector.multi_reduction <add>, %228, %cst_171 [1] : vector<8x384xf32> to vector<8xf32>
    %230 = vector.shape_cast %229 : vector<8xf32> to vector<8x1xf32>
    %cst_172 = arith.constant 3.906250e-03 : f32
    %231 = vector.broadcast %cst_172 : f32 to vector<8x1xf32>
    %232 = arith.mulf %227, %231 : vector<8x1xf32>
    %cst_173 = arith.constant 3.906250e-03 : f32
    %233 = vector.broadcast %cst_173 : f32 to vector<8x1xf32>
    %234 = arith.mulf %230, %233 : vector<8x1xf32>
    %235 = arith.mulf %232, %232 : vector<8x1xf32>
    %236 = arith.subf %234, %235 : vector<8x1xf32>
    %cst_174 = arith.constant 0.000000e+00 : f32
    %237 = vector.broadcast %cst_174 : f32 to vector<8x1xf32>
    %238 = arith.maximumf %236, %237 : vector<8x1xf32>
    %cst_175 = arith.constant 9.99999974E-6 : f32
    %239 = vector.broadcast %cst_175 : f32 to vector<8x1xf32>
    %240 = arith.addf %238, %239 : vector<8x1xf32>
    %241 = math.rsqrt %240 : vector<8x1xf32>
    %242 = vector.broadcast %232 : vector<8x1xf32> to vector<8x384xf32>
    %243 = arith.subf %225, %242 : vector<8x384xf32>
    %244 = vector.broadcast %241 : vector<8x1xf32> to vector<8x384xf32>
    %245 = arith.mulf %243, %244 : vector<8x384xf32>
    %cst_176 = arith.constant 0.000000e+00 : f32
    %246 = vector.broadcast %cst_176 : f32 to vector<8x384xf32>
    %247 = arith.cmpf oge, %245, %246 : vector<8x384xf32>
    %cst_177 = arith.constant 1.000000e-01 : f32
    %248 = vector.broadcast %cst_177 : f32 to vector<8x384xf32>
    %249 = arith.mulf %248, %245 : vector<8x384xf32>
    %250 = arith.select %247, %245, %249 : vector<8x384xi1>, vector<8x384xf32>
    %cst_178 = arith.constant 0.000000e+00 : f32
    %251 = vector.shape_cast %2 : vector<1x384xi1> to vector<1x384xi1>
    %252 = vector.broadcast %251 : vector<1x384xi1> to vector<8x384xi1>
    %253 = vector.broadcast %cst_178 : f32 to vector<8x384xf32>
    %254 = arith.select %252, %221, %253 : vector<8x384xi1>, vector<8x384xf32>
    %cst_179 = arith.constant dense<0.000000e+00> : vector<8xf32>
    %255 = vector.multi_reduction <add>, %254, %cst_179 [1] : vector<8x384xf32> to vector<8xf32>
    %256 = vector.shape_cast %255 : vector<8xf32> to vector<8x1xf32>
    %257 = arith.mulf %254, %254 : vector<8x384xf32>
    %cst_180 = arith.constant dense<0.000000e+00> : vector<8xf32>
    %258 = vector.multi_reduction <add>, %257, %cst_180 [1] : vector<8x384xf32> to vector<8xf32>
    %259 = vector.shape_cast %258 : vector<8xf32> to vector<8x1xf32>
    %cst_181 = arith.constant 3.906250e-03 : f32
    %260 = vector.broadcast %cst_181 : f32 to vector<8x1xf32>
    %261 = arith.mulf %256, %260 : vector<8x1xf32>
    %cst_182 = arith.constant 3.906250e-03 : f32
    %262 = vector.broadcast %cst_182 : f32 to vector<8x1xf32>
    %263 = arith.mulf %259, %262 : vector<8x1xf32>
    %264 = arith.mulf %261, %261 : vector<8x1xf32>
    %265 = arith.subf %263, %264 : vector<8x1xf32>
    %cst_183 = arith.constant 0.000000e+00 : f32
    %266 = vector.broadcast %cst_183 : f32 to vector<8x1xf32>
    %267 = arith.maximumf %265, %266 : vector<8x1xf32>
    %cst_184 = arith.constant 9.99999974E-6 : f32
    %268 = vector.broadcast %cst_184 : f32 to vector<8x1xf32>
    %269 = arith.addf %267, %268 : vector<8x1xf32>
    %270 = math.rsqrt %269 : vector<8x1xf32>
    %271 = vector.broadcast %261 : vector<8x1xf32> to vector<8x384xf32>
    %272 = arith.subf %254, %271 : vector<8x384xf32>
    %273 = vector.broadcast %270 : vector<8x1xf32> to vector<8x384xf32>
    %274 = arith.mulf %272, %273 : vector<8x384xf32>
    %cst_185 = arith.constant 0.000000e+00 : f32
    %275 = vector.broadcast %cst_185 : f32 to vector<8x384xf32>
    %276 = arith.cmpf oge, %274, %275 : vector<8x384xf32>
    %cst_186 = arith.constant 1.000000e-01 : f32
    %277 = vector.broadcast %cst_186 : f32 to vector<8x384xf32>
    %278 = arith.mulf %277, %274 : vector<8x384xf32>
    %279 = arith.select %276, %274, %278 : vector<8x384xi1>, vector<8x384xf32>
    %280 = arith.addf %250, %279 : vector<8x384xf32>
    %c0_187 = arith.constant 0 : index
    %c0_188 = arith.constant 0 : index
    %c0_189 = arith.constant 0 : index
    %281 = vector.load %arg8[%c0_187, %c0_188, %c0_189] : memref<1x8x384xf32, #tpu.memory_space<vmem>>, vector<1x8x384xf32>
    %282 = vector.shape_cast %281 : vector<1x8x384xf32> to vector<8x384xf32>
    %283 = vector.shape_cast %280 : vector<8x384xf32> to vector<1x8x384xf32>
    tpu.vector_store %arg8[%c0_187, %c0_188, %c0_189], %283 {strides = array<i32>} : memref<1x8x384xf32, #tpu.memory_space<vmem>>, vector<1x8x384xf32>,
    return
  }
  func.func @transform_0(%arg0: i32) -> (i32, i32) {
    %c0_i32 = arith.constant 0 : i32
    %c0_i32_0 = arith.constant 0 : i32
    %c0_i32_1 = arith.constant 0 : i32
    return %c0_i32, %c0_i32_0 : i32, i32
  }
  func.func @transform_1(%arg0: i32) -> (i32, i32, i32) {
    %c0_i32 = arith.constant 0 : i32
    %c0_i32_0 = arith.constant 0 : i32
    %c0_i32_1 = arith.constant 0 : i32
    return %arg0, %c0_i32, %c0_i32_0 : i32, i32, i32
  }
  func.func @transform_2(%arg0: i32) -> (i32, i32) {
    %c0_i32 = arith.constant 0 : i32
    %c0_i32_0 = arith.constant 0 : i32
    %c0_i32_1 = arith.constant 0 : i32
    return %c0_i32, %c0_i32_0 : i32, i32
  }
  func.func @transform_3(%arg0: i32) -> (i32, i32) {
    %c0_i32 = arith.constant 0 : i32
    %c0_i32_0 = arith.constant 0 : i32
    %c0_i32_1 = arith.constant 0 : i32
    return %c0_i32, %c0_i32_0 : i32, i32
  }
  func.func @transform_4(%arg0: i32) -> (i32, i32) {
    %c0_i32 = arith.constant 0 : i32
    %c0_i32_0 = arith.constant 0 : i32
    %c0_i32_1 = arith.constant 0 : i32
    return %c0_i32, %c0_i32_0 : i32, i32
  }
  func.func @transform_5(%arg0: i32) -> (i32, i32) {
    %c0_i32 = arith.constant 0 : i32
    %c0_i32_0 = arith.constant 0 : i32
    %c0_i32_1 = arith.constant 0 : i32
    return %c0_i32, %c0_i32_0 : i32, i32
  }
  func.func @transform_6(%arg0: i32) -> (i32, i32) {
    %c0_i32 = arith.constant 0 : i32
    %c0_i32_0 = arith.constant 0 : i32
    %c0_i32_1 = arith.constant 0 : i32
    return %c0_i32, %c0_i32_0 : i32, i32
  }
  func.func @transform_7(%arg0: i32) -> (i32, i32, i32) {
    %c0_i32 = arith.constant 0 : i32
    %c0_i32_0 = arith.constant 0 : i32
    %c0_i32_1 = arith.constant 0 : i32
    return %arg0, %c0_i32, %c0_i32_0 : i32, i32, i32
  }
}

</mosaic_0001>

<bundles_post_ra>
// kernel: tpu_custom_call.1
= control target key start
LH: loop header
LB: loop body
LE: loop exit
PB: predicated region body
PF: predicated region fallthrough
CT: control target
= control target key end

     0   :  { %s33450_s0 = inlined_call_operand.vmem [shape: f32[1,384], index: 0, kind: input, shape index: {}]   ;;  %s33451_s1 = inlined_call_operand.hbm [shape: f32[2,4,640], index: 1, kind: input, shape index: {}]   ;;  %s33452_s2 = inlined_call_operand.hbm [shape: f32[2,36], index: 2, kind: input, shape index: {}]   ;;  %s33453_s3 = inlined_call_operand.hbm [shape: f32[4,18], index: 3, kind: input, shape index: {}]   ;;  %s33454_s4 = inlined_call_operand.vmem [shape: f32[6,36], index: 4, kind: input, shape index: {}]   ;;  %s33455_s5 = inlined_call_operand.vmem [shape: f32[8,12], index: 5, kind: input, shape index: {}]   ;;  %s33456_s6 = inlined_call_operand.vmem [shape: f32[8,4], index: 6, kind: input, shape index: {}]   ;;  %s33457_s7 = inlined_call_operand.hbm [shape: f32[2,8,384], index: 7, kind: output, shape index: {}]  }
   0x1   :  { %33472 = sst [smem:[#allocation13_spill]] %s33452_s2 }
   0x2   :  { %12 = vsyncpa [#allocation4], 0 }
   0x3   :  { %14 = vsyncpa [#allocation4 + $0x1], 0 }
   0x4   :  { %15 = vsyncpa [#allocation7], 0 }
   0x5   :  { %16 = vsyncpa [#allocation5], 0 }
   0x6   :  { %18 = vsyncpa [#allocation5 + $0x1], 0  ;;  %s31079_s24 = smov 0   ;;  %s31081_s25 = smov 0  }
   0x7   :  { %s31083_s26 = smov 0   ;;  %s31085_s27 = smov 0  }
   0x8 LB: > { %s31100_s28 = sadd.s32 4294967295, %s31010_s27   ;;  %s28772_s29 = sadd.s32 4294967294, %s31010_s27   ;;  %s31010_s27 = sphi %s31085_s27, %s33510_s27   ;;  %s31006_s26 = sphi %s31083_s26, %s33509_s26   ;;  %s31002_s25 = sphi %s31081_s25, %s33508_s25   ;;  %s30998_s24 = sphi %s31079_s24, %s33507_s24  }
   0x9   : > { %p65_p0 = scmp.ne.s32.totalorder %s31002_s25, %s30998_s24  ;;  %p33458_p1 = scmp.eq.s32.totalorder %s31100_s28, 0 }
   0xa   : > { %p200_p3 = scmp.eq.s32.totalorder %s28772_s29, 1  ;;  %p28773_p5 = scmp.ge.s32.totalorder %s31010_s27, 1 }
   0xb   : > { %p31109_p4 = por %p33458_p1, %p65_p0  ;;  %p207_p7 = scmp.lt.s32.totalorder %s31010_s27, 3 }
   0xc   : > { %p31114_p6 = por %p200_p3, %p65_p0  ;;  %s31012_s10 = smov [#allocation6]  }
   0xd   : > { %s33473_s30 = scalar_select %p31109_p4, 1, 0 }
   0xe   : > { %s33474_s8 = scalar_select %p31114_p6, 1, 0 }
   0xf   : > { %p31119_p8 = pnand %p28773_p5, %p207_p7  ;;  %s223_s11 = sshll.u32 %s31012_s10, 4  ;;  %s224_s11 = int_to_ptr.vmem [resolvable:$true] %s223_s11 }
  0x10   : > { %s31013_s12 = smov [#allocation8]   ;;  %s31135_s15 = sadd.s32 1, %s31010_s27  }
  0x11   : > { %s33475_s9 = scalar_select %p31119_p8, 1, 0 }
  0x12   : > { %p30761_p10 = pneg %p31119_p8  ;;  %s234_s13 = sshll.u32 %s31013_s12, 4  ;;  %s31132_s13 = int_to_ptr.vmem [resolvable:$true] %s234_s13 }
  0x13   : > { %s49_s16 = ssub.s32 %s31010_s27, %s31135_s15  ;;  %s33477_s2 = sld [smem:[#allocation13_spill]] }
  0x14   : > { %p31128_p11 = pnand %p30761_p10, %p33458_p1 }
  0x16   : > { %p30856_p13 = pneg %p31128_p11 }
  0x19   : > { %s30854_s19 = scalar_lea.hbm %s33477_s2, 32 }
  0x1a   : > { %p30855_p12 = scmp.ne.s32.totalorder %s33477_s2, %s30854_s19  ;;  %p30861_p5 = scmp.lt.u32.totalorder %s30854_s19, %s33477_s2 }
  0x1c   : > { %p30857_p0 = pnand %p30856_p13, %p30855_p12 }
  0x1e   : > { %p30858_p3 = pneg %p30857_p0 }
  0x20   : > { %p30863_p7 = pnand %p30861_p5, %p30858_p3 }
  0x22   : > { %30866 = shalt.err (!%p30863_p7)
}
  0x23   : > { %s30867_s29 = scalar_lea.vmem %s224_s11, 32  ;;  %p30875_p2 = scmp.lt.s32.totalorder %s224_s11, %s224_s11 }
  0x24   : > { %p30868_p10 = scmp.ne.s32.totalorder %s224_s11, %s30867_s29  ;;  %p30876_p6 = scmp.lt.s32.totalorder %s30867_s29, %s30867_s29 }
  0x26   : > { %p30870_p9 = pnand %p30868_p10, %p30856_p13  ;;  %p30877_p4 = por %p30876_p6, %p30875_p2 }
  0x28   : > { %p30871_p1 = pneg %p30870_p9 }
  0x2a   : > { %p30878_p8 = pnand %p30877_p4, %p30871_p1 }
  0x2c   : > { %30881 = shalt.err (!%p30878_p8)
}
  0x2d   : > { %30764 = dma.hbm_to_vmem [thread:$0]  (!%p31128_p11), %s33477_s2, 32, %s224_s11, [#allocation7]  }
  0x2e   : > { %s30882_s19 = scalar_lea.hbm %s33453_s3, 64 }
  0x2f   : > { %p30883_p9 = scmp.ne.s32.totalorder %s33453_s3, %s30882_s19  ;;  %p30889_p4 = scmp.lt.u32.totalorder %s30882_s19, %s33453_s3 }
  0x31   : > { %p30885_p2 = pnand %p30883_p9, %p30856_p13 }
  0x33   : > { %p30886_p1 = pneg %p30885_p2 }
  0x35   : > { %p30891_p6 = pnand %p30889_p4, %p30886_p1 }
  0x37   : > { %30894 = shalt.err (!%p30891_p6)
}
  0x38   : > { %s30895_s11 = scalar_lea.vmem %s31132_s13, 64  ;;  %p30903_p3 = scmp.lt.s32.totalorder %s31132_s13, %s31132_s13 }
  0x39   : > { %p30896_p8 = scmp.ne.s32.totalorder %s31132_s13, %s30895_s11  ;;  %p30904_p5 = scmp.lt.s32.totalorder %s30895_s11, %s30895_s11 }
  0x3b   : > { %p30898_p12 = pnand %p30896_p8, %p30856_p13  ;;  %p30905_p7 = por %p30904_p5, %p30903_p3 }
  0x3d   : > { %p30899_p0 = pneg %p30898_p12 }
  0x3f   : > { %p30906_p10 = pnand %p30905_p7, %p30899_p0 }
  0x41   : > { %30909 = shalt.err (!%p30906_p10)
}
  0x42   : > { %30767 = dma.hbm_to_vmem [thread:$0]  (!%p31128_p11), %s33453_s3, 64, %s31132_s13, [#allocation7]  }
  0x43   : > { %p50_p13 = scmp.eq.s32.totalorder %s49_s16, 0  ;;  %s52_s12 = sadd.s32 1, %s31006_s26 }
  0x44   : > { %p59_p9 = scmp.ne.s32.totalorder %s31006_s26, %s31002_s25  ;;  %p60_p2 = scmp.eq.s32.totalorder %s31010_s27, 0 }
  0x45   : > { %s31194_s14 = scalar_select %p50_p13, %s31006_s26, %s52_s12  }
  0x46   : > { %p61_p1 = por %p60_p2, %p59_p9  ;;  %p33478_p4 = scmp.eq.s32.totalorder %s31100_s28, 1 }
  0x47   : > { %p30778_p8 = scmp.lt.s32.totalorder %s31010_s27, 2  ;;  %s254_s18 = sand.u32 1, %s31006_s26  }
  0x48   : > { %p31198_p6 = por %p33478_p4, %p59_p9  ;;  %s30744_s19 = smul.u32 20, %s254_s18 }
  0x49   : > { %s30745_s20 = smul.u32 320, %s31010_s27  ;;  %p31205_p12 = pnand %p30778_p8, %p61_p1 }
  0x4a   : > { %s258_s23 = scalar_lea.vmem [#allocation3], %s30744_s19  ;;  %s255_s29 = scalar_lea.sflag [#allocation4], %s254_s18 }
  0x4b   : > { %s31212_s22 = scalar_lea.hbm %s33451_s1, %s30745_s20  ;;  %s266_s11 = sshll.u32 %s258_s23, 4  ;;  %s31214_s11 = int_to_ptr.vmem [resolvable:$true] %s266_s11 }
  0x4c   : > { %s30910_s10 = scalar_lea.hbm %s31212_s22, 320  ;;  %p30912_p0 = pneg %p31205_p12 }
  0x4d   : > { %p30911_p11 = scmp.ne.s32.totalorder %s31212_s22, %s30910_s10  ;;  %s30915_s13 = scalar_lea.hbm %s33451_s1, 640 }
  0x4e   : > { %p30916_p7 = scmp.lt.u32.totalorder %s31212_s22, %s33451_s1  ;;  %p30917_p10 = scmp.lt.u32.totalorder %s30915_s13, %s30910_s10 }
  0x4f   : > { %p30913_p3 = pnand %p30912_p0, %p30911_p11  ;;  %p30919_p9 = scmp.lt.u32.totalorder %s30910_s10, %s31212_s22 }
  0x50   : > { %p30918_p13 = por %p30917_p10, %p30916_p7 }
  0x51   : > { %p30914_p5 = pneg %p30913_p3 }
  0x52   : > { %p30920_p2 = por %p30919_p9, %p30918_p13 }
  0x54   : > { %p30921_p1 = pnand %p30920_p2, %p30914_p5 }
  0x56   : > { %30924 = shalt.err (!%p30921_p1)
}
  0x57   : > { %s30925_s18 = scalar_lea.vmem %s31214_s11, 320  ;;  %s31014_s19 = smov [#allocation3]  }
  0x58   : > { %p30926_p4 = scmp.ne.s32.totalorder %s31214_s11, %s30925_s18  ;;  %s30930_s23 = sshll.u32 %s31014_s19, 4  ;;  %s30931_s23 = int_to_ptr.vmem [resolvable:$false] %s30930_s23 }
  0x59   : > { %s30932_s2 = scalar_lea.vmem %s30931_s23, 640  ;;  %p30933_p3 = scmp.lt.s32.totalorder %s31214_s11, %s30931_s23 }
  0x5a   : > { %p30928_p8 = pnand %p30926_p4, %p30912_p0  ;;  %p30934_p7 = scmp.lt.s32.totalorder %s30932_s2, %s30925_s18 }
  0x5c   : > { %p30929_p11 = pneg %p30928_p8  ;;  %p30935_p10 = por %p30934_p7, %p30933_p3 }
  0x5e   : > { %p30936_p13 = pnand %p30935_p10, %p30929_p11 }
  0x60   : > { %30939 = shalt.err (!%p30936_p13)
}
  0x61   : > { %30771 = dma.hbm_to_vmem [thread:$0]  (!%p31205_p12), %s31212_s22, 320, %s31214_s11, %s255_s29  }
  0x62   : > { %p33481_p5 = scmp.ne.s32.totalorder %s33475_s9, 0 }
  0x63   : > { %s31244_s10 = sand.u32 (!%p33481_p5), 1, %s31002_s25   ;;  %p33482_p0 = scmp.ne.s32.totalorder (!%p33481_p5), %s33473_s30, 0 }
  0x64   : > { %275 = sbr.rel (%p33481_p5) target bundleno = 3489 (0xda1), region = 48  ;;  %s278_s20 = scalar_lea.sflag (!%p33481_p5), [#allocation4], %s31244_s10 }
  0x65   : > { %s30746_s12 = smul.u32 (!%p33481_p5), 20, %s31244_s10 }
  0x67   : > { %s31248_s13 = scalar_lea.vmem (!%p33481_p5), [#allocation3], %s30746_s12 }
  0x6b   : > { %30985 = dma.done.wait (%p33482_p0), %s278_s20, 320  }
  0x6c   : > { %30987 = vsyncadd (%p33482_p0), %s278_s20, 4294966976  ;;  %p33483_p12 = scmp.eq.s32.totalorder %s31100_s28, 0 }
  0x6e   : > { %30989 = dma.done.wait (%p33483_p12), [#allocation7], 96   ;;  %p33484_p9 = pmov %p33483_p12 }
  0x6f   : > { %v31015_v0 = vmov 0.0   ;;  %v324_v1 = vld [vmem:[%s31248_s13 + $0x8] sm:$0xff]  ;;  %v323_v3 = vld [vmem:[%s31248_s13] sm:$0xff]  ;;  %vm31016_vm0 = vmmov 0   ;;  %s31017_s30 = smov 18   ;;  %s31018_s9 = smov 124  }
  0x70   : > { %30991 = vsyncadd (%p33484_p9), [#allocation7], 4294967200  ;;  %420 = vmatprep.mubr.f32.mxu0 %v31015_v0  ;;  %29144 = vmatprep.subr.mxu1 %v31015_v0  ;;  %v31261_v2 = vld [vmem:[#allocation6] sm:$0x3]  ;;  %v330_v4 = vcombine.high %v323_v3, %v323_v3  ;;  %v331_v5 = vcombine.high %v324_v1, %v324_v1  ;;  %s31019_s21 = smov 19   ;;  %s31020_s22 = smov 120  }
  0x71   : > { %29146 = vmatprep.mubr.msk.f32.mxu1 %vm31016_vm0, %v31015_v0  ;;  %336 = vrot.lane.b32.xlu1 %v324_v1, %s31017_s30  ;;  %v2196_v6 = vld [vmem:[#allocation6] sm:$0x3]  ;;  %s31021_s11 = smov 17   ;;  %s31022_s29 = smov 116   ;;  %v31298_v12 = vld [vmem:[%s31248_s13 + $0xc] sm:$0xff]  ;;  %vm33467_vm1 = vcmask 31744  }
  0x72   : > { %326 = vrot.lane.b32.xlu0 %v31261_v2, %s31018_s9  ;;  %v3140_v7 = vld [vmem:[#allocation6] sm:$0x3]  ;;  %s31023_s16 = smov 1   ;;  %s31024_s18 = smov 112   ;;  %v31302_v13 = vcombine.high %v31298_v12, %v31298_v12  ;;  %vm340_vm2 = vcmask 146432   ;;  %vm347_vm3 = vcmask 1043456  }
  0x73   : > { %v4084_v8 = vld [vmem:[#allocation6] sm:$0x3]  ;;  %s33463_s19 = smov 108   ;;  %s31026_s23 = smov 127   ;;  %vm1273_vm4 = vcmask 154624   ;;  %v1277_v54 = vsel %vm33467_vm1, %v31261_v2, 0 }
  0x74   : > { %v31288_v9 = vld [vmem:[%s31248_s13 + $0x4] sm:$0xff]  ;;  %v31371_v59 = vand.u32 4294901760, %v1277_v54  ;;  %s33461_s2 = smov 104   ;;  %s31028_s12 = smov 111   ;;  %vm2214_vm5 = vcmask 138240   ;;  %vm3158_vm6 = vcmask 7168  }
  0x75   : > { %332 = vrot.lane.b32.xlu1 %v323_v3, %s31017_s30  ;;  %v5015_v10 = vld [vmem:[#allocation6] sm:$0x3]  ;;  %v31292_v11 = vcombine.high %v31288_v9, %v31288_v9  ;;  %s33462_s20 = smov 100   ;;  %vm5033_vm7 = vcmask 1039360   ;;  %vm5977_vm8 = vcmask 908288   ;;  %vm6921_vm9 = vcmask 900096  }
  0x76   : > { %334 = vrot.lane.b32.xlu0 %v330_v4, %s31017_s30  ;;  %v5959_v58 = vld [vmem:[#allocation6] sm:$0x3]  ;;  %vm7865_vm10 = vcmask 891904   ;;  %vm8810_vm13 = vcmask 1041408  }
  0x79   : > { %1267 = vrot.lane.b32.xlu1 %v330_v4, %s31019_s21 }
  0x7a   : > { %338 = vrot.lane.b32.xlu0 %v331_v5, %s31017_s30 }
  0x7d   : > { %1265 = vrot.lane.b32.xlu1 %v323_v3, %s31019_s21 }
  0x7e   : > { %1269 = vrot.lane.b32.xlu0 %v324_v1, %s31019_s21 }
  0x81   : > { %2200 = vrot.lane.b32.xlu1 %v2196_v6, %s31020_s22 }
  0x82   : > { %1271 = vrot.lane.b32.xlu0 %v331_v5, %s31019_s21 }
  0x85   : > { %2210 = vrot.lane.b32.xlu1 %v324_v1, %s31021_s11 }
  0x86   : > { %2208 = vrot.lane.b32.xlu0 %v330_v4, %s31021_s11 }
  0x89   : > { %2212 = vrot.lane.b32.xlu1 %v331_v5, %s31021_s11 }
  0x8a   : > { %2206 = vrot.lane.b32.xlu0 %v323_v3, %s31021_s11 }
  0x8d   : > { %3152 = vrot.lane.b32.xlu1 %v330_v4, %s31023_s16 }
  0x8e   : > { %3144 = vrot.lane.b32.xlu0 %v3140_v7, %s31022_s29 }
  0x91   : > { %3150 = vrot.lane.b32.xlu1 %v323_v3, %s31023_s16 }
  0x92   : > { %3154 = vrot.lane.b32.xlu0 %v324_v1, %s31023_s16  ;;  %v1353_v1 = vsub.f32 %v1277_v54, %v31371_v59 }
  0x95   : > { %4088 = vrot.lane.b32.xlu1 %v4084_v8, %s31024_s18 }
  0x96   : > { %3156 = vrot.lane.b32.xlu0 %v331_v5, %s31023_s16  ;;  %v1354_v5 = vand.u32 4294901760, %v1353_v1 }
  0x99   : > { %5027 = vrot.lane.b32.xlu1 %v31292_v11, %s31026_s23 }
  0x9a   : > { %5019 = vrot.lane.b32.xlu0 %v5015_v10, %s33463_s19  ;;  %v1355_v10 = vsub.f32 %v1353_v1, %v1354_v5  ;;  %s33465_s19 = smov 109  }
  0x9d   : > { %5025 = vrot.lane.b32.xlu1 %v31288_v9, %s31026_s23 }
  0x9e   : > { %5029 = vrot.lane.b32.xlu0 %v31298_v12, %s31026_s23 }
  0xa1   : > { %5963 = vrot.lane.b32.xlu1 %v5959_v58, %s33461_s2  ;;  %s33470_s2 = smov 110  }
  0xa2   : > { %5031 = vrot.lane.b32.xlu0 %v31302_v13, %s31026_s23 }
  0xa5   : > { %5973 = vrot.lane.b32.xlu1 %v31298_v12, %s31028_s12 }
  0xa6   : > { %5971 = vrot.lane.b32.xlu0 %v31292_v11, %s31028_s12 }
  0xa9   : > { %5975 = vrot.lane.b32.xlu1 %v31302_v13, %s31028_s12 }
  0xaa   : > { %5969 = vrot.lane.b32.xlu0 %v31288_v9, %s31028_s12 }
  0xad   : > { %6915 = vrot.lane.b32.xlu1 %v31292_v11, %s33470_s2 }
  0xb1   : > { %6913 = vrot.lane.b32.xlu1 %v31288_v9, %s33470_s2 }
  0xe3   : > { %v337_v14 = vpop.permute.xlu1 %336 }
  0xe4   : > { %v327_v15 = vpop.permute.xlu0 %326 }
  0xe5   : > { %v345_v16 = vsel %vm33467_vm1, %v327_v15, 0 }
  0xe6   : > { %v31311_v17 = vand.u32 4294901760, %v345_v16 }
  0xe7   : > { %v333_v19 = vpop.permute.xlu1 %332 }
  0xe8   : > { %v422_v18 = vsub.f32 %v345_v16, %v31311_v17  ;;  %v335_v20 = vpop.permute.xlu0 %334  ;;  %v1356_v16 = vand.u32 4294901760, %v1355_v10 }
  0xe9   : > { %v341_v21 = vsel %vm340_vm2, %v333_v19, %v335_v20  ;;  %v342_v22 = vsel %vm340_vm2, %v335_v20, %v337_v14 }
  0xea   : > { %v348_v23 = vsel %vm347_vm3, %v341_v21, 0  ;;  %v350_v24 = vsel %vm347_vm3, %v342_v22, 0  ;;  %v31318_v25 = vand.u32 4294901760, %v422_v18 }
  0xeb   : > { %v31320_v26 = vand.u32 4294901760, %v350_v24  ;;  %v31322_v27 = vand.u32 4294901760, %v348_v23  ;;  %v1268_v47 = vpop.permute.xlu1 %1267 }
  0xec   : > { %v339_v28 = vpop.permute.xlu0 %338  ;;  %v424_v29 = vsub.f32 %v422_v18, %v31318_v25 }
  0xed   : > { %v433_v30 = vsub.f32 %v350_v24, %v31320_v26  ;;  %v439_v31 = vsub.f32 %v348_v23, %v31322_v27  ;;  %v343_v32 = vsel %vm340_vm2, %v337_v14, %v339_v28  ;;  %355 = vmatprep.subr.mxu0 %v31320_v26 }
  0xee   : > { %v352_v33 = vsel %vm347_vm3, %v343_v32, 0  ;;  %357 = vmatpush1.msra.mxu0 %v31322_v27  ;;  %v425_v34 = vand.u32 4294901760, %v424_v29 }
  0xef   : > { %v31331_v35 = vand.u32 4294901760, %v352_v33  ;;  %v434_v36 = vand.u32 4294901760, %v433_v30  ;;  %v440_v37 = vand.u32 4294901760, %v439_v31  ;;  %v1266_v50 = vpop.permute.xlu1 %1265 }
  0xf0   : > { %426 = vmatmul.mubr.f32.vlgmr.msra.gmra.mrb[0].mxu0 %v425_v34  ;;  %v1270_v46 = vpop.permute.xlu0 %1269  ;;  %v1274_v53 = vsel %vm1273_vm4, %v1266_v50, %v1268_v47 }
  0xf1   : > { %v897_v38 = vsub.f32 %v352_v33, %v31331_v35  ;;  %29145 = vmatpush3.msra.mxu1 %v31331_v35  ;;  %v435_v39 = vsub.f32 %v433_v30, %v434_v36  ;;  %v441_v40 = vsub.f32 %v439_v31, %v440_v37  ;;  %506 = vmatprep.mubr.f32.mxu0 %v31015_v0  ;;  %v1279_v57 = vsel %vm347_vm3, %v1274_v53, 0 }
  0xf2   : > { %29147 = vmatmul.mubr.f32.vlgmr.msra.gmra.mrb[0].mxu1 %v425_v34  ;;  %29149 = vmatprep.subr.mxu1 %v31015_v0  ;;  %v1275_v48 = vsel %vm1273_vm4, %v1268_v47, %v1270_v46  ;;  %v31376_v61 = vand.u32 4294901760, %v1279_v57 }
  0xf3   : > { %v898_v41 = vand.u32 4294901760, %v897_v38  ;;  %v436_v42 = vand.u32 4294901760, %v435_v39  ;;  %v442_v43 = vand.u32 4294901760, %v441_v40  ;;  %29151 = vmatprep.mubr.msk.f32.mxu1 %vm31016_vm0, %v31015_v0  ;;  %v1281_v49 = vsel %vm347_vm3, %v1275_v48, 0 }
  0xf4   : > { %v31355_v51 = vand.u32 4294901760, %v1281_v49  ;;  %v1272_v52 = vpop.permute.xlu0 %1271  ;;  %v31389_v2 = vsub.f32 %v1279_v57, %v31376_v61 }
  0xf5   : > { %437 = vmatprep.subr.mxu0 %v436_v42  ;;  %v899_v44 = vsub.f32 %v897_v38, %v898_v41  ;;  %v1276_v55 = vsel %vm1273_vm4, %v1270_v46, %v1272_v52 }
  0xf6   : > { %443 = vmatpush1.msra.mxu0 %v442_v43  ;;  %v31366_v56 = vsub.f32 %v1281_v49, %v31355_v51  ;;  %v1283_v60 = vsel %vm347_vm3, %v1276_v55, 0  ;;  %v1371_v6 = vand.u32 4294901760, %v31389_v2 }
  0xf7   : > { %516 = vmatprep.subr.mxu0 %v433_v30  ;;  %v900_v45 = vand.u32 4294901760, %v899_v44  ;;  %v31381_v63 = vand.u32 4294901760, %v1283_v60 }
  0xf8   : > { %508 = vmatmul.mubr.f32.vlgmr.msra.gmra.mrb[0].mxu0 %v31311_v17  ;;  %v1365_v62 = vand.u32 4294901760, %v31366_v56  ;;  %v1372_v14 = vsub.f32 %v31389_v2, %v1371_v6  ;;  %v2209_v21 = vpop.permute.xlu0 %2208 }
  0xf9   : > { %519 = vmatpush1.msra.mxu0 %v439_v31  ;;  %29150 = vmatpush3.msra.mxu1 %v900_v45  ;;  %v31397_v4 = vsub.f32 %v1283_v60, %v31381_v63  ;;  %v6903_v31 = vld [vmem:[#allocation6] sm:$0x3] }
  0xfa   : > { %592 = vmatprep.subr.mxu0 %v31320_v26  ;;  %29152 = vmatmul.mubr.f32.vlgmr.msra.gmra.mrb[0].mxu1 %v31311_v17  ;;  %v1366_v3 = vsub.f32 %v31366_v56, %v1365_v62 }
  0xfb   : > { %29154 = vmatprep.subr.mxu1 %v31015_v0  ;;  %582 = vmatprep.mubr.f32.mxu0 %v31015_v0  ;;  %v1829_v8 = vand.u32 4294901760, %v31397_v4 }
  0xfc   : > { %29155 = vmatpush3.msra.mxu1 %v897_v38  ;;  %29156 = vmatprep.mubr.msk.f32.mxu1 %vm31016_vm0, %v31015_v0  ;;  %v1367_v7 = vand.u32 4294901760, %v1366_v3  ;;  %v2207_v24 = vpop.permute.xlu0 %2206 }
  0xfd   : > { %29159 = vmatprep.subr.mxu1 %v31015_v0  ;;  %v1830_v15 = vsub.f32 %v31397_v4, %v1829_v8  ;;  %6907 = vrot.lane.b32.xlu0 %v6903_v31, %s33462_s20  ;;  %s33464_s20 = smov 96  }
  0xff   : > { %v1831_v19 = vand.u32 4294901760, %v1830_v15 }
 0x100   : > { %585 = vmatmul.mubr.f32.vlgmr.msra.gmra.mrb[0].mxu0 %v422_v18  ;;  %v3145_v52 = vpop.permute.xlu0 %3144 }
 0x101   : > { %594 = vmatpush1.msra.mxu0 %v31322_v27  ;;  %657 = vmatprep.mubr.f32.mxu0 %v31015_v0 }
 0x102   : > { %670 = vmatprep.subr.mxu0 %v434_v36  ;;  %29157 = vmatmul.mubr.f32.vlgmr.msra.gmra.mrb[0].mxu1 %v422_v18  ;;  %v1373_v18 = vand.u32 4294901760, %v1372_v14 }
 0x103   : > { %29160 = vmatpush3.msra.mxu1 %v31331_v35  ;;  %29161 = vmatprep.mubr.msk.f32.mxu1 %vm31016_vm0, %v31015_v0 }
 0x104   : > { %29164 = vmatprep.subr.mxu1 %v31015_v0  ;;  %6917 = vrot.lane.b32.xlu0 %v31298_v12, %s33470_s2  ;;  %v3155_v53 = vpop.permute.xlu0 %3154 }
 0x108   : > { %661 = vmatmul.mubr.f32.vlgmr.msra.gmra.mrb[0].mxu0 %v31318_v25  ;;  %6919 = vrot.lane.b32.xlu0 %v31302_v13, %s33470_s2 }
 0x109   : > { %674 = vmatpush1.msra.mxu0 %v440_v37  ;;  %737 = vmatprep.mubr.f32.mxu0 %v31015_v0 }
 0x10a   : > { %746 = vmatprep.subr.mxu0 %v31320_v26  ;;  %29162 = vmatmul.mubr.f32.vlgmr.msra.gmra.mrb[0].mxu1 %v31318_v25 }
 0x10b   : > { %29165 = vmatpush3.msra.mxu1 %v898_v41  ;;  %29166 = vmatprep.mubr.msk.f32.mxu1 %vm31016_vm0, %v31015_v0 }
 0x10c   : > { %29169 = vmatprep.subr.mxu1 %v31015_v0  ;;  %7859 = vrot.lane.b32.xlu0 %v31292_v11, %s33465_s19 }
 0x110   : > { %739 = vmatmul.mubr.f32.vlgmr.msra.gmra.mrb[0].mxu0 %v31311_v17  ;;  %7857 = vrot.lane.b32.xlu0 %v31288_v9, %s33465_s19 }
 0x111   : > { %748 = vmatpush1.msra.mxu0 %v31322_v27  ;;  %811 = vmatprep.mubr.f32.mxu0 %v31015_v0  ;;  %v2215_v27 = vsel %vm2214_vm5, %v2207_v24, %v2209_v21  ;;  %v4097_v24 = vsel %vm347_vm3, %v31292_v11, 0 }
 0x112   : > { %29167 = vmatmul.mubr.f32.vlgmr.msra.gmra.mrb[0].mxu1 %v31311_v17  ;;  %1286 = vmatprep.subr.mxu0 %v31355_v51  ;;  %v2220_v30 = vsel %vm347_vm3, %v2215_v27, 0  ;;  %v4086_v27 = vld [vmem:[%s31248_s13 + $0xc] sm:$0xf] }
 0x113   : > { %29170 = vmatpush3.msra.mxu1 %v31331_v35  ;;  %29171 = vmatprep.mubr.msk.f32.mxu1 %vm31016_vm0, %v31015_v0  ;;  %v31456_v34 = vand.u32 4294901760, %v2220_v30 }
 0x114   : > { %29174 = vmatprep.subr.mxu1 %v31015_v0 }
 0x115   : > { %v31470_v38 = vsub.f32 %v2220_v30, %v31456_v34  ;;  %v4099_v30 = vsel %vm347_vm3, %v4086_v27, 0 }
 0x117   : > { %v2312_v42 = vand.u32 4294901760, %v31470_v38 }
 0x118   : > { %813 = vmatmul.mubr.f32.vlgmr.msra.gmra.mrb[0].mxu0 %v31311_v17 }
 0x119   : > { %1288 = vmatpush1.msra.mxu0 %v31376_v61  ;;  %1351 = vmatprep.mubr.f32.mxu0 %v31015_v0  ;;  %v2313_v46 = vsub.f32 %v31470_v38, %v2312_v42 }
 0x11a   : > { %29172 = vmatmul.mubr.f32.vlgmr.msra.gmra.mrb[0].mxu1 %v31311_v17  ;;  %1368 = vmatprep.subr.mxu0 %v1367_v7  ;;  %v2201_v17 = vpop.permute.xlu1 %2200 }
 0x11b   : > { %29175 = vmatpush3.msra.mxu1 %v31381_v63  ;;  %29176 = vmatprep.mubr.msk.f32.mxu1 %vm31016_vm0, %v31015_v0  ;;  %v2218_v32 = vsel %vm33467_vm1, %v2201_v17, 0  ;;  %v2314_v49 = vand.u32 4294901760, %v2313_v46 }
 0x11c   : > { %29179 = vmatprep.subr.mxu1 %v31015_v0  ;;  %v31460_v35 = vand.u32 4294901760, %v2218_v32 }
 0x11e   : > { %v2211_v20 = vpop.permute.xlu1 %2210  ;;  %v2294_v39 = vsub.f32 %v2218_v32, %v31460_v35 }
 0x11f   : > { %v2216_v22 = vsel %vm2214_vm5, %v2209_v21, %v2211_v20 }
 0x120   : > { %1357 = vmatmul.mubr.f32.vlgmr.msra.gmra.mrb[0].mxu0 %v1356_v16  ;;  %v2222_v23 = vsel %vm347_vm3, %v2216_v22, 0  ;;  %v2295_v43 = vand.u32 4294901760, %v2294_v39 }
 0x121   : > { %1374 = vmatpush1.msra.mxu0 %v1373_v18  ;;  %1437 = vmatprep.mubr.f32.mxu0 %v31015_v0  ;;  %v31440_v25 = vand.u32 4294901760, %v2222_v23 }
 0x122   : > { %1447 = vmatprep.subr.mxu0 %v31366_v56  ;;  %29177 = vmatmul.mubr.f32.vlgmr.msra.gmra.mrb[0].mxu1 %v1356_v16  ;;  %v2213_v26 = vpop.permute.xlu1 %2212  ;;  %v2296_v47 = vsub.f32 %v2294_v39, %v2295_v43 }
 0x123   : > { %29180 = vmatpush3.msra.mxu1 %v1831_v19  ;;  %29181 = vmatprep.mubr.msk.f32.mxu1 %vm31016_vm0, %v31015_v0  ;;  %v2217_v28 = vsel %vm2214_vm5, %v2211_v20, %v2213_v26  ;;  %v31447_v29 = vsub.f32 %v2222_v23, %v31440_v25 }
 0x124   : > { %29184 = vmatprep.subr.mxu1 %v31015_v0  ;;  %v2224_v33 = vsel %vm347_vm3, %v2217_v28, 0  ;;  %v2297_v50 = vand.u32 4294901760, %v2296_v47  ;;  %v4095_v28 = vsel %vm347_vm3, %v31288_v9, 0  ;;  %v31614_v9 = vand.u32 4294901760, %v4099_v30 }
 0x125   : > { %v2306_v36 = vand.u32 4294901760, %v31447_v29  ;;  %v31463_v37 = vand.u32 4294901760, %v2224_v33  ;;  %v31609_v31 = vand.u32 4294901760, %v4095_v28 }
 0x126   : > { %v3153_v54 = vpop.permute.xlu1 %3152 }
 0x127   : > { %v2307_v40 = vsub.f32 %v31447_v29, %v2306_v36  ;;  %v31479_v41 = vsub.f32 %v2224_v33, %v31463_v37  ;;  %v3160_v55 = vsel %vm3158_vm6, %v3153_v54, %v3155_v53 }
 0x128   : > { %1439 = vmatmul.mubr.f32.vlgmr.msra.gmra.mrb[0].mxu0 %v31371_v59  ;;  %v3166_v56 = vsel %vm347_vm3, %v3160_v55, 0 }
 0x129   : > { %1450 = vmatpush1.msra.mxu0 %v31389_v2  ;;  %1513 = vmatprep.mubr.f32.mxu0 %v31015_v0  ;;  %v2308_v44 = vand.u32 4294901760, %v2307_v40  ;;  %v2770_v45 = vand.u32 4294901760, %v31479_v41  ;;  %v31522_v58 = vand.u32 4294901760, %v3166_v56  ;;  %v7847_v2 = vld [vmem:[#allocation6] sm:$0x3] }
 0x12a   : > { %1523 = vmatprep.subr.mxu0 %v31355_v51  ;;  %29182 = vmatmul.mubr.f32.vlgmr.msra.gmra.mrb[0].mxu1 %v31371_v59  ;;  %v3151_v57 = vpop.permute.xlu1 %3150 }
 0x12b   : > { %29185 = vmatpush3.msra.mxu1 %v31397_v4  ;;  %29186 = vmatprep.mubr.msk.f32.mxu1 %vm31016_vm0, %v31015_v0  ;;  %v2771_v48 = vsub.f32 %v31479_v41, %v2770_v45  ;;  %v3159_v60 = vsel %vm3158_vm6, %v3151_v57, %v3153_v54 }
 0x12c   : > { %29189 = vmatprep.subr.mxu1 %v31015_v0  ;;  %7851 = vrot.lane.b32.xlu1 %v7847_v2, %s33464_s20  ;;  %s33469_s20 = smov 122  }
 0x12e   : > { %v4089_v26 = vpop.permute.xlu1 %4088 }
 0x12f   : > { %v4093_v11 = vsel %vm33467_vm1, %v4089_v26, 0 }
 0x130   : > { %1516 = vmatmul.mubr.f32.vlgmr.msra.gmra.mrb[0].mxu0 %v1353_v1  ;;  %7861 = vrot.lane.b32.xlu1 %v31298_v12, %s33465_s19  ;;  %v31611_v32 = vand.u32 4294901760, %v4093_v11 }
 0x131   : > { %1525 = vmatpush1.msra.mxu0 %v31376_v61  ;;  %1588 = vmatprep.mubr.f32.mxu0 %v31015_v0 }
 0x132   : > { %1601 = vmatprep.subr.mxu0 %v1365_v62  ;;  %29187 = vmatmul.mubr.f32.vlgmr.msra.gmra.mrb[0].mxu1 %v1353_v1  ;;  %v31529_v62 = vsub.f32 %v3166_v56, %v31522_v58  ;;  %v3162_v1 = vsel %vm33467_vm1, %v3145_v52, 0 }
 0x133   : > { %29190 = vmatpush3.msra.mxu1 %v31381_v63  ;;  %29191 = vmatprep.mubr.msk.f32.mxu1 %vm31016_vm0, %v31015_v0 }
 0x134   : > { %29194 = vmatprep.subr.mxu1 %v31015_v0  ;;  %7863 = vrot.lane.b32.xlu1 %v31302_v13, %s33465_s19  ;;  %s31034_s19 = smov 126  }
 0x138   : > { %1592 = vmatmul.mubr.f32.vlgmr.msra.gmra.mrb[0].mxu0 %v1354_v5 }
 0x139   : > { %1605 = vmatpush1.msra.mxu0 %v1371_v6  ;;  %1668 = vmatprep.mubr.f32.mxu0 %v31015_v0  ;;  %v3250_v6 = vand.u32 4294901760, %v31529_v62 }
 0x13a   : > { %1677 = vmatprep.subr.mxu0 %v31355_v51  ;;  %29192 = vmatmul.mubr.f32.vlgmr.msra.gmra.mrb[0].mxu1 %v1354_v5  ;;  %v2772_v51 = vand.u32 4294901760, %v2771_v48  ;;  %v31542_v5 = vand.u32 4294901760, %v3162_v1 }
 0x13b   : > { %29195 = vmatpush3.msra.mxu1 %v1829_v8  ;;  %29196 = vmatprep.mubr.msk.f32.mxu1 %vm31016_vm0, %v31015_v0  ;;  %v3251_v14 = vsub.f32 %v31529_v62, %v3250_v6 }
 0x13c   : > { %29199 = vmatprep.subr.mxu1 %v31015_v0  ;;  %v3238_v10 = vsub.f32 %v3162_v1, %v31542_v5 }
 0x13d   : > { %v3252_v18 = vand.u32 4294901760, %v3251_v14 }
 0x13e   : > { %v3239_v16 = vand.u32 4294901760, %v3238_v10 }
 0x140   : > { %1670 = vmatmul.mubr.f32.vlgmr.msra.gmra.mrb[0].mxu0 %v31371_v59  ;;  %v3240_v20 = vsub.f32 %v3238_v10, %v3239_v16 }
 0x141   : > { %1679 = vmatpush1.msra.mxu0 %v31376_v61  ;;  %1742 = vmatprep.mubr.f32.mxu0 %v31015_v0 }
 0x142   : > { %29197 = vmatmul.mubr.f32.vlgmr.msra.gmra.mrb[0].mxu1 %v31371_v59  ;;  %2227 = vmatprep.subr.mxu0 %v31440_v25  ;;  %v3241_v22 = vand.u32 4294901760, %v3240_v20 }
 0x143   : > { %29200 = vmatpush3.msra.mxu1 %v31381_v63  ;;  %29201 = vmatprep.mubr.msk.f32.mxu1 %vm31016_vm0, %v31015_v0  ;;  %v3164_v63 = vsel %vm347_vm3, %v3159_v60, 0 }
 0x144   : > { %29204 = vmatprep.subr.mxu1 %v31015_v0  ;;  %v31538_v4 = vand.u32 4294901760, %v3164_v63 }
 0x146   : > { %v3255_v8 = vsub.f32 %v3164_v63, %v31538_v4 }
 0x148   : > { %1744 = vmatmul.mubr.f32.vlgmr.msra.gmra.mrb[0].mxu0 %v31371_v59  ;;  %v3256_v12 = vand.u32 4294901760, %v3255_v8 }
 0x149   : > { %2229 = vmatpush1.msra.mxu0 %v31456_v34  ;;  %2292 = vmatprep.mubr.f32.mxu0 %v31015_v0 }
 0x14a   : > { %29202 = vmatmul.mubr.f32.vlgmr.msra.gmra.mrb[0].mxu1 %v31371_v59  ;;  %2309 = vmatprep.subr.mxu0 %v2308_v44  ;;  %v3157_v59 = vpop.permute.xlu0 %3156  ;;  %v3257_v17 = vsub.f32 %v3255_v8, %v3256_v12 }
 0x14b   : > { %29205 = vmatpush3.msra.mxu1 %v31463_v37  ;;  %29206 = vmatprep.mubr.msk.f32.mxu1 %vm31016_vm0, %v31015_v0  ;;  %v3161_v61 = vsel %vm3158_vm6, %v3155_v53, %v3157_v59 }
 0x14c   : > { %29209 = vmatprep.subr.mxu1 %v31015_v0  ;;  %v3168_v3 = vsel %vm347_vm3, %v3161_v61, 0  ;;  %v3258_v21 = vand.u32 4294901760, %v3257_v17 }
 0x14d   : > { %v31545_v7 = vand.u32 4294901760, %v3168_v3 }
 0x14e   : > { %v5020_v48 = vpop.permute.xlu0 %5019 }
 0x14f   : > { %v3713_v15 = vsub.f32 %v3168_v3, %v31545_v7  ;;  %v5037_v60 = vsel %vm33467_vm1, %v5020_v48, 0 }
 0x150   : > { %2298 = vmatmul.mubr.f32.vlgmr.msra.gmra.mrb[0].mxu0 %v2297_v50  ;;  %v31679_v63 = vand.u32 4294901760, %v5037_v60 }
 0x151   : > { %2315 = vmatpush1.msra.mxu0 %v2314_v49  ;;  %2378 = vmatprep.mubr.f32.mxu0 %v31015_v0  ;;  %v3714_v19 = vand.u32 4294901760, %v3713_v15 }
 0x152   : > { %2388 = vmatprep.subr.mxu0 %v31447_v29  ;;  %29207 = vmatmul.mubr.f32.vlgmr.msra.gmra.mrb[0].mxu1 %v2297_v50  ;;  %v5030_v49 = vpop.permute.xlu0 %5029  ;;  %v5028_v50 = vpop.permute.xlu1 %5027 }
 0x153   : > { %29210 = vmatpush3.msra.mxu1 %v2772_v51  ;;  %29211 = vmatprep.mubr.msk.f32.mxu1 %vm31016_vm0, %v31015_v0  ;;  %v3715_v13 = vsub.f32 %v3713_v15, %v3714_v19  ;;  %v5035_v51 = vsel %vm5033_vm7, %v5028_v50, %v5030_v49 }
 0x154   : > { %29214 = vmatprep.subr.mxu1 %v31015_v0  ;;  %v5041_v52 = vsel %vm347_vm3, %v5035_v51, 0 }
 0x155   : > { %v3716_v23 = vand.u32 4294901760, %v3715_v13  ;;  %v31662_v54 = vand.u32 4294901760, %v5041_v52 }
 0x156   : > { %v5026_v53 = vpop.permute.xlu1 %5025  ;;  %v5032_v55 = vpop.permute.xlu0 %5031 }
 0x157   : > { %v5034_v56 = vsel %vm5033_vm7, %v5026_v53, %v5028_v50  ;;  %v5036_v57 = vsel %vm5033_vm7, %v5030_v49, %v5032_v55 }
 0x158   : > { %2380 = vmatmul.mubr.f32.vlgmr.msra.gmra.mrb[0].mxu0 %v31460_v35  ;;  %v5039_v59 = vsel %vm347_vm3, %v5034_v56, 0  ;;  %v5043_v61 = vsel %vm347_vm3, %v5036_v57, 0 }
 0x159   : > { %2391 = vmatpush1.msra.mxu0 %v31470_v38  ;;  %2454 = vmatprep.mubr.f32.mxu0 %v31015_v0  ;;  %v31682_v2 = vand.u32 4294901760, %v5043_v61 }
 0x15a   : > { %2464 = vmatprep.subr.mxu0 %v31440_v25  ;;  %29212 = vmatmul.mubr.f32.vlgmr.msra.gmra.mrb[0].mxu1 %v31460_v35  ;;  %v5964_v20 = vpop.permute.xlu1 %5963 }
 0x15b   : > { %29215 = vmatpush3.msra.mxu1 %v31479_v41  ;;  %29216 = vmatprep.mubr.msk.f32.mxu1 %vm31016_vm0, %v31015_v0 }
 0x15c   : > { %29219 = vmatprep.subr.mxu1 %v31015_v0 }
 0x15e   : > { %v5974_v13 = vpop.permute.xlu1 %5973 }
 0x160   : > { %2457 = vmatmul.mubr.f32.vlgmr.msra.gmra.mrb[0].mxu0 %v2294_v39 }
 0x161   : > { %2466 = vmatpush1.msra.mxu0 %v31456_v34  ;;  %2529 = vmatprep.mubr.f32.mxu0 %v31015_v0 }
 0x162   : > { %2542 = vmatprep.subr.mxu0 %v2306_v36  ;;  %29217 = vmatmul.mubr.f32.vlgmr.msra.gmra.mrb[0].mxu1 %v2294_v39  ;;  %v5976_v26 = vpop.permute.xlu1 %5975 }
 0x163   : > { %29220 = vmatpush3.msra.mxu1 %v31463_v37  ;;  %29221 = vmatprep.mubr.msk.f32.mxu1 %vm31016_vm0, %v31015_v0 }
 0x164   : > { %29224 = vmatprep.subr.mxu1 %v31015_v0 }
 0x166   : > { %v6916_v51 = vpop.permute.xlu1 %6915 }
 0x168   : > { %2533 = vmatmul.mubr.f32.vlgmr.msra.gmra.mrb[0].mxu0 %v2295_v43 }
 0x169   : > { %2546 = vmatpush1.msra.mxu0 %v2312_v42  ;;  %2609 = vmatprep.mubr.f32.mxu0 %v31015_v0 }
 0x16a   : > { %2618 = vmatprep.subr.mxu0 %v31440_v25  ;;  %29222 = vmatmul.mubr.f32.vlgmr.msra.gmra.mrb[0].mxu1 %v2295_v43  ;;  %v31594_v25 = vand.u32 4294901760, %v4097_v24 }
 0x16b   : > { %29225 = vmatpush3.msra.mxu1 %v2770_v45  ;;  %29226 = vmatprep.mubr.msk.f32.mxu1 %vm31016_vm0, %v31015_v0 }
 0x16c   : > { %29229 = vmatprep.subr.mxu1 %v31015_v0  ;;  %v31602_v29 = vsub.f32 %v4097_v24, %v31594_v25 }
 0x16e   : > { %v4181_v33 = vand.u32 4294901760, %v31602_v29 }
 0x170   : > { %2611 = vmatmul.mubr.f32.vlgmr.msra.gmra.mrb[0].mxu0 %v31460_v35  ;;  %v4182_v36 = vsub.f32 %v31602_v29, %v4181_v33 }
 0x171   : > { %2620 = vmatpush1.msra.mxu0 %v31456_v34  ;;  %2683 = vmatprep.mubr.f32.mxu0 %v31015_v0  ;;  %v4186_v34 = vsub.f32 %v4095_v28, %v31609_v31  ;;  %v5980_v28 = vsel %vm5977_vm8, %v5974_v13, %v5976_v26 }
 0x172   : > { %29227 = vmatmul.mubr.f32.vlgmr.msra.gmra.mrb[0].mxu1 %v31460_v35  ;;  %3171 = vmatprep.subr.mxu0 %v31522_v58  ;;  %v4183_v40 = vand.u32 4294901760, %v4182_v36 }
 0x173   : > { %29230 = vmatpush3.msra.mxu1 %v31463_v37  ;;  %29231 = vmatprep.mubr.msk.f32.mxu1 %vm31016_vm0, %v31015_v0  ;;  %v31628_v37 = vsub.f32 %v4099_v30, %v31614_v9  ;;  %v4187_v38 = vand.u32 4294901760, %v4186_v34  ;;  %v5981_v30 = vsel %vm33467_vm1, %v5964_v20, 0 }
 0x174   : > { %29234 = vmatprep.subr.mxu1 %v31015_v0 }
 0x175   : > { %v4645_v41 = vand.u32 4294901760, %v31628_v37  ;;  %v4188_v42 = vsub.f32 %v4186_v34, %v4187_v38 }
 0x177   : > { %v4646_v44 = vsub.f32 %v31628_v37, %v4645_v41  ;;  %v4189_v45 = vand.u32 4294901760, %v4188_v42 }
 0x178   : > { %2685 = vmatmul.mubr.f32.vlgmr.msra.gmra.mrb[0].mxu0 %v31460_v35 }
 0x179   : > { %3173 = vmatpush1.msra.mxu0 %v31538_v4  ;;  %3236 = vmatprep.mubr.f32.mxu0 %v31015_v0  ;;  %v4647_v47 = vand.u32 4294901760, %v4646_v44 }
 0x17a   : > { %29232 = vmatmul.mubr.f32.vlgmr.msra.gmra.mrb[0].mxu1 %v31460_v35  ;;  %3253 = vmatprep.subr.mxu0 %v3252_v18  ;;  %v4169_v35 = vsub.f32 %v4093_v11, %v31611_v32 }
 0x17b   : > { %29235 = vmatpush3.msra.mxu1 %v31545_v7  ;;  %29236 = vmatprep.mubr.msk.f32.mxu1 %vm31016_vm0, %v31015_v0 }
 0x17c   : > { %29239 = vmatprep.subr.mxu1 %v31015_v0  ;;  %v4170_v39 = vand.u32 4294901760, %v4169_v35 }
 0x17e   : > { %v4171_v43 = vsub.f32 %v4169_v35, %v4170_v39 }
 0x180   : > { %3242 = vmatmul.mubr.f32.vlgmr.msra.gmra.mrb[0].mxu0 %v3241_v22  ;;  %v4172_v46 = vand.u32 4294901760, %v4171_v43 }
 0x181   : > { %3259 = vmatpush1.msra.mxu0 %v3258_v21  ;;  %3322 = vmatprep.mubr.f32.mxu0 %v31015_v0  ;;  %v5972_v21 = vpop.permute.xlu0 %5971 }
 0x182   : > { %3332 = vmatprep.subr.mxu0 %v31529_v62  ;;  %29237 = vmatmul.mubr.f32.vlgmr.msra.gmra.mrb[0].mxu1 %v3241_v22  ;;  %v31677_v62 = vand.u32 4294901760, %v5039_v59  ;;  %v5979_v22 = vsel %vm5977_vm8, %v5972_v21, %v5974_v13 }
 0x183   : > { %29240 = vmatpush3.msra.mxu1 %v3716_v23  ;;  %29241 = vmatprep.mubr.msk.f32.mxu1 %vm31016_vm0, %v31015_v0  ;;  %v5985_v23 = vsel %vm347_vm3, %v5979_v22, 0 }
 0x184   : > { %29244 = vmatprep.subr.mxu1 %v31015_v0  ;;  %v31686_v3 = vsub.f32 %v5039_v59, %v31677_v62 }
 0x185   : > { %v5970_v24 = vpop.permute.xlu0 %5969 }
 0x186   : > { %v5978_v27 = vsel %vm5977_vm8, %v5970_v24, %v5972_v21 }
 0x187   : > { %v5983_v11 = vsel %vm347_vm3, %v5978_v27, 0 }
 0x188   : > { %3324 = vmatmul.mubr.f32.vlgmr.msra.gmra.mrb[0].mxu0 %v31542_v5 }
 0x189   : > { %3335 = vmatpush1.msra.mxu0 %v3255_v8  ;;  %3398 = vmatprep.mubr.f32.mxu0 %v31015_v0  ;;  %v6908_v49 = vpop.permute.xlu0 %6907 }
 0x18a   : > { %3408 = vmatprep.subr.mxu0 %v31522_v58  ;;  %29242 = vmatmul.mubr.f32.vlgmr.msra.gmra.mrb[0].mxu1 %v31542_v5 }
 0x18b   : > { %29245 = vmatpush3.msra.mxu1 %v3713_v15  ;;  %29246 = vmatprep.mubr.msk.f32.mxu1 %vm31016_vm0, %v31015_v0 }
 0x18c   : > { %29249 = vmatprep.subr.mxu1 %v31015_v0 }
 0x18d   : > { %v6918_v50 = vpop.permute.xlu0 %6917 }
 0x190   : > { %3401 = vmatmul.mubr.f32.vlgmr.msra.gmra.mrb[0].mxu0 %v3238_v10 }
 0x191   : > { %3410 = vmatpush1.msra.mxu0 %v31538_v4  ;;  %3473 = vmatprep.mubr.f32.mxu0 %v31015_v0  ;;  %v6920_v56 = vpop.permute.xlu0 %6919 }
 0x192   : > { %3486 = vmatprep.subr.mxu0 %v3250_v6  ;;  %29247 = vmatmul.mubr.f32.vlgmr.msra.gmra.mrb[0].mxu1 %v3238_v10  ;;  %v31695_v6 = vsub.f32 %v5043_v61, %v31682_v2  ;;  %v6925_v61 = vsel %vm33467_vm1, %v6908_v49, 0 }
 0x193   : > { %29250 = vmatpush3.msra.mxu1 %v31545_v7  ;;  %29251 = vmatprep.mubr.msk.f32.mxu1 %vm31016_vm0, %v31015_v0 }
 0x194   : > { %29254 = vmatprep.subr.mxu1 %v31015_v0  ;;  %v5589_v14 = vand.u32 4294901760, %v31695_v6 }
 0x195   : > { %v7860_v22 = vpop.permute.xlu0 %7859 }
 0x198   : > { %3477 = vmatmul.mubr.f32.vlgmr.msra.gmra.mrb[0].mxu0 %v3239_v16 }
 0x199   : > { %3490 = vmatpush1.msra.mxu0 %v3256_v12  ;;  %3553 = vmatprep.mubr.f32.mxu0 %v31015_v0 }
 0x19a   : > { %3562 = vmatprep.subr.mxu0 %v31522_v58  ;;  %29252 = vmatmul.mubr.f32.vlgmr.msra.gmra.mrb[0].mxu1 %v3239_v16  ;;  %v31668_v58 = vsub.f32 %v5041_v52, %v31662_v54  ;;  %v5590_v16 = vsub.f32 %v31695_v6, %v5589_v14  ;;  %v6923_v52 = vsel %vm6921_vm9, %v6916_v51, %v6918_v50 }
 0x19b   : > { %29255 = vmatpush3.msra.mxu1 %v3714_v19  ;;  %29256 = vmatprep.mubr.msk.f32.mxu1 %vm31016_vm0, %v31015_v0  ;;  %v6929_v53 = vsel %vm347_vm3, %v6923_v52, 0 }
 0x19c   : > { %29259 = vmatprep.subr.mxu1 %v31015_v0  ;;  %v5125_v1 = vand.u32 4294901760, %v31668_v58  ;;  %v5591_v17 = vand.u32 4294901760, %v5590_v16  ;;  %v31808_v55 = vand.u32 4294901760, %v6929_v53 }
 0x19e   : > { %v31815_v59 = vsub.f32 %v6929_v53, %v31808_v55 }
 0x1a0   : > { %3555 = vmatmul.mubr.f32.vlgmr.msra.gmra.mrb[0].mxu0 %v31542_v5 }
 0x1a1   : > { %3564 = vmatpush1.msra.mxu0 %v31538_v4  ;;  %3627 = vmatprep.mubr.f32.mxu0 %v31015_v0  ;;  %v5113_v4 = vsub.f32 %v5037_v60, %v31679_v63 }
 0x1a2   : > { %29257 = vmatmul.mubr.f32.vlgmr.msra.gmra.mrb[0].mxu1 %v31542_v5  ;;  %4102 = vmatprep.subr.mxu0 %v31594_v25 }
 0x1a3   : > { %29260 = vmatpush3.msra.mxu1 %v31545_v7  ;;  %29261 = vmatprep.mubr.msk.f32.mxu1 %vm31016_vm0, %v31015_v0  ;;  %v5131_v7 = vand.u32 4294901760, %v31686_v3  ;;  %v5114_v8 = vand.u32 4294901760, %v5113_v4 }
 0x1a4   : > { %29264 = vmatprep.subr.mxu1 %v31015_v0 }
 0x1a5   : > { %v5132_v15 = vsub.f32 %v31686_v3, %v5131_v7  ;;  %v5115_v12 = vsub.f32 %v5113_v4, %v5114_v8 }
 0x1a7   : > { %v5133_v18 = vand.u32 4294901760, %v5132_v15  ;;  %v5116_v19 = vand.u32 4294901760, %v5115_v12 }
 0x1a8   : > { %3629 = vmatmul.mubr.f32.vlgmr.msra.gmra.mrb[0].mxu0 %v31542_v5 }
 0x1a9   : > { %4104 = vmatpush1.msra.mxu0 %v31609_v31  ;;  %4167 = vmatprep.mubr.f32.mxu0 %v31015_v0 }
 0x1aa   : > { %29262 = vmatmul.mubr.f32.vlgmr.msra.gmra.mrb[0].mxu1 %v31542_v5  ;;  %4184 = vmatprep.subr.mxu0 %v4183_v40  ;;  %v5126_v5 = vsub.f32 %v31668_v58, %v5125_v1 }
 0x1ab   : > { %29265 = vmatpush3.msra.mxu1 %v31614_v9  ;;  %29266 = vmatprep.mubr.msk.f32.mxu1 %vm31016_vm0, %v31015_v0 }
 0x1ac   : > { %29269 = vmatprep.subr.mxu1 %v31015_v0  ;;  %v5127_v10 = vand.u32 4294901760, %v5126_v5 }
 0x1b0   : > { %4173 = vmatmul.mubr.f32.vlgmr.msra.gmra.mrb[0].mxu0 %v4172_v46 }
 0x1b1   : > { %4190 = vmatpush1.msra.mxu0 %v4189_v45  ;;  %4253 = vmatprep.mubr.f32.mxu0 %v31015_v0 }
 0x1b2   : > { %29267 = vmatmul.mubr.f32.vlgmr.msra.gmra.mrb[0].mxu1 %v4172_v46  ;;  %4263 = vmatprep.subr.mxu0 %v31602_v29 }
 0x1b3   : > { %29270 = vmatpush3.msra.mxu1 %v4647_v47  ;;  %29271 = vmatprep.mubr.msk.f32.mxu1 %vm31016_vm0, %v31015_v0 }
 0x1b4   : > { %29274 = vmatprep.subr.mxu1 %v31015_v0 }
 0x1b8   : > { %4255 = vmatmul.mubr.f32.vlgmr.msra.gmra.mrb[0].mxu0 %v31611_v32 }
 0x1b9   : > { %4266 = vmatpush1.msra.mxu0 %v4186_v34  ;;  %4329 = vmatprep.mubr.f32.mxu0 %v31015_v0 }
 0x1ba   : > { %29272 = vmatmul.mubr.f32.vlgmr.msra.gmra.mrb[0].mxu1 %v31611_v32  ;;  %4339 = vmatprep.subr.mxu0 %v31594_v25 }
 0x1bb   : > { %29275 = vmatpush3.msra.mxu1 %v31628_v37  ;;  %29276 = vmatprep.mubr.msk.f32.mxu1 %vm31016_vm0, %v31015_v0 }
 0x1bc   : > { %29279 = vmatprep.subr.mxu1 %v31015_v0 }
 0x1c0   : > { %4332 = vmatmul.mubr.f32.vlgmr.msra.gmra.mrb[0].mxu0 %v4169_v35 }
 0x1c1   : > { %4341 = vmatpush1.msra.mxu0 %v31609_v31  ;;  %4404 = vmatprep.mubr.f32.mxu0 %v31015_v0 }
 0x1c2   : > { %29277 = vmatmul.mubr.f32.vlgmr.msra.gmra.mrb[0].mxu1 %v4169_v35  ;;  %4417 = vmatprep.subr.mxu0 %v4181_v33  ;;  %v31752_v33 = vand.u32 4294901760, %v5981_v30 }
 0x1c3   : > { %29280 = vmatpush3.msra.mxu1 %v31614_v9  ;;  %29281 = vmatprep.mubr.msk.f32.mxu1 %vm31016_vm0, %v31015_v0 }
 0x1c4   : > { %29284 = vmatprep.subr.mxu1 %v31015_v0  ;;  %v6057_v36 = vsub.f32 %v5981_v30, %v31752_v33 }
 0x1c6   : > { %v6058_v40 = vand.u32 4294901760, %v6057_v36 }
 0x1c8   : > { %4408 = vmatmul.mubr.f32.vlgmr.msra.gmra.mrb[0].mxu0 %v4170_v39  ;;  %v6059_v44 = vsub.f32 %v6057_v36, %v6058_v40 }
 0x1c9   : > { %4421 = vmatpush1.msra.mxu0 %v4187_v38  ;;  %4484 = vmatprep.mubr.f32.mxu0 %v31015_v0 }
 0x1ca   : > { %29282 = vmatmul.mubr.f32.vlgmr.msra.gmra.mrb[0].mxu1 %v4170_v39  ;;  %4493 = vmatprep.subr.mxu0 %v31594_v25  ;;  %v31735_v25 = vand.u32 4294901760, %v5985_v23  ;;  %v6060_v47 = vand.u32 4294901760, %v6059_v44 }
 0x1cb   : > { %29285 = vmatpush3.msra.mxu1 %v4645_v41  ;;  %29286 = vmatprep.mubr.msk.f32.mxu1 %vm31016_vm0, %v31015_v0 }
 0x1cc   : > { %29289 = vmatprep.subr.mxu1 %v31015_v0  ;;  %v31742_v29 = vsub.f32 %v5985_v23, %v31735_v25 }
 0x1d0   : > { %4486 = vmatmul.mubr.f32.vlgmr.msra.gmra.mrb[0].mxu0 %v31611_v32 }
 0x1d1   : > { %4495 = vmatpush1.msra.mxu0 %v31609_v31  ;;  %4558 = vmatprep.mubr.f32.mxu0 %v31015_v0  ;;  %v5987_v31 = vsel %vm347_vm3, %v5980_v28, 0 }
 0x1d2   : > { %29287 = vmatmul.mubr.f32.vlgmr.msra.gmra.mrb[0].mxu1 %v31611_v32  ;;  %5046 = vmatprep.subr.mxu0 %v31662_v54  ;;  %v31755_v34 = vand.u32 4294901760, %v5987_v31 }
 0x1d3   : > { %29290 = vmatpush3.msra.mxu1 %v31614_v9  ;;  %29291 = vmatprep.mubr.msk.f32.mxu1 %vm31016_vm0, %v31015_v0  ;;  %v6069_v9 = vand.u32 4294901760, %v31742_v29 }
 0x1d4   : > { %29294 = vmatprep.subr.mxu1 %v31015_v0  ;;  %v31769_v38 = vsub.f32 %v5987_v31, %v31755_v34 }
 0x1d5   : > { %v6070_v37 = vsub.f32 %v31742_v29, %v6069_v9 }
 0x1d6   : > { %v6533_v42 = vand.u32 4294901760, %v31769_v38 }
 0x1d7   : > { %v6071_v41 = vand.u32 4294901760, %v6070_v37 }
 0x1d8   : > { %4560 = vmatmul.mubr.f32.vlgmr.msra.gmra.mrb[0].mxu0 %v31611_v32  ;;  %v6534_v45 = vsub.f32 %v31769_v38, %v6533_v42 }
 0x1d9   : > { %5048 = vmatpush1.msra.mxu0 %v31677_v62  ;;  %5111 = vmatprep.mubr.f32.mxu0 %v31015_v0 }
 0x1da   : > { %29292 = vmatmul.mubr.f32.vlgmr.msra.gmra.mrb[0].mxu1 %v31611_v32  ;;  %5128 = vmatprep.subr.mxu0 %v5127_v10  ;;  %v31750_v32 = vand.u32 4294901760, %v5983_v11  ;;  %v6535_v48 = vand.u32 4294901760, %v6534_v45 }
 0x1db   : > { %29295 = vmatpush3.msra.mxu1 %v31682_v2  ;;  %29296 = vmatprep.mubr.msk.f32.mxu1 %vm31016_vm0, %v31015_v0 }
 0x1dc   : > { %29299 = vmatprep.subr.mxu1 %v31015_v0  ;;  %v31760_v35 = vsub.f32 %v5983_v11, %v31750_v32 }
 0x1de   : > { %v6075_v39 = vand.u32 4294901760, %v31760_v35 }
 0x1e0   : > { %5117 = vmatmul.mubr.f32.vlgmr.msra.gmra.mrb[0].mxu0 %v5116_v19  ;;  %v6076_v43 = vsub.f32 %v31760_v35, %v6075_v39 }
 0x1e1   : > { %5134 = vmatpush1.msra.mxu0 %v5133_v18  ;;  %5197 = vmatprep.mubr.f32.mxu0 %v31015_v0 }
 0x1e2   : > { %5207 = vmatprep.subr.mxu0 %v31668_v58  ;;  %29297 = vmatmul.mubr.f32.vlgmr.msra.gmra.mrb[0].mxu1 %v5116_v19  ;;  %v6077_v46 = vand.u32 4294901760, %v6076_v43  ;;  %v6924_v58 = vsel %vm6921_vm9, %v6918_v50, %v6920_v56  ;;  %v8792_v50 = vlaneseq }
 0x1e3   : > { %29300 = vmatpush3.msra.mxu1 %v5591_v17  ;;  %29301 = vmatprep.mubr.msk.f32.mxu1 %vm31016_vm0, %v31015_v0 }
 0x1e4   : > { %29304 = vmatprep.subr.mxu1 %v31015_v0  ;;  %v8793_v52 = vshrl.u32 %v8792_v50, 7 }
 0x1e6   : > { %v8794_v53 = vsub.s32 0, %v8793_v52  ;;  %v8798_v56 = vsub.s32 1, %v8793_v52 }
 0x1e8   : > { %5199 = vmatmul.mubr.f32.vlgmr.msra.gmra.mrb[0].mxu0 %v31679_v63 }
 0x1e9   : > { %5210 = vmatpush1.msra.mxu0 %v31686_v3  ;;  %5273 = vmatprep.mubr.f32.mxu0 %v31015_v0 }
 0x1ea   : > { %5283 = vmatprep.subr.mxu0 %v31662_v54  ;;  %29302 = vmatmul.mubr.f32.vlgmr.msra.gmra.mrb[0].mxu1 %v31679_v63 }
 0x1eb   : > { %29305 = vmatpush3.msra.mxu1 %v31695_v6  ;;  %29306 = vmatprep.mubr.msk.f32.mxu1 %vm31016_vm0, %v31015_v0 }
 0x1ec   : > { %29309 = vmatprep.subr.mxu1 %v31015_v0 }
 0x1f0   : > { %5276 = vmatmul.mubr.f32.vlgmr.msra.gmra.mrb[0].mxu0 %v5113_v4 }
 0x1f1   : > { %5285 = vmatpush1.msra.mxu0 %v31677_v62  ;;  %5348 = vmatprep.mubr.f32.mxu0 %v31015_v0 }
 0x1f2   : > { %5361 = vmatprep.subr.mxu0 %v5125_v1  ;;  %29307 = vmatmul.mubr.f32.vlgmr.msra.gmra.mrb[0].mxu1 %v5113_v4  ;;  %v31825_v1 = vand.u32 4294901760, %v6925_v61 }
 0x1f3   : > { %29310 = vmatpush3.msra.mxu1 %v31682_v2  ;;  %29311 = vmatprep.mubr.msk.f32.mxu1 %vm31016_vm0, %v31015_v0 }
 0x1f4   : > { %29314 = vmatprep.subr.mxu1 %v31015_v0  ;;  %v7001_v5 = vsub.f32 %v6925_v61, %v31825_v1 }
 0x1f6   : > { %v7002_v10 = vand.u32 4294901760, %v7001_v5 }
 0x1f8   : > { %5352 = vmatmul.mubr.f32.vlgmr.msra.gmra.mrb[0].mxu0 %v5114_v8  ;;  %v7003_v16 = vsub.f32 %v7001_v5, %v7002_v10 }
 0x1f9   : > { %5365 = vmatpush1.msra.mxu0 %v5131_v7  ;;  %5428 = vmatprep.mubr.f32.mxu0 %v31015_v0 }
 0x1fa   : > { %5437 = vmatprep.subr.mxu0 %v31662_v54  ;;  %29312 = vmatmul.mubr.f32.vlgmr.msra.gmra.mrb[0].mxu1 %v5114_v8  ;;  %v6914_v54 = vpop.permute.xlu1 %6913  ;;  %v7004_v17 = vand.u32 4294901760, %v7003_v16 }
 0x1fb   : > { %29315 = vmatpush3.msra.mxu1 %v5589_v14  ;;  %29316 = vmatprep.mubr.msk.f32.mxu1 %vm31016_vm0, %v31015_v0  ;;  %v6922_v57 = vsel %vm6921_vm9, %v6914_v54, %v6916_v51  ;;  %v320_v51 = vld [vmem:[%s33450_s0] sm:$0x7]  ;;  %v31033_v54 = vmov 0  }
 0x1fc   : > { %29319 = vmatprep.subr.mxu1 %v31015_v0  ;;  %v6927_v60 = vsel %vm347_vm3, %v6922_v57, 0  ;;  %vm321_vm11 = vcmp.ne.f32.partialorder %v320_v51, 0.0  ;;  %v8802_v57 = vsub.s32 2, %v8793_v52  ;;  %v13542_v52 = vld [vmem:[#allocation2 + $0x20] sm:$0x3] }
 0x1fe   : > { %v7852_v13 = vpop.permute.xlu1 %7851 }
 0x1ff   : > { %v7869_v31 = vsel %vm33467_vm1, %v7852_v13, 0  ;;  %v31979_v13 = vld [vmem:[#allocation8] sm:$0xf] }
 0x200   : > { %5430 = vmatmul.mubr.f32.vlgmr.msra.gmra.mrb[0].mxu0 %v31679_v63 }
 0x201   : > { %5439 = vmatpush1.msra.mxu0 %v31677_v62  ;;  %5502 = vmatprep.mubr.f32.mxu0 %v31015_v0  ;;  %v6931_v62 = vsel %vm347_vm3, %v6924_v58, 0 }
 0x202   : > { %29317 = vmatmul.mubr.f32.vlgmr.msra.gmra.mrb[0].mxu1 %v31679_v63  ;;  %5990 = vmatprep.subr.mxu0 %v31735_v25  ;;  %v31828_v3 = vand.u32 4294901760, %v6931_v62  ;;  %v7862_v21 = vpop.permute.xlu1 %7861 }
 0x203   : > { %29320 = vmatpush3.msra.mxu1 %v31682_v2  ;;  %29321 = vmatprep.mubr.msk.f32.mxu1 %vm31016_vm0, %v31015_v0  ;;  %v7013_v2 = vand.u32 4294901760, %v31815_v59  ;;  %v7867_v23 = vsel %vm7865_vm10, %v7860_v22, %v7862_v21 }
 0x204   : > { %29324 = vmatprep.subr.mxu1 %v31015_v0  ;;  %v31842_v7 = vsub.f32 %v6931_v62, %v31828_v3  ;;  %v7873_v24 = vsel %vm347_vm3, %v7867_v23, 0 }
 0x205   : > { %v7014_v6 = vsub.f32 %v31815_v59, %v7013_v2  ;;  %v31881_v26 = vand.u32 4294901760, %v7873_v24 }
 0x206   : > { %v7477_v15 = vand.u32 4294901760, %v31842_v7  ;;  %v7864_v27 = vpop.permute.xlu1 %7863 }
 0x207   : > { %v7015_v14 = vand.u32 4294901760, %v7014_v6  ;;  %v7956_v11 = vsub.f32 %v7873_v24, %v31881_v26 }
 0x208   : > { %5504 = vmatmul.mubr.f32.vlgmr.msra.gmra.mrb[0].mxu0 %v31679_v63  ;;  %v7478_v18 = vsub.f32 %v31842_v7, %v7477_v15 }
 0x209   : > { %5992 = vmatpush1.msra.mxu0 %v31750_v32  ;;  %6055 = vmatprep.mubr.f32.mxu0 %v31015_v0 }
 0x20a   : > { %29322 = vmatmul.mubr.f32.vlgmr.msra.gmra.mrb[0].mxu1 %v31679_v63  ;;  %6072 = vmatprep.subr.mxu0 %v6071_v41  ;;  %v31823_v63 = vand.u32 4294901760, %v6927_v60  ;;  %v7479_v20 = vand.u32 4294901760, %v7478_v18 }
 0x20b   : > { %29325 = vmatpush3.msra.mxu1 %v31755_v34  ;;  %29326 = vmatprep.mubr.msk.f32.mxu1 %vm31016_vm0, %v31015_v0 }
 0x20c   : > { %29329 = vmatprep.subr.mxu1 %v31015_v0  ;;  %v31833_v4 = vsub.f32 %v6927_v60, %v31823_v63 }
 0x20e   : > { %v7019_v8 = vand.u32 4294901760, %v31833_v4 }
 0x210   : > { %6061 = vmatmul.mubr.f32.vlgmr.msra.gmra.mrb[0].mxu0 %v6060_v47  ;;  %v7020_v12 = vsub.f32 %v31833_v4, %v7019_v8 }
 0x211   : > { %6078 = vmatpush1.msra.mxu0 %v6077_v46  ;;  %6141 = vmatprep.mubr.f32.mxu0 %v31015_v0 }
 0x212   : > { %6151 = vmatprep.subr.mxu0 %v31742_v29  ;;  %29327 = vmatmul.mubr.f32.vlgmr.msra.gmra.mrb[0].mxu1 %v6060_v47  ;;  %v7021_v19 = vand.u32 4294901760, %v7020_v12  ;;  %v7868_v29 = vsel %vm7865_vm10, %v7862_v21, %v7864_v27 }
 0x213   : > { %29330 = vmatpush3.msra.mxu1 %v6535_v48  ;;  %29331 = vmatprep.mubr.msk.f32.mxu1 %vm31016_vm0, %v31015_v0 }
 0x214   : > { %29334 = vmatprep.subr.mxu1 %v31015_v0 }
 0x218   : > { %6143 = vmatmul.mubr.f32.vlgmr.msra.gmra.mrb[0].mxu0 %v31752_v33 }
 0x219   : > { %6154 = vmatpush1.msra.mxu0 %v31760_v35  ;;  %6217 = vmatprep.mubr.f32.mxu0 %v31015_v0 }
 0x21a   : > { %6227 = vmatprep.subr.mxu0 %v31735_v25  ;;  %29332 = vmatmul.mubr.f32.vlgmr.msra.gmra.mrb[0].mxu1 %v31752_v33 }
 0x21b   : > { %29335 = vmatpush3.msra.mxu1 %v31769_v38  ;;  %29336 = vmatprep.mubr.msk.f32.mxu1 %vm31016_vm0, %v31015_v0 }
 0x21c   : > { %29339 = vmatprep.subr.mxu1 %v31015_v0 }
 0x220   : > { %6220 = vmatmul.mubr.f32.vlgmr.msra.gmra.mrb[0].mxu0 %v6057_v36 }
 0x221   : > { %6229 = vmatpush1.msra.mxu0 %v31750_v32  ;;  %6292 = vmatprep.mubr.f32.mxu0 %v31015_v0 }
 0x222   : > { %6305 = vmatprep.subr.mxu0 %v6069_v9  ;;  %29337 = vmatmul.mubr.f32.vlgmr.msra.gmra.mrb[0].mxu1 %v6057_v36  ;;  %v31896_v9 = vand.u32 4294901760, %v7869_v31 }
 0x223   : > { %29340 = vmatpush3.msra.mxu1 %v31755_v34  ;;  %29341 = vmatprep.mubr.msk.f32.mxu1 %vm31016_vm0, %v31015_v0 }
 0x224   : > { %29344 = vmatprep.subr.mxu1 %v31015_v0  ;;  %v7945_v37 = vsub.f32 %v7869_v31, %v31896_v9 }
 0x226   : > { %v7946_v41 = vand.u32 4294901760, %v7945_v37 }
 0x228   : > { %6296 = vmatmul.mubr.f32.vlgmr.msra.gmra.mrb[0].mxu0 %v6058_v40  ;;  %v7947_v45 = vsub.f32 %v7945_v37, %v7946_v41 }
 0x229   : > { %6309 = vmatpush1.msra.mxu0 %v6075_v39  ;;  %6372 = vmatprep.mubr.f32.mxu0 %v31015_v0 }
 0x22a   : > { %6381 = vmatprep.subr.mxu0 %v31735_v25  ;;  %29342 = vmatmul.mubr.f32.vlgmr.msra.gmra.mrb[0].mxu1 %v6058_v40  ;;  %v7858_v25 = vpop.permute.xlu0 %7857  ;;  %v7948_v48 = vand.u32 4294901760, %v7947_v45 }
 0x22b   : > { %29345 = vmatpush3.msra.mxu1 %v6533_v42  ;;  %29346 = vmatprep.mubr.msk.f32.mxu1 %vm31016_vm0, %v31015_v0  ;;  %v7866_v28 = vsel %vm7865_vm10, %v7858_v25, %v7860_v22 }
 0x22c   : > { %29349 = vmatprep.subr.mxu1 %v31015_v0  ;;  %v7871_v30 = vsel %vm347_vm3, %v7866_v28, 0 }
 0x230   : > { %6374 = vmatmul.mubr.f32.vlgmr.msra.gmra.mrb[0].mxu0 %v31752_v33 }
 0x231   : > { %6383 = vmatpush1.msra.mxu0 %v31750_v32  ;;  %6446 = vmatprep.mubr.f32.mxu0 %v31015_v0  ;;  %v7875_v32 = vsel %vm347_vm3, %v7868_v29, 0 }
 0x232   : > { %29347 = vmatmul.mubr.f32.vlgmr.msra.gmra.mrb[0].mxu1 %v31752_v33  ;;  %6934 = vmatprep.subr.mxu0 %v31808_v55  ;;  %v31898_v35 = vand.u32 4294901760, %v7875_v32 }
 0x233   : > { %29350 = vmatpush3.msra.mxu1 %v31755_v34  ;;  %29351 = vmatprep.mubr.msk.f32.mxu1 %vm31016_vm0, %v31015_v0  ;;  %v7957_v34 = vand.u32 4294901760, %v7956_v11 }
 0x234   : > { %29354 = vmatprep.subr.mxu1 %v31015_v0  ;;  %v8420_v39 = vsub.f32 %v7875_v32, %v31898_v35 }
 0x235   : > { %v7958_v38 = vsub.f32 %v7956_v11, %v7957_v34 }
 0x236   : > { %v8421_v43 = vand.u32 4294901760, %v8420_v39 }
 0x237   : > { %v7959_v42 = vand.u32 4294901760, %v7958_v38 }
 0x238   : > { %6448 = vmatmul.mubr.f32.vlgmr.msra.gmra.mrb[0].mxu0 %v31752_v33  ;;  %v8422_v46 = vsub.f32 %v8420_v39, %v8421_v43 }
 0x239   : > { %6936 = vmatpush1.msra.mxu0 %v31823_v63  ;;  %6999 = vmatprep.mubr.f32.mxu0 %v31015_v0 }
 0x23a   : > { %29352 = vmatmul.mubr.f32.vlgmr.msra.gmra.mrb[0].mxu1 %v31752_v33  ;;  %7016 = vmatprep.subr.mxu0 %v7015_v14  ;;  %v31894_v33 = vand.u32 4294901760, %v7871_v30  ;;  %v8423_v49 = vand.u32 4294901760, %v8422_v46 }
 0x23b   : > { %29355 = vmatpush3.msra.mxu1 %v31828_v3  ;;  %29356 = vmatprep.mubr.msk.f32.mxu1 %vm31016_vm0, %v31015_v0 }
 0x23c   : > { %29359 = vmatprep.subr.mxu1 %v31015_v0  ;;  %v7962_v36 = vsub.f32 %v7871_v30, %v31894_v33 }
 0x23e   : > { %v7963_v40 = vand.u32 4294901760, %v7962_v36 }
 0x240   : > { %7005 = vmatmul.mubr.f32.vlgmr.msra.gmra.mrb[0].mxu0 %v7004_v17  ;;  %v7964_v44 = vsub.f32 %v7962_v36, %v7963_v40 }
 0x241   : > { %7022 = vmatpush1.msra.mxu0 %v7021_v19  ;;  %7085 = vmatprep.mubr.f32.mxu0 %v31015_v0 }
 0x242   : > { %7095 = vmatprep.subr.mxu0 %v31815_v59  ;;  %29357 = vmatmul.mubr.f32.vlgmr.msra.gmra.mrb[0].mxu1 %v7004_v17  ;;  %v7965_v47 = vand.u32 4294901760, %v7964_v44 }
 0x243   : > { %29360 = vmatpush3.msra.mxu1 %v7479_v20  ;;  %29361 = vmatprep.mubr.msk.f32.mxu1 %vm31016_vm0, %v31015_v0 }
 0x244   : > { %29364 = vmatprep.subr.mxu1 %v31015_v0 }
 0x248   : > { %7087 = vmatmul.mubr.f32.vlgmr.msra.gmra.mrb[0].mxu0 %v31825_v1 }
 0x249   : > { %7098 = vmatpush1.msra.mxu0 %v31833_v4  ;;  %7161 = vmatprep.mubr.f32.mxu0 %v31015_v0 }
 0x24a   : > { %7171 = vmatprep.subr.mxu0 %v31808_v55  ;;  %29362 = vmatmul.mubr.f32.vlgmr.msra.gmra.mrb[0].mxu1 %v31825_v1 }
 0x24b   : > { %29365 = vmatpush3.msra.mxu1 %v31842_v7  ;;  %29366 = vmatprep.mubr.msk.f32.mxu1 %vm31016_vm0, %v31015_v0 }
 0x24c   : > { %29369 = vmatprep.subr.mxu1 %v31015_v0 }
 0x250   : > { %7164 = vmatmul.mubr.f32.vlgmr.msra.gmra.mrb[0].mxu0 %v7001_v5 }
 0x251   : > { %7173 = vmatpush1.msra.mxu0 %v31823_v63  ;;  %7236 = vmatprep.mubr.f32.mxu0 %v31015_v0 }
 0x252   : > { %7249 = vmatprep.subr.mxu0 %v7013_v2  ;;  %29367 = vmatmul.mubr.f32.vlgmr.msra.gmra.mrb[0].mxu1 %v7001_v5 }
 0x253   : > { %29370 = vmatpush3.msra.mxu1 %v31828_v3  ;;  %29371 = vmatprep.mubr.msk.f32.mxu1 %vm31016_vm0, %v31015_v0 }
 0x254   : > { %29374 = vmatprep.subr.mxu1 %v31015_v0 }
 0x258   : > { %7240 = vmatmul.mubr.f32.vlgmr.msra.gmra.mrb[0].mxu0 %v7002_v10 }
 0x259   : > { %7253 = vmatpush1.msra.mxu0 %v7019_v8  ;;  %7316 = vmatprep.mubr.f32.mxu0 %v31015_v0 }
 0x25a   : > { %7325 = vmatprep.subr.mxu0 %v31808_v55  ;;  %29372 = vmatmul.mubr.f32.vlgmr.msra.gmra.mrb[0].mxu1 %v7002_v10  ;;  %v8791_v55 = vsel %vm321_vm11, 1, %v31033_v54 }
 0x25b   : > { %29375 = vmatpush3.msra.mxu1 %v7477_v15  ;;  %29376 = vmatprep.mubr.msk.f32.mxu1 %vm31016_vm0, %v31015_v0  ;;  %v31958_v58 = vrot.slane %v8791_v55, %v8794_v53  ;;  %v31960_v59 = vrot.slane %v8791_v55, %v8798_v56  ;;  %v31962_v60 = vrot.slane %v8791_v55, %v8802_v57 }
 0x25c   : > { %29379 = vmatprep.subr.mxu1 %v31015_v0 }
 0x25d   : > { %vm8804_vm12 = vcmp.eq.s32.totalorder %v31958_v58, 1  ;;  %vm33468_vm14 = vcmp.eq.s32.totalorder %v31960_v59, 1  ;;  %vm8806_vm15 = vcmp.eq.s32.totalorder %v31962_v60, 1 }
 0x260   : > { %7318 = vmatmul.mubr.f32.vlgmr.msra.gmra.mrb[0].mxu0 %v31825_v1 }
 0x261   : > { %7327 = vmatpush1.msra.mxu0 %v31823_v63  ;;  %7390 = vmatprep.mubr.f32.mxu0 %v31015_v0 }
 0x262   : > { %29377 = vmatmul.mubr.f32.vlgmr.msra.gmra.mrb[0].mxu1 %v31825_v1  ;;  %7878 = vmatprep.subr.mxu0 %v31881_v26 }
 0x263   : > { %29380 = vmatpush3.msra.mxu1 %v31828_v3  ;;  %29381 = vmatprep.mubr.msk.f32.mxu1 %vm31016_vm0, %v31015_v0 }
 0x264   : > { %29384 = vmatprep.subr.mxu1 %v31015_v0 }
 0x268   : > { %7392 = vmatmul.mubr.f32.vlgmr.msra.gmra.mrb[0].mxu0 %v31825_v1 }
 0x269   : > { %7880 = vmatpush1.msra.mxu0 %v31894_v33  ;;  %7943 = vmatprep.mubr.f32.mxu0 %v31015_v0 }
 0x26a   : > { %29382 = vmatmul.mubr.f32.vlgmr.msra.gmra.mrb[0].mxu1 %v31825_v1  ;;  %7960 = vmatprep.subr.mxu0 %v7959_v42 }
 0x26b   : > { %29385 = vmatpush3.msra.mxu1 %v31898_v35  ;;  %29386 = vmatprep.mubr.msk.f32.mxu1 %vm31016_vm0, %v31015_v0 }
 0x26c   : > { %29389 = vmatprep.subr.mxu1 %v31015_v0 }
 0x270   : > { %7949 = vmatmul.mubr.f32.vlgmr.msra.gmra.mrb[0].mxu0 %v7948_v48 }
 0x271   : > { %7966 = vmatpush1.msra.mxu0 %v7965_v47  ;;  %8029 = vmatprep.mubr.f32.mxu0 %v31015_v0 }
 0x272   : > { %8039 = vmatprep.subr.mxu0 %v7956_v11  ;;  %29387 = vmatmul.mubr.f32.vlgmr.msra.gmra.mrb[0].mxu1 %v7948_v48  ;;  %v8873_v48 = vld [vmem:[#allocation2] sm:$0x3] }
 0x273   : > { %29390 = vmatpush3.msra.mxu1 %v8423_v49  ;;  %29391 = vmatprep.mubr.msk.f32.mxu1 %vm31016_vm0, %v31015_v0 }
 0x274   : > { %29394 = vmatprep.subr.mxu1 %v31015_v0 }
 0x278   : > { %8031 = vmatmul.mubr.f32.vlgmr.msra.gmra.mrb[0].mxu0 %v31896_v9 }
 0x279   : > { %8042 = vmatpush1.msra.mxu0 %v7962_v36  ;;  %8105 = vmatprep.mubr.f32.mxu0 %v31015_v0  ;;  %v31986_v36 = vrot.slane %v320_v51, %v8802_v57 }
 0x27a   : > { %8115 = vmatprep.subr.mxu0 %v31881_v26  ;;  %29392 = vmatmul.mubr.f32.vlgmr.msra.gmra.mrb[0].mxu1 %v31896_v9 }
 0x27b   : > { %29395 = vmatpush3.msra.mxu1 %v8420_v39  ;;  %29396 = vmatprep.mubr.msk.f32.mxu1 %vm31016_vm0, %v31015_v0 }
 0x27c   : > { %29399 = vmatprep.subr.mxu1 %v31015_v0 }
 0x280   : > { %8108 = vmatmul.mubr.f32.vlgmr.msra.gmra.mrb[0].mxu0 %v7945_v37 }
 0x281   : > { %8117 = vmatpush1.msra.mxu0 %v31894_v33  ;;  %8180 = vmatprep.mubr.f32.mxu0 %v31015_v0 }
 0x282   : > { %8193 = vmatprep.subr.mxu0 %v7957_v34  ;;  %29397 = vmatmul.mubr.f32.vlgmr.msra.gmra.mrb[0].mxu1 %v7945_v37  ;;  %v31982_v34 = vrot.slane %v320_v51, %v8794_v53 }
 0x283   : > { %29400 = vmatpush3.msra.mxu1 %v31898_v35  ;;  %29401 = vmatprep.mubr.msk.f32.mxu1 %vm31016_vm0, %v31015_v0 }
 0x284   : > { %29404 = vmatprep.subr.mxu1 %v31015_v0 }
 0x288   : > { %8184 = vmatmul.mubr.f32.vlgmr.msra.gmra.mrb[0].mxu0 %v7946_v41 }
 0x289   : > { %8197 = vmatpush1.msra.mxu0 %v7963_v40  ;;  %8260 = vmatprep.mubr.f32.mxu0 %v31015_v0 }
 0x28a   : > { %8269 = vmatprep.subr.mxu0 %v31881_v26  ;;  %29402 = vmatmul.mubr.f32.vlgmr.msra.gmra.mrb[0].mxu1 %v7946_v41 }
 0x28b   : > { %29405 = vmatpush3.msra.mxu1 %v8421_v43  ;;  %29406 = vmatprep.mubr.msk.f32.mxu1 %vm31016_vm0, %v31015_v0 }
 0x28c   : > { %29409 = vmatprep.subr.mxu1 %v31015_v0 }
 0x290   : > { %8262 = vmatmul.mubr.f32.vlgmr.msra.gmra.mrb[0].mxu0 %v31896_v9 }
 0x291   : > { %8271 = vmatpush1.msra.mxu0 %v31894_v33  ;;  %8334 = vmatprep.mubr.f32.mxu0 %v31015_v0 }
 0x292   : > { %29407 = vmatmul.mubr.f32.vlgmr.msra.gmra.mrb[0].mxu1 %v31896_v9 }
 0x293   : > { %29410 = vmatpush3.msra.mxu1 %v31898_v35  ;;  %29411 = vmatprep.mubr.msk.f32.mxu1 %vm31016_vm0, %v31015_v0  ;;  %v31984_v35 = vrot.slane %v320_v51, %v8798_v56 }
 0x294   : > { %29414 = vmatprep.subr.mxu1 %v31015_v0 }
 0x298   : > { %8336 = vmatmul.mubr.f32.vlgmr.msra.gmra.mrb[0].mxu0 %v31896_v9 }
 0x299   : > { %8970 = vmatprep.mubr.f32.mxu0 %v31015_v0 }
 0x29a   : > { %29412 = vmatmul.mubr.f32.vlgmr.msra.gmra.mrb[0].mxu1 %v31896_v9 }
 0x29b   : > { %29416 = vmatprep.mubr.msk.f32.mxu1 %vm31016_vm0, %v31015_v0 }
 0x36b   : > { %v8337_v61 = vpop.f32.mrb[0].mxu0 }
 0x36c   : > { %v8807_v62 = vsel %vm8804_vm12, %v8337_v61, 0.0  ;;  %v8339_v63 = vpop.f32.mrb[1].mxu0 }
 0x36d   : > { %v8811_v1 = vsel %vm8810_vm13, %v8807_v62, 0.0  ;;  %v8818_v2 = vmul.f32 %v8807_v62, %v8807_v62  ;;  %v8808_v3 = vsel %vm33468_vm14, %v8339_v63, 0.0  ;;  %v8784_v4 = vpop.f32.mrb[0].mxu1 }
 0x36e   : > { %v8812_v5 = vsel %vm8810_vm13, %v8808_v3, 0.0  ;;  %v8819_v6 = vmul.f32 %v8808_v3, %v8808_v3  ;;  %v8809_v7 = vsel %vm8806_vm15, %v8784_v4, 0.0  ;;  %v29413_v8 = vpop.f32.mrb[1].mxu1 }
 0x36f   : > { %v8820_v10 = vmul.f32 %v8809_v7, %v8809_v7  ;;  %v8813_v14 = vadd.f32 %v8812_v5, %v8811_v1  ;;  %v8814_v15 = vsel %vm8810_vm13, %v8809_v7, 0.0  ;;  %v8821_v12 = vsel %vm8810_vm13, %v8818_v2, 0.0 }
 0x370   : > { %v8822_v16 = vsel %vm8810_vm13, %v8819_v6, 0.0 }
 0x371   : > { %v8815_v18 = vadd.f32 %v8814_v15, %v8813_v14  ;;  %v8823_v19 = vadd.f32 %v8822_v16, %v8821_v12  ;;  %v8824_v17 = vsel %vm8810_vm13, %v8820_v10, 0.0 }
 0x373   : > { %8816 = vadd.xlane.f32.xlu0 %v8815_v18  ;;  %v8825_v20 = vadd.f32 %v8824_v17, %v8823_v19 }
 0x375   : > { %8826 = vadd.xlane.f32.xlu1 %v8825_v20 }
 0x389   : > { %8878 = vrot.lane.b32.xlu0 %v31979_v13, %s31034_s19  ;;  %s31036_s19 = smov 118  }
 0x400   : > { %v8817_v21 = vpop.xlane.xlu0 %8816 }
 0x401   : > { %v8828_v22 = vmul.f32 0.00390625, %v8817_v21 }
 0x402   : > { %v8827_v23 = vpop.xlane.xlu1 %8826 }
 0x403   : > { %v8829_v24 = vmul.f32 0.00390625, %v8827_v23  ;;  %v8830_v25 = vmul.f32 %v8828_v22, %v8828_v22  ;;  %v8835_v29 = vsub.f32 %v8807_v62, %v8828_v22  ;;  %v8836_v11 = vsub.f32 %v8808_v3, %v8828_v22 }
 0x404   : > { %v8837_v30 = vsub.f32 %v8809_v7, %v8828_v22  ;;  %v8879_v54 = vpop.permute.xlu0 %8878 }
 0x405   : > { %v8831_v26 = vsub.f32 %v8829_v24, %v8830_v25 }
 0x407   : > { %v8832_v27 = vmax.f32 %v8831_v26, 0.0 }
 0x409   : > { %v8833_v28 = vadd.f32 1e-05, %v8832_v27 }
 0x40b   : > { %30844 = vrsqrt.f32 %v8833_v28 }
 0x415   : > { %v30845_v31 = vpop.eup %30844 }
 0x416   : > { %v8838_v32 = vmul.f32 %v30845_v31, %v8835_v29  ;;  %v8839_v33 = vmul.f32 %v30845_v31, %v8836_v11  ;;  %v8840_v9 = vmul.f32 %v30845_v31, %v8837_v30 }
 0x418   : > { %vm8841_vm11 = vcmp.ge.f32.partialorder %v8838_v32, 0.0  ;;  %vm8842_vm1 = vcmp.ge.f32.partialorder %v8839_v33, 0.0  ;;  %vm8843_vm14 = vcmp.ge.f32.partialorder %v8840_v9, 0.0  ;;  %v8844_v37 = vmul.f32 0.1, %v8838_v32 }
 0x419   : > { %v8845_v38 = vmul.f32 0.1, %v8839_v33  ;;  %v8846_v39 = vmul.f32 0.1, %v8840_v9 }
 0x41a   : > { %v8847_v40 = vsel %vm8841_vm11, %v8838_v32, %v8844_v37 }
 0x41b   : > { %v8848_v41 = vsel %vm8842_vm1, %v8839_v33, %v8845_v38  ;;  %v8849_v42 = vsel %vm8843_vm14, %v8840_v9, %v8846_v39  ;;  %v8866_v43 = vmul.f32 %v31982_v34, %v8847_v40  ;;  %vm8895_vm1 = vcmask 15360  }
 0x41c   : > { %v8867_v44 = vmul.f32 %v31984_v35, %v8848_v41  ;;  %v8868_v45 = vmul.f32 %v31986_v36, %v8849_v42  ;;  %v8896_v55 = vsel %vm8895_vm1, %v8879_v54, 0  ;;  %v9826_v38 = vsel %vm8895_vm1, %v31979_v13, 0 }
 0x41d   : > { %8869 = vst [vmem:[#allocation2 + $0x8] sm:$0x3] %v8866_v43  ;;  %v32054_v56 = vand.u32 4294901760, %v8896_v55  ;;  %v32113_v42 = vand.u32 4294901760, %v9826_v38 }
 0x41e   : > { %8870 = vst [vmem:[#allocation2 + $0x10] sm:$0x3] %v8867_v44  ;;  %8871 = vst [vmem:[#allocation2 + $0x18] sm:$0x3] %v8868_v45 }
 0x41f   : > { %v8972_v57 = vsub.f32 %v8896_v55, %v32054_v56 }
 0x421   : > { %v32057_v61 = vand.u32 4294901760, %v8972_v57 }
 0x423   : > { %v8974_v5 = vsub.f32 %v8972_v57, %v32057_v61 }
 0x424   : > { %v31991_v46 = vld [vmem:[#allocation2 + $0x8] sm:$0x3] }
 0x425   : > { %v31993_v47 = vld [vmem:[#allocation2 + $0x10] sm:$0x3]  ;;  %8886 = vrot.lane.b32.xlu1 %v31991_v46, %s31017_s30  ;;  %v31999_v49 = vld [vmem:[#allocation2 + $0x18] sm:$0x3]  ;;  %v13539_v53 = vld [vmem:[#allocation2 + $0x8] sm:$0x3] }
 0x426   : > { %8888 = vrot.lane.b32.xlu0 %v31993_v47, %s31017_s30  ;;  %v13540_v50 = vld [vmem:[#allocation2 + $0x10] sm:$0x3]  ;;  %v13541_v51 = vld [vmem:[#allocation2 + $0x18] sm:$0x3]  ;;  %v8975_v18 = vand.u32 4294901760, %v8974_v5 }
 0x429   : > { %8884 = vrot.lane.b32.xlu1 %v8873_v48, %s31017_s30 }
 0x42a   : > { %8890 = vrot.lane.b32.xlu0 %v31999_v49, %s31017_s30 }
 0x42d   : > { %9817 = vrot.lane.b32.xlu1 %v31991_v46, %s31019_s21 }
 0x42e   : > { %9819 = vrot.lane.b32.xlu0 %v31993_v47, %s31019_s21 }
 0x431   : > { %9815 = vrot.lane.b32.xlu1 %v8873_v48, %s31019_s21 }
 0x432   : > { %9821 = vrot.lane.b32.xlu0 %v31999_v49, %s31019_s21 }
 0x435   : > { %10745 = vrot.lane.b32.xlu1 %v31979_v13, %s31018_s9 }
 0x436   : > { %10749 = vrot.lane.b32.xlu0 %v31991_v46, %s31021_s11 }
 0x439   : > { %10751 = vrot.lane.b32.xlu1 %v31993_v47, %s31021_s11 }
 0x43a   : > { %10747 = vrot.lane.b32.xlu0 %v8873_v48, %s31021_s11 }
 0x43d   : > { %10753 = vrot.lane.b32.xlu1 %v31999_v49, %s31021_s11 }
 0x43e   : > { %11680 = vrot.lane.b32.xlu0 %v31979_v13, %s33469_s20  ;;  %s33485_s20 = smov 109  }
 0x441   : > { %11684 = vrot.lane.b32.xlu1 %v31991_v46, %s31023_s16 }
 0x442   : > { %11686 = vrot.lane.b32.xlu0 %v31993_v47, %s31023_s16 }
 0x445   : > { %11682 = vrot.lane.b32.xlu1 %v8873_v48, %s31023_s16  ;;  %v9902_v48 = vsub.f32 %v9826_v38, %v32113_v42 }
 0x446   : > { %11688 = vrot.lane.b32.xlu0 %v31999_v49, %s31023_s16 }
 0x449   : > { %12615 = vrot.lane.b32.xlu1 %v31979_v13, %s31020_s22 }
 0x44a   : > { %13543 = vrot.lane.b32.xlu0 %v31979_v13, %s31036_s19  ;;  %s31037_s19 = smov 114  }
 0x44d   : > { %13551 = vrot.lane.b32.xlu1 %v13540_v50, %s31026_s23 }
 0x44e   : > { %13553 = vrot.lane.b32.xlu0 %v13541_v51, %s31026_s23 }
 0x451   : > { %13549 = vrot.lane.b32.xlu1 %v13539_v53, %s31026_s23 }
 0x452   : > { %13555 = vrot.lane.b32.xlu0 %v13542_v52, %s31026_s23 }
 0x455   : > { %14482 = vrot.lane.b32.xlu1 %v31979_v13, %s31022_s29 }
 0x456   : > { %14486 = vrot.lane.b32.xlu0 %v13540_v50, %s31028_s12 }
 0x459   : > { %14488 = vrot.lane.b32.xlu1 %v13541_v51, %s31028_s12 }
 0x45a   : > { %14484 = vrot.lane.b32.xlu0 %v13539_v53, %s31028_s12 }
 0x45d   : > { %14490 = vrot.lane.b32.xlu1 %v13542_v52, %s31028_s12 }
 0x45e   : > { %15417 = vrot.lane.b32.xlu0 %v31979_v13, %s31037_s19 }
 0x461   : > { %15421 = vrot.lane.b32.xlu1 %v13540_v50, %s33470_s2 }
 0x462   : > { %15423 = vrot.lane.b32.xlu0 %v13541_v51, %s33470_s2 }
 0x465   : > { %15419 = vrot.lane.b32.xlu1 %v13539_v53, %s33470_s2 }
 0x466   : > { %15425 = vrot.lane.b32.xlu0 %v13542_v52, %s33470_s2 }
 0x469   : > { %16352 = vrot.lane.b32.xlu1 %v31979_v13, %s31024_s18 }
 0x46a   : > { %16356 = vrot.lane.b32.xlu0 %v13540_v50, %s33485_s20 }
 0x46d   : > { %16358 = vrot.lane.b32.xlu1 %v13541_v51, %s33485_s20 }
 0x46e   : > { %16354 = vrot.lane.b32.xlu0 %v13539_v53, %s33485_s20  ;;  %v9903_v53 = vand.u32 4294901760, %v9902_v48 }
 0x471   : > { %16360 = vrot.lane.b32.xlu1 %v13542_v52, %s33485_s20 }
 0x497   : > { %v8887_v62 = vpop.permute.xlu1 %8886 }
 0x498   : > { %v8889_v63 = vpop.permute.xlu0 %8888 }
 0x499   : > { %v8893_v1 = vsel %vm340_vm2, %v8887_v62, %v8889_v63 }
 0x49a   : > { %v8900_v2 = vsel %vm8810_vm13, %v8893_v1, 0 }
 0x49b   : > { %v32061_v3 = vand.u32 4294901760, %v8900_v2  ;;  %v8885_v4 = vpop.permute.xlu1 %8884 }
 0x49c   : > { %v8892_v6 = vsel %vm340_vm2, %v8885_v4, %v8887_v62  ;;  %v8891_v7 = vpop.permute.xlu0 %8890 }
 0x49d   : > { %v8983_v8 = vsub.f32 %v8900_v2, %v32061_v3  ;;  %v8898_v10 = vsel %vm8810_vm13, %v8892_v6, 0  ;;  %v8894_v14 = vsel %vm340_vm2, %v8889_v63, %v8891_v7  ;;  %8905 = vmatprep.subr.mxu0 %v32061_v3 }
 0x49e   : > { %v32069_v15 = vand.u32 4294901760, %v8898_v10  ;;  %v8902_v12 = vsel %vm8810_vm13, %v8894_v14, 0 }
 0x49f   : > { %v32072_v16 = vand.u32 4294901760, %v8902_v12  ;;  %v8984_v19 = vand.u32 4294901760, %v8983_v8  ;;  %v9818_v29 = vpop.permute.xlu1 %9817 }
 0x4a0   : > { %v8989_v17 = vsub.f32 %v8898_v10, %v32069_v15  ;;  %8907 = vmatpush1.msra.mxu0 %v32069_v15  ;;  %v9820_v11 = vpop.permute.xlu0 %9819 }
 0x4a1   : > { %v9447_v20 = vsub.f32 %v8902_v12, %v32072_v16  ;;  %29415 = vmatpush3.msra.mxu1 %v32072_v16  ;;  %8976 = vmatmul.mubr.f32.vlgmr.msra.gmra.mrb[2].mxu0 %v8975_v18  ;;  %v8985_v21 = vsub.f32 %v8983_v8, %v8984_v19  ;;  %v9824_v30 = vsel %vm1273_vm4, %v9818_v29, %v9820_v11 }
 0x4a2   : > { %v8990_v22 = vand.u32 4294901760, %v8989_v17  ;;  %29417 = vmatmul.mubr.f32.vlgmr.msra.gmra.mrb[2].mxu1 %v8975_v18  ;;  %29419 = vmatprep.subr.mxu1 %v31015_v0  ;;  %v9830_v31 = vsel %vm8810_vm13, %v9824_v30, 0 }
 0x4a3   : > { %v9448_v23 = vand.u32 4294901760, %v9447_v20  ;;  %v8986_v24 = vand.u32 4294901760, %v8985_v21  ;;  %9056 = vmatprep.mubr.f32.mxu0 %v31015_v0  ;;  %29421 = vmatprep.mubr.msk.f32.mxu1 %vm31016_vm0, %v31015_v0  ;;  %v9816_v32 = vpop.permute.xlu1 %9815  ;;  %v32098_v9 = vand.u32 4294901760, %v9830_v31 }
 0x4a4   : > { %v8991_v25 = vsub.f32 %v8989_v17, %v8990_v22  ;;  %v9822_v33 = vpop.permute.xlu0 %9821  ;;  %v9823_v37 = vsel %vm1273_vm4, %v9816_v32, %v9818_v29 }
 0x4a5   : > { %8987 = vmatprep.subr.mxu0 %v8986_v24  ;;  %v9449_v26 = vsub.f32 %v9447_v20, %v9448_v23  ;;  %v9825_v39 = vsel %vm1273_vm4, %v9820_v11, %v9822_v33  ;;  %v9913_v40 = vsub.f32 %v9830_v31, %v32098_v9  ;;  %v9828_v41 = vsel %vm8810_vm13, %v9823_v37, 0 }
 0x4a6   : > { %v8992_v27 = vand.u32 4294901760, %v8991_v25  ;;  %v9832_v13 = vsel %vm8810_vm13, %v9825_v39, 0  ;;  %v32116_v43 = vand.u32 4294901760, %v9828_v41 }
 0x4a7   : > { %v9450_v28 = vand.u32 4294901760, %v9449_v26  ;;  %v32118_v44 = vand.u32 4294901760, %v9832_v13  ;;  %v9914_v45 = vand.u32 4294901760, %v9913_v40 }
 0x4a8   : > { %8993 = vmatpush1.msra.mxu0 %v8992_v27  ;;  %v9919_v50 = vsub.f32 %v9828_v41, %v32116_v43  ;;  %v10750_v5 = vpop.permute.xlu0 %10749 }
 0x4a9   : > { %29420 = vmatpush3.msra.mxu1 %v9450_v28  ;;  %9058 = vmatmul.mubr.f32.vlgmr.msra.gmra.mrb[2].mxu0 %v32054_v56  ;;  %v10377_v51 = vsub.f32 %v9832_v13, %v32118_v44  ;;  %v9915_v52 = vsub.f32 %v9913_v40, %v9914_v45 }
 0x4aa   : > { %9066 = vmatprep.subr.mxu0 %v8983_v8  ;;  %29422 = vmatmul.mubr.f32.vlgmr.msra.gmra.mrb[2].mxu1 %v32054_v56  ;;  %v9920_v54 = vand.u32 4294901760, %v9919_v50 }
 0x4ab   : > { %29424 = vmatprep.subr.mxu1 %v31015_v0  ;;  %9069 = vmatpush1.msra.mxu0 %v8989_v17  ;;  %v10378_v55 = vand.u32 4294901760, %v10377_v51 }
 0x4ac   : > { %29425 = vmatpush3.msra.mxu1 %v9447_v20  ;;  %9142 = vmatprep.subr.mxu0 %v32061_v3  ;;  %v9921_v62 = vsub.f32 %v9919_v50, %v9920_v54  ;;  %v10748_v8 = vpop.permute.xlu0 %10747 }
 0x4ad   : > { %9132 = vmatprep.mubr.f32.mxu0 %v31015_v0  ;;  %29426 = vmatprep.mubr.msk.f32.mxu1 %vm31016_vm0, %v31015_v0  ;;  %v10379_v1 = vsub.f32 %v10377_v51, %v10378_v55 }
 0x4ae   : > { %29429 = vmatprep.subr.mxu1 %v31015_v0  ;;  %v9922_v2 = vand.u32 4294901760, %v9921_v62 }
 0x4b0   : > { %v11681_v39 = vpop.permute.xlu0 %11680 }
 0x4b1   : > { %9135 = vmatmul.mubr.f32.vlgmr.msra.gmra.mrb[2].mxu0 %v8972_v57 }
 0x4b2   : > { %9144 = vmatpush1.msra.mxu0 %v32069_v15  ;;  %29427 = vmatmul.mubr.f32.vlgmr.msra.gmra.mrb[2].mxu1 %v8972_v57  ;;  %v9916_v57 = vand.u32 4294901760, %v9915_v52 }
 0x4b3   : > { %29430 = vmatpush3.msra.mxu1 %v32072_v16  ;;  %9220 = vmatprep.subr.mxu0 %v8984_v19 }
 0x4b4   : > { %9207 = vmatprep.mubr.f32.mxu0 %v31015_v0  ;;  %29431 = vmatprep.mubr.msk.f32.mxu1 %vm31016_vm0, %v31015_v0  ;;  %v11687_v41 = vpop.permute.xlu0 %11686 }
 0x4b5   : > { %29434 = vmatprep.subr.mxu1 %v31015_v0 }
 0x4b9   : > { %9211 = vmatmul.mubr.f32.vlgmr.msra.gmra.mrb[2].mxu0 %v32057_v61 }
 0x4ba   : > { %9224 = vmatpush1.msra.mxu0 %v8990_v22  ;;  %29432 = vmatmul.mubr.f32.vlgmr.msra.gmra.mrb[2].mxu1 %v32057_v61  ;;  %v9904_v61 = vsub.f32 %v9902_v48, %v9903_v53 }
 0x4bb   : > { %29435 = vmatpush3.msra.mxu1 %v9448_v23  ;;  %9296 = vmatprep.subr.mxu0 %v32061_v3  ;;  %v10380_v3 = vand.u32 4294901760, %v10379_v1 }
 0x4bc   : > { %9287 = vmatprep.mubr.f32.mxu0 %v31015_v0  ;;  %29436 = vmatprep.mubr.msk.f32.mxu1 %vm31016_vm0, %v31015_v0  ;;  %v9905_v63 = vand.u32 4294901760, %v9904_v61 }
 0x4bd   : > { %29439 = vmatprep.subr.mxu1 %v31015_v0 }
 0x4c1   : > { %9289 = vmatmul.mubr.f32.vlgmr.msra.gmra.mrb[2].mxu0 %v32054_v56 }
 0x4c2   : > { %9298 = vmatpush1.msra.mxu0 %v32069_v15  ;;  %29437 = vmatmul.mubr.f32.vlgmr.msra.gmra.mrb[2].mxu1 %v32054_v56  ;;  %v10755_v15 = vsel %vm2214_vm5, %v10748_v8, %v10750_v5 }
 0x4c3   : > { %29440 = vmatpush3.msra.mxu1 %v32072_v16  ;;  %9835 = vmatprep.subr.mxu0 %v32098_v9  ;;  %v10760_v19 = vsel %vm8810_vm13, %v10755_v15, 0 }
 0x4c4   : > { %9361 = vmatprep.mubr.f32.mxu0 %v31015_v0  ;;  %29441 = vmatprep.mubr.msk.f32.mxu1 %vm31016_vm0, %v31015_v0  ;;  %v32174_v21 = vand.u32 4294901760, %v10760_v19 }
 0x4c5   : > { %29444 = vmatprep.subr.mxu1 %v31015_v0 }
 0x4c6   : > { %v10851_v25 = vsub.f32 %v10760_v19, %v32174_v21 }
 0x4c8   : > { %v10852_v29 = vand.u32 4294901760, %v10851_v25 }
 0x4c9   : > { %9363 = vmatmul.mubr.f32.vlgmr.msra.gmra.mrb[2].mxu0 %v32054_v56 }
 0x4ca   : > { %29442 = vmatmul.mubr.f32.vlgmr.msra.gmra.mrb[2].mxu1 %v32054_v56  ;;  %9837 = vmatpush1.msra.mxu0 %v32116_v43  ;;  %v10746_v56 = vpop.permute.xlu1 %10745  ;;  %v10853_v32 = vsub.f32 %v10851_v25, %v10852_v29 }
 0x4cb   : > { %29445 = vmatpush3.msra.mxu1 %v32118_v44  ;;  %9917 = vmatprep.subr.mxu0 %v9916_v57  ;;  %v10758_v16 = vsel %vm8895_vm1, %v10746_v56, 0 }
 0x4cc   : > { %9900 = vmatprep.mubr.f32.mxu0 %v31015_v0  ;;  %29446 = vmatprep.mubr.msk.f32.mxu1 %vm31016_vm0, %v31015_v0  ;;  %v32172_v20 = vand.u32 4294901760, %v10758_v16  ;;  %v10854_v37 = vand.u32 4294901760, %v10853_v32 }
 0x4cd   : > { %29449 = vmatprep.subr.mxu1 %v31015_v0 }
 0x4ce   : > { %v10752_v4 = vpop.permute.xlu1 %10751  ;;  %v10834_v24 = vsub.f32 %v10758_v16, %v32172_v20  ;;  %v12621_v16 = vsel %vm8810_vm13, %v31993_v47, 0  ;;  %v12619_v47 = vsel %vm8810_vm13, %v31991_v46, 0 }
 0x4cf   : > { %v10756_v6 = vsel %vm2214_vm5, %v10750_v5, %v10752_v4 }
 0x4d0   : > { %v10762_v7 = vsel %vm8810_vm13, %v10756_v6, 0  ;;  %v10835_v28 = vand.u32 4294901760, %v10834_v24 }
 0x4d1   : > { %9906 = vmatmul.mubr.f32.vlgmr.msra.gmra.mrb[2].mxu0 %v9905_v63  ;;  %v32159_v14 = vand.u32 4294901760, %v10762_v7 }
 0x4d2   : > { %9923 = vmatpush1.msra.mxu0 %v9922_v2  ;;  %29447 = vmatmul.mubr.f32.vlgmr.msra.gmra.mrb[2].mxu1 %v9905_v63  ;;  %v10754_v10 = vpop.permute.xlu1 %10753  ;;  %v10836_v31 = vsub.f32 %v10834_v24, %v10835_v28 }
 0x4d3   : > { %29450 = vmatpush3.msra.mxu1 %v10380_v3  ;;  %9996 = vmatprep.subr.mxu0 %v9913_v40  ;;  %v10757_v12 = vsel %vm2214_vm5, %v10752_v4, %v10754_v10  ;;  %v10845_v18 = vsub.f32 %v10762_v7, %v32159_v14 }
 0x4d4   : > { %9986 = vmatprep.mubr.f32.mxu0 %v31015_v0  ;;  %29451 = vmatprep.mubr.msk.f32.mxu1 %vm31016_vm0, %v31015_v0  ;;  %v10764_v17 = vsel %vm8810_vm13, %v10757_v12, 0 }
 0x4d5   : > { %29454 = vmatprep.subr.mxu1 %v31015_v0  ;;  %v32176_v22 = vand.u32 4294901760, %v10764_v17  ;;  %v10846_v23 = vand.u32 4294901760, %v10845_v18 }
 0x4d6   : > { %v11685_v40 = vpop.permute.xlu1 %11684 }
 0x4d7   : > { %v11309_v26 = vsub.f32 %v10764_v17, %v32176_v22  ;;  %v10847_v27 = vsub.f32 %v10845_v18, %v10846_v23 }
 0x4d9   : > { %9988 = vmatmul.mubr.f32.vlgmr.msra.gmra.mrb[2].mxu0 %v32113_v42  ;;  %v11310_v11 = vand.u32 4294901760, %v11309_v26  ;;  %v10848_v30 = vand.u32 4294901760, %v10847_v27 }
 0x4da   : > { %9999 = vmatpush1.msra.mxu0 %v9919_v50  ;;  %29452 = vmatmul.mubr.f32.vlgmr.msra.gmra.mrb[2].mxu1 %v32113_v42 }
 0x4db   : > { %29455 = vmatpush3.msra.mxu1 %v10377_v51  ;;  %10072 = vmatprep.subr.mxu0 %v32098_v9  ;;  %v11311_v33 = vsub.f32 %v11309_v26, %v11310_v11  ;;  %v11693_v51 = vsel %vm8895_vm1, %v11681_v39, 0 }
 0x4dc   : > { %10062 = vmatprep.mubr.f32.mxu0 %v31015_v0  ;;  %29456 = vmatprep.mubr.msk.f32.mxu1 %vm31016_vm0, %v31015_v0 }
 0x4dd   : > { %29459 = vmatprep.subr.mxu1 %v31015_v0  ;;  %v11312_v38 = vand.u32 4294901760, %v11311_v33 }
 0x4e1   : > { %10065 = vmatmul.mubr.f32.vlgmr.msra.gmra.mrb[2].mxu0 %v9902_v48 }
 0x4e2   : > { %10074 = vmatpush1.msra.mxu0 %v32116_v43  ;;  %29457 = vmatmul.mubr.f32.vlgmr.msra.gmra.mrb[2].mxu1 %v9902_v48 }
 0x4e3   : > { %29460 = vmatpush3.msra.mxu1 %v32118_v44  ;;  %10150 = vmatprep.subr.mxu0 %v9914_v45 }
 0x4e4   : > { %10137 = vmatprep.mubr.f32.mxu0 %v31015_v0  ;;  %29461 = vmatprep.mubr.msk.f32.mxu1 %vm31016_vm0, %v31015_v0 }
 0x4e5   : > { %29464 = vmatprep.subr.mxu1 %v31015_v0 }
 0x4e9   : > { %10141 = vmatmul.mubr.f32.vlgmr.msra.gmra.mrb[2].mxu0 %v9903_v53 }
 0x4ea   : > { %10154 = vmatpush1.msra.mxu0 %v9920_v54  ;;  %29462 = vmatmul.mubr.f32.vlgmr.msra.gmra.mrb[2].mxu1 %v9903_v53 }
 0x4eb   : > { %29465 = vmatpush3.msra.mxu1 %v10378_v55  ;;  %10226 = vmatprep.subr.mxu0 %v32098_v9  ;;  %v10837_v9 = vand.u32 4294901760, %v10836_v31  ;;  %v32230_v55 = vand.u32 4294901760, %v11693_v51 }
 0x4ec   : > { %10217 = vmatprep.mubr.f32.mxu0 %v31015_v0  ;;  %29466 = vmatprep.mubr.msk.f32.mxu1 %vm31016_vm0, %v31015_v0 }
 0x4ed   : > { %29469 = vmatprep.subr.mxu1 %v31015_v0  ;;  %v11769_v63 = vsub.f32 %v11693_v51, %v32230_v55 }
 0x4ef   : > { %v11770_v56 = vand.u32 4294901760, %v11769_v63 }
 0x4f1   : > { %10219 = vmatmul.mubr.f32.vlgmr.msra.gmra.mrb[2].mxu0 %v32113_v42  ;;  %v11771_v7 = vsub.f32 %v11769_v63, %v11770_v56 }
 0x4f2   : > { %10228 = vmatpush1.msra.mxu0 %v32116_v43  ;;  %29467 = vmatmul.mubr.f32.vlgmr.msra.gmra.mrb[2].mxu1 %v32113_v42  ;;  %v11683_v43 = vpop.permute.xlu1 %11682 }
 0x4f3   : > { %29470 = vmatpush3.msra.mxu1 %v32118_v44  ;;  %10767 = vmatprep.subr.mxu0 %v32159_v14  ;;  %v11689_v44 = vpop.permute.xlu0 %11688  ;;  %v11690_v48 = vsel %vm3158_vm6, %v11683_v43, %v11685_v40 }
 0x4f4   : > { %10291 = vmatprep.mubr.f32.mxu0 %v31015_v0  ;;  %29471 = vmatprep.mubr.msk.f32.mxu1 %vm31016_vm0, %v31015_v0  ;;  %v11692_v50 = vsel %vm3158_vm6, %v11687_v41, %v11689_v44  ;;  %v11695_v53 = vsel %vm8810_vm13, %v11690_v48, 0 }
 0x4f5   : > { %29474 = vmatprep.subr.mxu1 %v31015_v0  ;;  %v11699_v54 = vsel %vm8810_vm13, %v11692_v50, 0  ;;  %v32232_v57 = vand.u32 4294901760, %v11695_v53 }
 0x4f6   : > { %v32234_v61 = vand.u32 4294901760, %v11699_v54  ;;  %v12616_v19 = vpop.permute.xlu1 %12615 }
 0x4f7   : > { %v11786_v1 = vsub.f32 %v11695_v53, %v32232_v57  ;;  %v12617_v17 = vsel %vm8895_vm1, %v12616_v19, 0  ;;  %v13544_v39 = vpop.permute.xlu0 %13543 }
 0x4f8   : > { %v12244_v2 = vsub.f32 %v11699_v54, %v32234_v61  ;;  %v13560_v51 = vsel %vm8895_vm1, %v13544_v39, 0 }
 0x4f9   : > { %10293 = vmatmul.mubr.f32.vlgmr.msra.gmra.mrb[2].mxu0 %v32113_v42  ;;  %v11787_v4 = vand.u32 4294901760, %v11786_v1 }
 0x4fa   : > { %29472 = vmatmul.mubr.f32.vlgmr.msra.gmra.mrb[2].mxu1 %v32113_v42  ;;  %10769 = vmatpush1.msra.mxu0 %v32174_v21  ;;  %v11691_v42 = vsel %vm3158_vm6, %v11685_v40, %v11687_v41  ;;  %v12245_v5 = vand.u32 4294901760, %v12244_v2  ;;  %v13552_v40 = vpop.permute.xlu1 %13551 }
 0x4fb   : > { %29475 = vmatpush3.msra.mxu1 %v32176_v22  ;;  %10849 = vmatprep.subr.mxu0 %v10848_v30  ;;  %v11697_v13 = vsel %vm8810_vm13, %v11691_v42, 0  ;;  %v11788_v8 = vsub.f32 %v11786_v1, %v11787_v4  ;;  %v13554_v41 = vpop.permute.xlu0 %13553 }
 0x4fc   : > { %10832 = vmatprep.mubr.f32.mxu0 %v31015_v0  ;;  %29476 = vmatprep.mubr.msk.f32.mxu1 %vm31016_vm0, %v31015_v0  ;;  %v32217_v45 = vand.u32 4294901760, %v11697_v13  ;;  %v12246_v10 = vsub.f32 %v12244_v2, %v12245_v5  ;;  %v13558_v42 = vsel %vm5033_vm7, %v13552_v40, %v13554_v41 }
 0x4fd   : > { %29479 = vmatprep.subr.mxu1 %v31015_v0  ;;  %v11789_v15 = vand.u32 4294901760, %v11788_v8 }
 0x4fe   : > { %v11780_v52 = vsub.f32 %v11697_v13, %v32217_v45  ;;  %v12247_v12 = vand.u32 4294901760, %v12246_v10  ;;  %v13564_v13 = vsel %vm8810_vm13, %v13558_v42, 0  ;;  %v13550_v43 = vpop.permute.xlu1 %13549 }
 0x4ff   : > { %v13556_v44 = vpop.permute.xlu0 %13555  ;;  %v13557_v48 = vsel %vm5033_vm7, %v13550_v43, %v13552_v40 }
 0x500   : > { %v11781_v62 = vand.u32 4294901760, %v11780_v52  ;;  %v13559_v50 = vsel %vm5033_vm7, %v13554_v41, %v13556_v44  ;;  %v13562_v53 = vsel %vm8810_vm13, %v13557_v48, 0 }
 0x501   : > { %10838 = vmatmul.mubr.f32.vlgmr.msra.gmra.mrb[2].mxu0 %v10837_v9  ;;  %v13566_v54 = vsel %vm8810_vm13, %v13559_v50, 0 }
 0x502   : > { %10855 = vmatpush1.msra.mxu0 %v10854_v37  ;;  %29477 = vmatmul.mubr.f32.vlgmr.msra.gmra.mrb[2].mxu1 %v10837_v9  ;;  %v11782_v3 = vsub.f32 %v11780_v52, %v11781_v62 }
 0x503   : > { %29480 = vmatpush3.msra.mxu1 %v11312_v38  ;;  %10928 = vmatprep.subr.mxu0 %v10845_v18  ;;  %v32275_v18 = vand.u32 4294901760, %v12621_v16  ;;  %v14487_v19 = vpop.permute.xlu0 %14486 }
 0x504   : > { %10918 = vmatprep.mubr.f32.mxu0 %v31015_v0  ;;  %29481 = vmatprep.mubr.msk.f32.mxu1 %vm31016_vm0, %v31015_v0  ;;  %v11783_v6 = vand.u32 4294901760, %v11782_v3 }
 0x505   : > { %29484 = vmatprep.subr.mxu1 %v31015_v0 }
 0x509   : > { %10920 = vmatmul.mubr.f32.vlgmr.msra.gmra.mrb[2].mxu0 %v32172_v20 }
 0x50a   : > { %10931 = vmatpush1.msra.mxu0 %v10851_v25  ;;  %29482 = vmatmul.mubr.f32.vlgmr.msra.gmra.mrb[2].mxu1 %v32172_v20 }
 0x50b   : > { %29485 = vmatpush3.msra.mxu1 %v11309_v26  ;;  %11004 = vmatprep.subr.mxu0 %v32159_v14 }
 0x50c   : > { %10994 = vmatprep.mubr.f32.mxu0 %v31015_v0  ;;  %29486 = vmatprep.mubr.msk.f32.mxu1 %vm31016_vm0, %v31015_v0 }
 0x50d   : > { %29489 = vmatprep.subr.mxu1 %v31015_v0 }
 0x511   : > { %10997 = vmatmul.mubr.f32.vlgmr.msra.gmra.mrb[2].mxu0 %v10834_v24 }
 0x512   : > { %11006 = vmatpush1.msra.mxu0 %v32174_v21  ;;  %29487 = vmatmul.mubr.f32.vlgmr.msra.gmra.mrb[2].mxu1 %v10834_v24 }
 0x513   : > { %29490 = vmatpush3.msra.mxu1 %v32176_v22  ;;  %11082 = vmatprep.subr.mxu0 %v10846_v23  ;;  %v32290_v23 = vand.u32 4294901760, %v12619_v47 }
 0x514   : > { %11069 = vmatprep.mubr.f32.mxu0 %v31015_v0  ;;  %29491 = vmatprep.mubr.msk.f32.mxu1 %vm31016_vm0, %v31015_v0 }
 0x515   : > { %29494 = vmatprep.subr.mxu1 %v31015_v0 }
 0x519   : > { %11073 = vmatmul.mubr.f32.vlgmr.msra.gmra.mrb[2].mxu0 %v10835_v28 }
 0x51a   : > { %11086 = vmatpush1.msra.mxu0 %v10852_v29  ;;  %29492 = vmatmul.mubr.f32.vlgmr.msra.gmra.mrb[2].mxu1 %v10835_v28 }
 0x51b   : > { %29495 = vmatpush3.msra.mxu1 %v11310_v11  ;;  %11158 = vmatprep.subr.mxu0 %v32159_v14  ;;  %v11772_v14 = vand.u32 4294901760, %v11771_v7 }
 0x51c   : > { %11149 = vmatprep.mubr.f32.mxu0 %v31015_v0  ;;  %29496 = vmatprep.mubr.msk.f32.mxu1 %vm31016_vm0, %v31015_v0 }
 0x51d   : > { %29499 = vmatprep.subr.mxu1 %v31015_v0 }
 0x521   : > { %11151 = vmatmul.mubr.f32.vlgmr.msra.gmra.mrb[2].mxu0 %v32172_v20 }
 0x522   : > { %11160 = vmatpush1.msra.mxu0 %v32174_v21  ;;  %29497 = vmatmul.mubr.f32.vlgmr.msra.gmra.mrb[2].mxu1 %v32172_v20  ;;  %v12623_v21 = vsel %vm8810_vm13, %v31999_v49, 0  ;;  %v12710_v49 = vsub.f32 %v12619_v47, %v32290_v23 }
 0x523   : > { %29500 = vmatpush3.msra.mxu1 %v32176_v22  ;;  %11702 = vmatprep.subr.mxu0 %v32217_v45  ;;  %v32288_v22 = vand.u32 4294901760, %v12617_v17  ;;  %v32293_v24 = vand.u32 4294901760, %v12623_v21 }
 0x524   : > { %11223 = vmatprep.mubr.f32.mxu0 %v31015_v0  ;;  %29501 = vmatprep.mubr.msk.f32.mxu1 %vm31016_vm0, %v31015_v0  ;;  %v12711_v29 = vand.u32 4294901760, %v12710_v49 }
 0x525   : > { %29504 = vmatprep.subr.mxu1 %v31015_v0  ;;  %v12693_v46 = vsub.f32 %v12617_v17, %v32288_v22  ;;  %v13168_v26 = vsub.f32 %v12623_v21, %v32293_v24 }
 0x526   : > { %v12712_v32 = vsub.f32 %v12710_v49, %v12711_v29 }
 0x527   : > { %v12694_v28 = vand.u32 4294901760, %v12693_v46  ;;  %v13169_v30 = vand.u32 4294901760, %v13168_v26 }
 0x528   : > { %v12713_v37 = vand.u32 4294901760, %v12712_v32 }
 0x529   : > { %11225 = vmatmul.mubr.f32.vlgmr.msra.gmra.mrb[2].mxu0 %v32172_v20  ;;  %v12695_v31 = vsub.f32 %v12693_v46, %v12694_v28  ;;  %v13170_v33 = vsub.f32 %v13168_v26, %v13169_v30 }
 0x52a   : > { %29502 = vmatmul.mubr.f32.vlgmr.msra.gmra.mrb[2].mxu1 %v32172_v20  ;;  %11704 = vmatpush1.msra.mxu0 %v32232_v57  ;;  %v12704_v20 = vsub.f32 %v12621_v16, %v32275_v18  ;;  %v14483_v16 = vpop.permute.xlu1 %14482 }
 0x52b   : > { %29505 = vmatpush3.msra.mxu1 %v32234_v61  ;;  %11784 = vmatprep.subr.mxu0 %v11783_v6  ;;  %v12696_v9 = vand.u32 4294901760, %v12695_v31  ;;  %v13171_v38 = vand.u32 4294901760, %v13170_v33 }
 0x52c   : > { %11767 = vmatprep.mubr.f32.mxu0 %v31015_v0  ;;  %29506 = vmatprep.mubr.msk.f32.mxu1 %vm31016_vm0, %v31015_v0  ;;  %v12705_v25 = vand.u32 4294901760, %v12704_v20 }
 0x52d   : > { %29509 = vmatprep.subr.mxu1 %v31015_v0 }
 0x52e   : > { %v12706_v27 = vsub.f32 %v12704_v20, %v12705_v25 }
 0x530   : > { %v12707_v11 = vand.u32 4294901760, %v12706_v27 }
 0x531   : > { %11773 = vmatmul.mubr.f32.vlgmr.msra.gmra.mrb[2].mxu0 %v11772_v14 }
 0x532   : > { %11790 = vmatpush1.msra.mxu0 %v11789_v15  ;;  %29507 = vmatmul.mubr.f32.vlgmr.msra.gmra.mrb[2].mxu1 %v11772_v14 }
 0x533   : > { %29510 = vmatpush3.msra.mxu1 %v12247_v12  ;;  %11863 = vmatprep.subr.mxu0 %v11780_v52 }
 0x534   : > { %11853 = vmatprep.mubr.f32.mxu0 %v31015_v0  ;;  %29511 = vmatprep.mubr.msk.f32.mxu1 %vm31016_vm0, %v31015_v0 }
 0x535   : > { %29514 = vmatprep.subr.mxu1 %v31015_v0 }
 0x539   : > { %11855 = vmatmul.mubr.f32.vlgmr.msra.gmra.mrb[2].mxu0 %v32230_v55 }
 0x53a   : > { %11866 = vmatpush1.msra.mxu0 %v11786_v1  ;;  %29512 = vmatmul.mubr.f32.vlgmr.msra.gmra.mrb[2].mxu1 %v32230_v55 }
 0x53b   : > { %29515 = vmatpush3.msra.mxu1 %v12244_v2  ;;  %11939 = vmatprep.subr.mxu0 %v32217_v45 }
 0x53c   : > { %11929 = vmatprep.mubr.f32.mxu0 %v31015_v0  ;;  %29516 = vmatprep.mubr.msk.f32.mxu1 %vm31016_vm0, %v31015_v0 }
 0x53d   : > { %29519 = vmatprep.subr.mxu1 %v31015_v0 }
 0x541   : > { %11932 = vmatmul.mubr.f32.vlgmr.msra.gmra.mrb[2].mxu0 %v11769_v63 }
 0x542   : > { %11941 = vmatpush1.msra.mxu0 %v32232_v57  ;;  %29517 = vmatmul.mubr.f32.vlgmr.msra.gmra.mrb[2].mxu1 %v11769_v63 }
 0x543   : > { %29520 = vmatpush3.msra.mxu1 %v32234_v61  ;;  %12017 = vmatprep.subr.mxu0 %v11781_v62 }
 0x544   : > { %12004 = vmatprep.mubr.f32.mxu0 %v31015_v0  ;;  %29521 = vmatprep.mubr.msk.f32.mxu1 %vm31016_vm0, %v31015_v0 }
 0x545   : > { %29524 = vmatprep.subr.mxu1 %v31015_v0 }
 0x549   : > { %12008 = vmatmul.mubr.f32.vlgmr.msra.gmra.mrb[2].mxu0 %v11770_v56 }
 0x54a   : > { %12021 = vmatpush1.msra.mxu0 %v11787_v4  ;;  %29522 = vmatmul.mubr.f32.vlgmr.msra.gmra.mrb[2].mxu1 %v11770_v56 }
 0x54b   : > { %29525 = vmatpush3.msra.mxu1 %v12245_v5  ;;  %12093 = vmatprep.subr.mxu0 %v32217_v45  ;;  %v32333_v45 = vand.u32 4294901760, %v13564_v13 }
 0x54c   : > { %12084 = vmatprep.mubr.f32.mxu0 %v31015_v0  ;;  %29526 = vmatprep.mubr.msk.f32.mxu1 %vm31016_vm0, %v31015_v0 }
 0x54d   : > { %29529 = vmatprep.subr.mxu1 %v31015_v0  ;;  %v13647_v52 = vsub.f32 %v13564_v13, %v32333_v45 }
 0x54f   : > { %v13648_v62 = vand.u32 4294901760, %v13647_v52 }
 0x551   : > { %12086 = vmatmul.mubr.f32.vlgmr.msra.gmra.mrb[2].mxu0 %v32230_v55  ;;  %v13649_v3 = vsub.f32 %v13647_v52, %v13648_v62 }
 0x552   : > { %12095 = vmatpush1.msra.mxu0 %v32232_v57  ;;  %29527 = vmatmul.mubr.f32.vlgmr.msra.gmra.mrb[2].mxu1 %v32230_v55  ;;  %v32348_v57 = vand.u32 4294901760, %v13562_v53 }
 0x553   : > { %29530 = vmatpush3.msra.mxu1 %v32234_v61  ;;  %12626 = vmatprep.subr.mxu0 %v32275_v18  ;;  %v32350_v61 = vand.u32 4294901760, %v13566_v54  ;;  %v13650_v6 = vand.u32 4294901760, %v13649_v3 }
 0x554   : > { %12158 = vmatprep.mubr.f32.mxu0 %v31015_v0  ;;  %29531 = vmatprep.mubr.msk.f32.mxu1 %vm31016_vm0, %v31015_v0  ;;  %v13653_v1 = vsub.f32 %v13562_v53, %v32348_v57 }
 0x555   : > { %29534 = vmatprep.subr.mxu1 %v31015_v0  ;;  %v14111_v2 = vsub.f32 %v13566_v54, %v32350_v61 }
 0x556   : > { %v13654_v4 = vand.u32 4294901760, %v13653_v1 }
 0x557   : > { %v14112_v5 = vand.u32 4294901760, %v14111_v2 }
 0x558   : > { %v13655_v8 = vsub.f32 %v13653_v1, %v13654_v4 }
 0x559   : > { %12160 = vmatmul.mubr.f32.vlgmr.msra.gmra.mrb[2].mxu0 %v32230_v55  ;;  %v14113_v10 = vsub.f32 %v14111_v2, %v14112_v5 }
 0x55a   : > { %29532 = vmatmul.mubr.f32.vlgmr.msra.gmra.mrb[2].mxu1 %v32230_v55  ;;  %12628 = vmatpush1.msra.mxu0 %v32290_v23  ;;  %v32346_v55 = vand.u32 4294901760, %v13560_v51  ;;  %v13656_v15 = vand.u32 4294901760, %v13655_v8 }
 0x55b   : > { %29535 = vmatpush3.msra.mxu1 %v32293_v24  ;;  %12708 = vmatprep.subr.mxu0 %v12707_v11  ;;  %v14114_v12 = vand.u32 4294901760, %v14113_v10 }
 0x55c   : > { %12691 = vmatprep.mubr.f32.mxu0 %v31015_v0  ;;  %29536 = vmatprep.mubr.msk.f32.mxu1 %vm31016_vm0, %v31015_v0  ;;  %v13636_v63 = vsub.f32 %v13560_v51, %v32346_v55 }
 0x55d   : > { %29539 = vmatprep.subr.mxu1 %v31015_v0 }
 0x55e   : > { %v13637_v56 = vand.u32 4294901760, %v13636_v63 }
 0x560   : > { %v13638_v7 = vsub.f32 %v13636_v63, %v13637_v56 }
 0x561   : > { %12697 = vmatmul.mubr.f32.vlgmr.msra.gmra.mrb[2].mxu0 %v12696_v9 }
 0x562   : > { %12714 = vmatpush1.msra.mxu0 %v12713_v37  ;;  %29537 = vmatmul.mubr.f32.vlgmr.msra.gmra.mrb[2].mxu1 %v12696_v9  ;;  %v13639_v14 = vand.u32 4294901760, %v13638_v7 }
 0x563   : > { %29540 = vmatpush3.msra.mxu1 %v13171_v38  ;;  %12787 = vmatprep.subr.mxu0 %v12704_v20  ;;  %v14485_v20 = vpop.permute.xlu0 %14484 }
 0x564   : > { %12777 = vmatprep.mubr.f32.mxu0 %v31015_v0  ;;  %29541 = vmatprep.mubr.msk.f32.mxu1 %vm31016_vm0, %v31015_v0 }
 0x565   : > { %29544 = vmatprep.subr.mxu1 %v31015_v0 }
 0x569   : > { %12779 = vmatmul.mubr.f32.vlgmr.msra.gmra.mrb[2].mxu0 %v32288_v22 }
 0x56a   : > { %12790 = vmatpush1.msra.mxu0 %v12710_v49  ;;  %29542 = vmatmul.mubr.f32.vlgmr.msra.gmra.mrb[2].mxu1 %v32288_v22 }
 0x56b   : > { %29545 = vmatpush3.msra.mxu1 %v13168_v26  ;;  %12863 = vmatprep.subr.mxu0 %v32275_v18 }
 0x56c   : > { %12853 = vmatprep.mubr.f32.mxu0 %v31015_v0  ;;  %29546 = vmatprep.mubr.msk.f32.mxu1 %vm31016_vm0, %v31015_v0 }
 0x56d   : > { %29549 = vmatprep.subr.mxu1 %v31015_v0 }
 0x571   : > { %12856 = vmatmul.mubr.f32.vlgmr.msra.gmra.mrb[2].mxu0 %v12693_v46 }
 0x572   : > { %12865 = vmatpush1.msra.mxu0 %v32290_v23  ;;  %29547 = vmatmul.mubr.f32.vlgmr.msra.gmra.mrb[2].mxu1 %v12693_v46 }
 0x573   : > { %29550 = vmatpush3.msra.mxu1 %v32293_v24  ;;  %12941 = vmatprep.subr.mxu0 %v12705_v25  ;;  %v14495_v25 = vsel %vm8895_vm1, %v14483_v16, 0 }
 0x574   : > { %12928 = vmatprep.mubr.f32.mxu0 %v31015_v0  ;;  %29551 = vmatprep.mubr.msk.f32.mxu1 %vm31016_vm0, %v31015_v0  ;;  %v32404_v27 = vand.u32 4294901760, %v14495_v25 }
 0x575   : > { %29554 = vmatprep.subr.mxu1 %v31015_v0 }
 0x579   : > { %12932 = vmatmul.mubr.f32.vlgmr.msra.gmra.mrb[2].mxu0 %v12694_v28 }
 0x57a   : > { %12945 = vmatpush1.msra.mxu0 %v12711_v29  ;;  %29552 = vmatmul.mubr.f32.vlgmr.msra.gmra.mrb[2].mxu1 %v12694_v28 }
 0x57b   : > { %29555 = vmatpush3.msra.mxu1 %v13169_v30  ;;  %13017 = vmatprep.subr.mxu0 %v32275_v18  ;;  %v14489_v18 = vpop.permute.xlu1 %14488  ;;  %v14571_v30 = vsub.f32 %v14495_v25, %v32404_v27 }
 0x57c   : > { %13008 = vmatprep.mubr.f32.mxu0 %v31015_v0  ;;  %29556 = vmatprep.mubr.msk.f32.mxu1 %vm31016_vm0, %v31015_v0  ;;  %v14493_v17 = vsel %vm5977_vm8, %v14487_v19, %v14489_v18 }
 0x57d   : > { %29559 = vmatprep.subr.mxu1 %v31015_v0  ;;  %v14499_v47 = vsel %vm8810_vm13, %v14493_v17, 0  ;;  %v14572_v9 = vand.u32 4294901760, %v14571_v30 }
 0x57f   : > { %v14491_v21 = vpop.permute.xlu1 %14490  ;;  %v14573_v40 = vsub.f32 %v14571_v30, %v14572_v9 }
 0x581   : > { %13010 = vmatmul.mubr.f32.vlgmr.msra.gmra.mrb[2].mxu0 %v32288_v22  ;;  %v14574_v13 = vand.u32 4294901760, %v14573_v40 }
 0x582   : > { %13019 = vmatpush1.msra.mxu0 %v32290_v23  ;;  %29557 = vmatmul.mubr.f32.vlgmr.msra.gmra.mrb[2].mxu1 %v32288_v22  ;;  %v14492_v23 = vsel %vm5977_vm8, %v14485_v20, %v14487_v19 }
 0x583   : > { %29560 = vmatpush3.msra.mxu1 %v32293_v24  ;;  %13569 = vmatprep.subr.mxu0 %v32333_v45  ;;  %v14494_v24 = vsel %vm5977_vm8, %v14489_v18, %v14491_v21  ;;  %v14497_v49 = vsel %vm8810_vm13, %v14492_v23, 0  ;;  %v15422_v48 = vpop.permute.xlu1 %15421 }
 0x584   : > { %13082 = vmatprep.mubr.f32.mxu0 %v31015_v0  ;;  %29561 = vmatprep.mubr.msk.f32.mxu1 %vm31016_vm0, %v31015_v0  ;;  %v14501_v26 = vsel %vm8810_vm13, %v14494_v24, 0  ;;  %v32406_v28 = vand.u32 4294901760, %v14497_v49 }
 0x585   : > { %29564 = vmatprep.subr.mxu1 %v31015_v0  ;;  %v32408_v29 = vand.u32 4294901760, %v14501_v26 }
 0x586   : > { %v14588_v31 = vsub.f32 %v14497_v49, %v32406_v28 }
 0x587   : > { %v15046_v32 = vsub.f32 %v14501_v26, %v32408_v29  ;;  %v15420_v53 = vpop.permute.xlu1 %15419 }
 0x588   : > { %v14589_v37 = vand.u32 4294901760, %v14588_v31 }
 0x589   : > { %13084 = vmatmul.mubr.f32.vlgmr.msra.gmra.mrb[2].mxu0 %v32288_v22  ;;  %v15047_v38 = vand.u32 4294901760, %v15046_v32 }
 0x58a   : > { %29562 = vmatmul.mubr.f32.vlgmr.msra.gmra.mrb[2].mxu1 %v32288_v22  ;;  %13571 = vmatpush1.msra.mxu0 %v32348_v57  ;;  %v32391_v22 = vand.u32 4294901760, %v14499_v47  ;;  %v14590_v41 = vsub.f32 %v14588_v31, %v14589_v37 }
 0x58b   : > { %29565 = vmatpush3.msra.mxu1 %v32350_v61  ;;  %13651 = vmatprep.subr.mxu0 %v13650_v6  ;;  %v15048_v42 = vsub.f32 %v15046_v32, %v15047_v38 }
 0x58c   : > { %13634 = vmatprep.mubr.f32.mxu0 %v31015_v0  ;;  %29566 = vmatprep.mubr.msk.f32.mxu1 %vm31016_vm0, %v31015_v0  ;;  %v14582_v46 = vsub.f32 %v14499_v47, %v32391_v22  ;;  %v14591_v43 = vand.u32 4294901760, %v14590_v41 }
 0x58d   : > { %29569 = vmatprep.subr.mxu1 %v31015_v0  ;;  %v15049_v44 = vand.u32 4294901760, %v15048_v42 }
 0x58e   : > { %v14583_v11 = vand.u32 4294901760, %v14582_v46 }
 0x590   : > { %v14584_v33 = vsub.f32 %v14582_v46, %v14583_v11 }
 0x591   : > { %13640 = vmatmul.mubr.f32.vlgmr.msra.gmra.mrb[2].mxu0 %v13639_v14 }
 0x592   : > { %13657 = vmatpush1.msra.mxu0 %v13656_v15  ;;  %29567 = vmatmul.mubr.f32.vlgmr.msra.gmra.mrb[2].mxu1 %v13639_v14  ;;  %v14585_v39 = vand.u32 4294901760, %v14584_v33 }
 0x593   : > { %29570 = vmatpush3.msra.mxu1 %v14114_v12  ;;  %13730 = vmatprep.subr.mxu0 %v13647_v52 }
 0x594   : > { %13720 = vmatprep.mubr.f32.mxu0 %v31015_v0  ;;  %29571 = vmatprep.mubr.msk.f32.mxu1 %vm31016_vm0, %v31015_v0 }
 0x595   : > { %29574 = vmatprep.subr.mxu1 %v31015_v0 }
 0x599   : > { %13722 = vmatmul.mubr.f32.vlgmr.msra.gmra.mrb[2].mxu0 %v32346_v55 }
 0x59a   : > { %13733 = vmatpush1.msra.mxu0 %v13653_v1  ;;  %29572 = vmatmul.mubr.f32.vlgmr.msra.gmra.mrb[2].mxu1 %v32346_v55 }
 0x59b   : > { %29575 = vmatpush3.msra.mxu1 %v14111_v2  ;;  %13806 = vmatprep.subr.mxu0 %v32333_v45 }
 0x59c   : > { %13796 = vmatprep.mubr.f32.mxu0 %v31015_v0  ;;  %29576 = vmatprep.mubr.msk.f32.mxu1 %vm31016_vm0, %v31015_v0 }
 0x59d   : > { %29579 = vmatprep.subr.mxu1 %v31015_v0 }
 0x5a1   : > { %13799 = vmatmul.mubr.f32.vlgmr.msra.gmra.mrb[2].mxu0 %v13636_v63 }
 0x5a2   : > { %13808 = vmatpush1.msra.mxu0 %v32348_v57  ;;  %29577 = vmatmul.mubr.f32.vlgmr.msra.gmra.mrb[2].mxu1 %v13636_v63 }
 0x5a3   : > { %29580 = vmatpush3.msra.mxu1 %v32350_v61  ;;  %13884 = vmatprep.subr.mxu0 %v13648_v62 }
 0x5a4   : > { %13871 = vmatprep.mubr.f32.mxu0 %v31015_v0  ;;  %29581 = vmatprep.mubr.msk.f32.mxu1 %vm31016_vm0, %v31015_v0 }
 0x5a5   : > { %29584 = vmatprep.subr.mxu1 %v31015_v0 }
 0x5a9   : > { %13875 = vmatmul.mubr.f32.vlgmr.msra.gmra.mrb[2].mxu0 %v13637_v56 }
 0x5aa   : > { %13888 = vmatpush1.msra.mxu0 %v13654_v4  ;;  %29582 = vmatmul.mubr.f32.vlgmr.msra.gmra.mrb[2].mxu1 %v13637_v56 }
 0x5ab   : > { %29585 = vmatpush3.msra.mxu1 %v14112_v5  ;;  %13960 = vmatprep.subr.mxu0 %v32333_v45  ;;  %v15418_v45 = vpop.permute.xlu0 %15417 }
 0x5ac   : > { %13951 = vmatprep.mubr.f32.mxu0 %v31015_v0  ;;  %29586 = vmatprep.mubr.msk.f32.mxu1 %vm31016_vm0, %v31015_v0  ;;  %v15430_v62 = vsel %vm8895_vm1, %v15418_v45, 0 }
 0x5ad   : > { %29589 = vmatprep.subr.mxu1 %v31015_v0  ;;  %v32462_v3 = vand.u32 4294901760, %v15430_v62 }
 0x5af   : > { %v15424_v50 = vpop.permute.xlu0 %15423  ;;  %v15506_v6 = vsub.f32 %v15430_v62, %v32462_v3 }
 0x5b0   : > { %v15428_v51 = vsel %vm6921_vm9, %v15422_v48, %v15424_v50 }
 0x5b1   : > { %13953 = vmatmul.mubr.f32.vlgmr.msra.gmra.mrb[2].mxu0 %v32346_v55  ;;  %v15434_v52 = vsel %vm8810_vm13, %v15428_v51, 0  ;;  %v15507_v14 = vand.u32 4294901760, %v15506_v6 }
 0x5b2   : > { %13962 = vmatpush1.msra.mxu0 %v32348_v57  ;;  %29587 = vmatmul.mubr.f32.vlgmr.msra.gmra.mrb[2].mxu1 %v32346_v55  ;;  %v15427_v57 = vsel %vm6921_vm9, %v15420_v53, %v15422_v48 }
 0x5b3   : > { %29590 = vmatpush3.msra.mxu1 %v32350_v61  ;;  %14504 = vmatprep.subr.mxu0 %v32391_v22  ;;  %v15426_v54 = vpop.permute.xlu0 %15425  ;;  %v15432_v1 = vsel %vm8810_vm13, %v15427_v57, 0  ;;  %v15508_v18 = vsub.f32 %v15506_v6, %v15507_v14 }
 0x5b4   : > { %14025 = vmatprep.mubr.f32.mxu0 %v31015_v0  ;;  %29591 = vmatprep.mubr.msk.f32.mxu1 %vm31016_vm0, %v31015_v0  ;;  %v15429_v61 = vsel %vm6921_vm9, %v15424_v50, %v15426_v54  ;;  %v32464_v56 = vand.u32 4294901760, %v15432_v1 }
 0x5b5   : > { %29594 = vmatprep.subr.mxu1 %v31015_v0  ;;  %v15436_v2 = vsel %vm8810_vm13, %v15429_v61, 0  ;;  %v15509_v47 = vand.u32 4294901760, %v15508_v18 }
 0x5b6   : > { %v32466_v4 = vand.u32 4294901760, %v15436_v2  ;;  %v15523_v7 = vsub.f32 %v15432_v1, %v32464_v56 }
 0x5b7   : > { %v16357_v24 = vpop.permute.xlu0 %16356 }
 0x5b8   : > { %v15981_v8 = vsub.f32 %v15436_v2, %v32466_v4  ;;  %v15524_v15 = vand.u32 4294901760, %v15523_v7 }
 0x5b9   : > { %14027 = vmatmul.mubr.f32.vlgmr.msra.gmra.mrb[2].mxu0 %v32346_v55 }
 0x5ba   : > { %29592 = vmatmul.mubr.f32.vlgmr.msra.gmra.mrb[2].mxu1 %v32346_v55  ;;  %14506 = vmatpush1.msra.mxu0 %v32406_v28  ;;  %v32449_v55 = vand.u32 4294901760, %v15434_v52  ;;  %v15982_v12 = vand.u32 4294901760, %v15981_v8  ;;  %v15525_v19 = vsub.f32 %v15523_v7, %v15524_v15 }
 0x5bb   : > { %29595 = vmatpush3.msra.mxu1 %v32408_v29  ;;  %14586 = vmatprep.subr.mxu0 %v14585_v39  ;;  %v16355_v49 = vpop.permute.xlu0 %16354 }
 0x5bc   : > { %14569 = vmatprep.mubr.f32.mxu0 %v31015_v0  ;;  %29596 = vmatprep.mubr.msk.f32.mxu1 %vm31016_vm0, %v31015_v0  ;;  %v15517_v63 = vsub.f32 %v15434_v52, %v32449_v55  ;;  %v15983_v17 = vsub.f32 %v15981_v8, %v15982_v12  ;;  %v15526_v20 = vand.u32 4294901760, %v15525_v19  ;;  %v32596_v19 = vld [vmem:[%s33454_s4] sm:$0x3f] }
 0x5bd   : > { %29599 = vmatprep.subr.mxu1 %v31015_v0 }
 0x5be   : > { %v15518_v5 = vand.u32 4294901760, %v15517_v63  ;;  %v15984_v21 = vand.u32 4294901760, %v15983_v17 }
 0x5c0   : > { %v15519_v10 = vsub.f32 %v15517_v63, %v15518_v5 }
 0x5c1   : > { %14575 = vmatmul.mubr.f32.vlgmr.msra.gmra.mrb[2].mxu0 %v14574_v13 }
 0x5c2   : > { %14592 = vmatpush1.msra.mxu0 %v14591_v43  ;;  %29597 = vmatmul.mubr.f32.vlgmr.msra.gmra.mrb[2].mxu1 %v14574_v13  ;;  %v15520_v16 = vand.u32 4294901760, %v15519_v10 }
 0x5c3   : > { %29600 = vmatpush3.msra.mxu1 %v15049_v44  ;;  %14665 = vmatprep.subr.mxu0 %v14582_v46 }
 0x5c4   : > { %14655 = vmatprep.mubr.f32.mxu0 %v31015_v0  ;;  %29601 = vmatprep.mubr.msk.f32.mxu1 %vm31016_vm0, %v31015_v0 }
 0x5c5   : > { %29604 = vmatprep.subr.mxu1 %v31015_v0 }
 0x5c9   : > { %14657 = vmatmul.mubr.f32.vlgmr.msra.gmra.mrb[2].mxu0 %v32404_v27 }
 0x5ca   : > { %14668 = vmatpush1.msra.mxu0 %v14588_v31  ;;  %29602 = vmatmul.mubr.f32.vlgmr.msra.gmra.mrb[2].mxu1 %v32404_v27 }
 0x5cb   : > { %29605 = vmatpush3.msra.mxu1 %v15046_v32  ;;  %14741 = vmatprep.subr.mxu0 %v32391_v22 }
 0x5cc   : > { %14731 = vmatprep.mubr.f32.mxu0 %v31015_v0  ;;  %29606 = vmatprep.mubr.msk.f32.mxu1 %vm31016_vm0, %v31015_v0 }
 0x5cd   : > { %29609 = vmatprep.subr.mxu1 %v31015_v0 }
 0x5d1   : > { %14734 = vmatmul.mubr.f32.vlgmr.msra.gmra.mrb[2].mxu0 %v14571_v30 }
 0x5d2   : > { %14743 = vmatpush1.msra.mxu0 %v32406_v28  ;;  %29607 = vmatmul.mubr.f32.vlgmr.msra.gmra.mrb[2].mxu1 %v14571_v30 }
 0x5d3   : > { %29610 = vmatpush3.msra.mxu1 %v32408_v29  ;;  %14819 = vmatprep.subr.mxu0 %v14583_v11 }
 0x5d4   : > { %14806 = vmatprep.mubr.f32.mxu0 %v31015_v0  ;;  %29611 = vmatprep.mubr.msk.f32.mxu1 %vm31016_vm0, %v31015_v0 }
 0x5d5   : > { %29614 = vmatprep.subr.mxu1 %v31015_v0 }
 0x5d9   : > { %14810 = vmatmul.mubr.f32.vlgmr.msra.gmra.mrb[2].mxu0 %v14572_v9 }
 0x5da   : > { %14823 = vmatpush1.msra.mxu0 %v14589_v37  ;;  %29612 = vmatmul.mubr.f32.vlgmr.msra.gmra.mrb[2].mxu1 %v14572_v9 }
 0x5db   : > { %29615 = vmatpush3.msra.mxu1 %v15047_v38  ;;  %14895 = vmatprep.subr.mxu0 %v32391_v22  ;;  %v16353_v22 = vpop.permute.xlu1 %16352 }
 0x5dc   : > { %14886 = vmatprep.mubr.f32.mxu0 %v31015_v0  ;;  %29616 = vmatprep.mubr.msk.f32.mxu1 %vm31016_vm0, %v31015_v0  ;;  %v16365_v11 = vsel %vm8895_vm1, %v16353_v22, 0 }
 0x5dd   : > { %29619 = vmatprep.subr.mxu1 %v31015_v0  ;;  %v32520_v33 = vand.u32 4294901760, %v16365_v11 }
 0x5df   : > { %v16359_v23 = vpop.permute.xlu1 %16358  ;;  %v16441_v39 = vsub.f32 %v16365_v11, %v32520_v33 }
 0x5e0   : > { %v16363_v25 = vsel %vm7865_vm10, %v16357_v24, %v16359_v23 }
 0x5e1   : > { %14888 = vmatmul.mubr.f32.vlgmr.msra.gmra.mrb[2].mxu0 %v32404_v27  ;;  %v16369_v46 = vsel %vm8810_vm13, %v16363_v25, 0  ;;  %v16442_v13 = vand.u32 4294901760, %v16441_v39 }
 0x5e2   : > { %14897 = vmatpush1.msra.mxu0 %v32406_v28  ;;  %29617 = vmatmul.mubr.f32.vlgmr.msra.gmra.mrb[2].mxu1 %v32404_v27  ;;  %v16362_v28 = vsel %vm7865_vm10, %v16355_v49, %v16357_v24 }
 0x5e3   : > { %29620 = vmatpush3.msra.mxu1 %v32408_v29  ;;  %15439 = vmatprep.subr.mxu0 %v32449_v55  ;;  %v16361_v26 = vpop.permute.xlu1 %16360  ;;  %v16367_v31 = vsel %vm8810_vm13, %v16362_v28, 0  ;;  %v16443_v48 = vsub.f32 %v16441_v39, %v16442_v13 }
 0x5e4   : > { %14960 = vmatprep.mubr.f32.mxu0 %v31015_v0  ;;  %29621 = vmatprep.mubr.msk.f32.mxu1 %vm31016_vm0, %v31015_v0  ;;  %v16364_v29 = vsel %vm7865_vm10, %v16359_v23, %v16361_v26  ;;  %v32522_v9 = vand.u32 4294901760, %v16367_v31 }
 0x5e5   : > { %29624 = vmatprep.subr.mxu1 %v31015_v0  ;;  %v16371_v32 = vsel %vm8810_vm13, %v16364_v29, 0  ;;  %v16444_v52 = vand.u32 4294901760, %v16443_v48  ;;  %vm33486_vm13 = vcmp.eq.s32.totalorder %v31960_v59, 1 }
 0x5e6   : > { %v32524_v37 = vand.u32 4294901760, %v16371_v32  ;;  %v16458_v40 = vsub.f32 %v16367_v31, %v32522_v9 }
 0x5e8   : > { %v16916_v41 = vsub.f32 %v16371_v32, %v32524_v37  ;;  %v16459_v43 = vand.u32 4294901760, %v16458_v40 }
 0x5e9   : > { %14962 = vmatmul.mubr.f32.vlgmr.msra.gmra.mrb[2].mxu0 %v32404_v27 }
 0x5ea   : > { %29622 = vmatmul.mubr.f32.vlgmr.msra.gmra.mrb[2].mxu1 %v32404_v27  ;;  %15441 = vmatpush1.msra.mxu0 %v32464_v56  ;;  %v32507_v27 = vand.u32 4294901760, %v16369_v46  ;;  %v16917_v44 = vand.u32 4294901760, %v16916_v41  ;;  %v16460_v50 = vsub.f32 %v16458_v40, %v16459_v43 }
 0x5eb   : > { %29625 = vmatpush3.msra.mxu1 %v32466_v4  ;;  %15521 = vmatprep.subr.mxu0 %v15520_v16 }
 0x5ec   : > { %15504 = vmatprep.mubr.f32.mxu0 %v31015_v0  ;;  %29626 = vmatprep.mubr.msk.f32.mxu1 %vm31016_vm0, %v31015_v0  ;;  %v16452_v30 = vsub.f32 %v16369_v46, %v32507_v27  ;;  %v16918_v51 = vsub.f32 %v16916_v41, %v16917_v44  ;;  %v16461_v53 = vand.u32 4294901760, %v16460_v50 }
 0x5ed   : > { %29629 = vmatprep.subr.mxu1 %v31015_v0 }
 0x5ee   : > { %v16453_v38 = vand.u32 4294901760, %v16452_v30  ;;  %v16919_v54 = vand.u32 4294901760, %v16918_v51 }
 0x5f0   : > { %v16454_v42 = vsub.f32 %v16452_v30, %v16453_v38 }
 0x5f1   : > { %15510 = vmatmul.mubr.f32.vlgmr.msra.gmra.mrb[2].mxu0 %v15509_v47 }
 0x5f2   : > { %15527 = vmatpush1.msra.mxu0 %v15526_v20  ;;  %29627 = vmatmul.mubr.f32.vlgmr.msra.gmra.mrb[2].mxu1 %v15509_v47  ;;  %v16455_v45 = vand.u32 4294901760, %v16454_v42 }
 0x5f3   : > { %29630 = vmatpush3.msra.mxu1 %v15984_v21  ;;  %15600 = vmatprep.subr.mxu0 %v15517_v63 }
 0x5f4   : > { %15590 = vmatprep.mubr.f32.mxu0 %v31015_v0  ;;  %29631 = vmatprep.mubr.msk.f32.mxu1 %vm31016_vm0, %v31015_v0 }
 0x5f5   : > { %29634 = vmatprep.subr.mxu1 %v31015_v0 }
 0x5f9   : > { %15592 = vmatmul.mubr.f32.vlgmr.msra.gmra.mrb[2].mxu0 %v32462_v3 }
 0x5fa   : > { %15603 = vmatpush1.msra.mxu0 %v15523_v7  ;;  %29632 = vmatmul.mubr.f32.vlgmr.msra.gmra.mrb[2].mxu1 %v32462_v3 }
 0x5fb   : > { %29635 = vmatpush3.msra.mxu1 %v15981_v8  ;;  %15676 = vmatprep.subr.mxu0 %v32449_v55 }
 0x5fc   : > { %15666 = vmatprep.mubr.f32.mxu0 %v31015_v0  ;;  %29636 = vmatprep.mubr.msk.f32.mxu1 %vm31016_vm0, %v31015_v0 }
 0x5fd   : > { %29639 = vmatprep.subr.mxu1 %v31015_v0 }
 0x601   : > { %15669 = vmatmul.mubr.f32.vlgmr.msra.gmra.mrb[2].mxu0 %v15506_v6 }
 0x602   : > { %15678 = vmatpush1.msra.mxu0 %v32464_v56  ;;  %29637 = vmatmul.mubr.f32.vlgmr.msra.gmra.mrb[2].mxu1 %v15506_v6 }
 0x603   : > { %29640 = vmatpush3.msra.mxu1 %v32466_v4  ;;  %15754 = vmatprep.subr.mxu0 %v15518_v5 }
 0x604   : > { %15741 = vmatprep.mubr.f32.mxu0 %v31015_v0  ;;  %29641 = vmatprep.mubr.msk.f32.mxu1 %vm31016_vm0, %v31015_v0 }
 0x605   : > { %29644 = vmatprep.subr.mxu1 %v31015_v0 }
 0x609   : > { %15745 = vmatmul.mubr.f32.vlgmr.msra.gmra.mrb[2].mxu0 %v15507_v14 }
 0x60a   : > { %15758 = vmatpush1.msra.mxu0 %v15524_v15  ;;  %29642 = vmatmul.mubr.f32.vlgmr.msra.gmra.mrb[2].mxu1 %v15507_v14 }
 0x60b   : > { %29645 = vmatpush3.msra.mxu1 %v15982_v12  ;;  %15830 = vmatprep.subr.mxu0 %v32449_v55 }
 0x60c   : > { %15821 = vmatprep.mubr.f32.mxu0 %v31015_v0  ;;  %29646 = vmatprep.mubr.msk.f32.mxu1 %vm31016_vm0, %v31015_v0 }
 0x60d   : > { %29649 = vmatprep.subr.mxu1 %v31015_v0 }
 0x611   : > { %15823 = vmatmul.mubr.f32.vlgmr.msra.gmra.mrb[2].mxu0 %v32462_v3 }
 0x612   : > { %15832 = vmatpush1.msra.mxu0 %v32464_v56  ;;  %29647 = vmatmul.mubr.f32.vlgmr.msra.gmra.mrb[2].mxu1 %v32462_v3 }
 0x613   : > { %29650 = vmatpush3.msra.mxu1 %v32466_v4  ;;  %16374 = vmatprep.subr.mxu0 %v32507_v27 }
 0x614   : > { %15895 = vmatprep.mubr.f32.mxu0 %v31015_v0  ;;  %29651 = vmatprep.mubr.msk.f32.mxu1 %vm31016_vm0, %v31015_v0 }
 0x615   : > { %29654 = vmatprep.subr.mxu1 %v31015_v0 }
 0x619   : > { %15897 = vmatmul.mubr.f32.vlgmr.msra.gmra.mrb[2].mxu0 %v32462_v3 }
 0x61a   : > { %29652 = vmatmul.mubr.f32.vlgmr.msra.gmra.mrb[2].mxu1 %v32462_v3  ;;  %16376 = vmatpush1.msra.mxu0 %v32522_v9 }
 0x61b   : > { %29655 = vmatpush3.msra.mxu1 %v32524_v37  ;;  %16456 = vmatprep.subr.mxu0 %v16455_v45 }
 0x61c   : > { %16439 = vmatprep.mubr.f32.mxu0 %v31015_v0  ;;  %29656 = vmatprep.mubr.msk.f32.mxu1 %vm31016_vm0, %v31015_v0 }
 0x61d   : > { %29659 = vmatprep.subr.mxu1 %v31015_v0 }
 0x621   : > { %16445 = vmatmul.mubr.f32.vlgmr.msra.gmra.mrb[2].mxu0 %v16444_v52 }
 0x622   : > { %16462 = vmatpush1.msra.mxu0 %v16461_v53  ;;  %29657 = vmatmul.mubr.f32.vlgmr.msra.gmra.mrb[2].mxu1 %v16444_v52 }
 0x623   : > { %29660 = vmatpush3.msra.mxu1 %v16919_v54  ;;  %16535 = vmatprep.subr.mxu0 %v16452_v30 }
 0x624   : > { %16525 = vmatprep.mubr.f32.mxu0 %v31015_v0  ;;  %29661 = vmatprep.mubr.msk.f32.mxu1 %vm31016_vm0, %v31015_v0 }
 0x625   : > { %29664 = vmatprep.subr.mxu1 %v31015_v0 }
 0x629   : > { %16527 = vmatmul.mubr.f32.vlgmr.msra.gmra.mrb[2].mxu0 %v32520_v33 }
 0x62a   : > { %16538 = vmatpush1.msra.mxu0 %v16458_v40  ;;  %29662 = vmatmul.mubr.f32.vlgmr.msra.gmra.mrb[2].mxu1 %v32520_v33 }
 0x62b   : > { %29665 = vmatpush3.msra.mxu1 %v16916_v41  ;;  %16611 = vmatprep.subr.mxu0 %v32507_v27 }
 0x62c   : > { %16601 = vmatprep.mubr.f32.mxu0 %v31015_v0  ;;  %29666 = vmatprep.mubr.msk.f32.mxu1 %vm31016_vm0, %v31015_v0 }
 0x62d   : > { %29669 = vmatprep.subr.mxu1 %v31015_v0 }
 0x631   : > { %16604 = vmatmul.mubr.f32.vlgmr.msra.gmra.mrb[2].mxu0 %v16441_v39 }
 0x632   : > { %16613 = vmatpush1.msra.mxu0 %v32522_v9  ;;  %29667 = vmatmul.mubr.f32.vlgmr.msra.gmra.mrb[2].mxu1 %v16441_v39 }
 0x633   : > { %29670 = vmatpush3.msra.mxu1 %v32524_v37  ;;  %16689 = vmatprep.subr.mxu0 %v16453_v38 }
 0x634   : > { %16676 = vmatprep.mubr.f32.mxu0 %v31015_v0  ;;  %29671 = vmatprep.mubr.msk.f32.mxu1 %vm31016_vm0, %v31015_v0 }
 0x635   : > { %29674 = vmatprep.subr.mxu1 %v31015_v0 }
 0x639   : > { %16680 = vmatmul.mubr.f32.vlgmr.msra.gmra.mrb[2].mxu0 %v16442_v13 }
 0x63a   : > { %16693 = vmatpush1.msra.mxu0 %v16459_v43  ;;  %29672 = vmatmul.mubr.f32.vlgmr.msra.gmra.mrb[2].mxu1 %v16442_v13 }
 0x63b   : > { %29675 = vmatpush3.msra.mxu1 %v16917_v44  ;;  %16765 = vmatprep.subr.mxu0 %v32507_v27  ;;  %v17345_v44 = vld [vmem:[#allocation2] sm:$0x3c] }
 0x63c   : > { %16756 = vmatprep.mubr.f32.mxu0 %v31015_v0  ;;  %29676 = vmatprep.mubr.msk.f32.mxu1 %vm31016_vm0, %v31015_v0  ;;  %v17356_v52 = vrot.slane %v17345_v44, 2 }
 0x63d   : > { %29679 = vmatprep.subr.mxu1 %v31015_v0 }
 0x641   : > { %16758 = vmatmul.mubr.f32.vlgmr.msra.gmra.mrb[2].mxu0 %v32520_v33 }
 0x642   : > { %16767 = vmatpush1.msra.mxu0 %v32522_v9  ;;  %29677 = vmatmul.mubr.f32.vlgmr.msra.gmra.mrb[2].mxu1 %v32520_v33 }
 0x643   : > { %29680 = vmatpush3.msra.mxu1 %v32524_v37  ;;  %16830 = vmatprep.mubr.f32.mxu0 %v31015_v0 }
 0x644   : > { %29681 = vmatprep.mubr.msk.f32.mxu1 %vm31016_vm0, %v31015_v0  ;;  %29684 = vmatprep.subr.mxu1 %v31015_v0 }
 0x649   : > { %16832 = vmatmul.mubr.f32.vlgmr.msra.gmra.mrb[2].mxu0 %v32520_v33 }
 0x64a   : > { %29682 = vmatmul.mubr.f32.vlgmr.msra.gmra.mrb[2].mxu1 %v32520_v33  ;;  %17445 = vmatprep.mubr.f32.mxu0 %v31015_v0 }
 0x64b   : > { %29686 = vmatprep.mubr.msk.f32.mxu1 %vm31016_vm0, %v31015_v0 }
 0x71c   : > { %v16833_v55 = vpop.f32.mrb[2].mxu0 }
 0x71d   : > { %v17287_v57 = vsel %vm8804_vm12, %v16833_v55, 0.0  ;;  %v17280_v61 = vpop.f32.mrb[2].mxu1  ;;  %v16835_v62 = vpop.f32.mrb[3].mxu0 }
 0x71e   : > { %v17290_v63 = vsel %vm347_vm3, %v17287_v57, 0.0  ;;  %v17297_v1 = vmul.f32 %v17287_v57, %v17287_v57  ;;  %v17289_v2 = vsel %vm8806_vm15, %v17280_v61, 0.0  ;;  %v17288_v3 = vsel %vm33486_vm13, %v16835_v62, 0.0  ;;  %v29683_v56 = vpop.f32.mrb[3].mxu1  ;;  %v22017_v61 = vld [vmem:[#allocation2 + $0x20] sm:$0x3c] }
 0x71f   : > { %v17299_v4 = vmul.f32 %v17289_v2, %v17289_v2  ;;  %v17291_v5 = vsel %vm347_vm3, %v17288_v3, 0.0  ;;  %v17298_v6 = vmul.f32 %v17288_v3, %v17288_v3  ;;  %v17293_v10 = vsel %vm347_vm3, %v17289_v2, 0.0 }
 0x720   : > { %v17292_v7 = vadd.f32 %v17291_v5, %v17290_v63  ;;  %v17300_v8 = vsel %vm347_vm3, %v17297_v1, 0.0  ;;  %v22027_v1 = vrot.slane %v22017_v61, 2  ;;  %vm33492_vm13 = vcmask 31744  }
 0x721   : > { %v17301_v14 = vsel %vm347_vm3, %v17298_v6, 0.0  ;;  %v17303_v16 = vsel %vm347_vm3, %v17299_v4, 0.0 }
 0x722   : > { %v17294_v15 = vadd.f32 %v17293_v10, %v17292_v7  ;;  %v17302_v12 = vadd.f32 %v17301_v14, %v17300_v8 }
 0x724   : > { %17295 = vadd.xlane.f32.xlu0 %v17294_v15  ;;  %v17304_v18 = vadd.f32 %v17303_v16, %v17302_v12 }
 0x726   : > { %17305 = vadd.xlane.f32.xlu1 %v17304_v18 }
 0x73a   : > { %17350 = vrot.lane.b32.xlu0 %v32596_v19, %s31018_s9  ;;  %s33488_s9 = smov 104  }
 0x7b1   : > { %v17296_v17 = vpop.xlane.xlu0 %17295 }
 0x7b2   : > { %v17307_v47 = vmul.f32 0.00390625, %v17296_v17 }
 0x7b3   : > { %v17306_v20 = vpop.xlane.xlu1 %17305 }
 0x7b4   : > { %v17308_v21 = vmul.f32 0.00390625, %v17306_v20  ;;  %v17309_v22 = vmul.f32 %v17307_v47, %v17307_v47  ;;  %v17314_v46 = vsub.f32 %v17287_v57, %v17307_v47  ;;  %v17315_v49 = vsub.f32 %v17288_v3, %v17307_v47 }
 0x7b5   : > { %v17316_v26 = vsub.f32 %v17289_v2, %v17307_v47  ;;  %v17351_v3 = vpop.permute.xlu0 %17350 }
 0x7b6   : > { %v17310_v23 = vsub.f32 %v17308_v21, %v17309_v22  ;;  %v17371_v56 = vsel %vm33492_vm13, %v17351_v3, 0 }
 0x7b7   : > { %v32668_v4 = vand.u32 4294901760, %v17371_v56 }
 0x7b8   : > { %v17311_v24 = vmax.f32 %v17310_v23, 0.0 }
 0x7b9   : > { %v17447_v5 = vsub.f32 %v17371_v56, %v32668_v4 }
 0x7ba   : > { %v17312_v25 = vadd.f32 1e-05, %v17311_v24 }
 0x7bb   : > { %v32671_v6 = vand.u32 4294901760, %v17447_v5 }
 0x7bc   : > { %30846 = vrsqrt.f32 %v17312_v25 }
 0x7bd   : > { %v17449_v16 = vsub.f32 %v17447_v5, %v32671_v6 }
 0x7bf   : > { %v17450_v25 = vand.u32 4294901760, %v17449_v16 }
 0x7c6   : > { %v30847_v27 = vpop.eup %30846 }
 0x7c7   : > { %v17317_v28 = vmul.f32 %v30847_v27, %v17314_v46  ;;  %v17318_v29 = vmul.f32 %v30847_v27, %v17315_v49  ;;  %v17319_v11 = vmul.f32 %v30847_v27, %v17316_v26 }
 0x7c9   : > { %vm17320_vm14 = vcmp.ge.f32.partialorder %v17317_v28, 0.0  ;;  %vm17321_vm11 = vcmp.ge.f32.partialorder %v17318_v29, 0.0  ;;  %vm17322_vm1 = vcmp.ge.f32.partialorder %v17319_v11, 0.0  ;;  %v17323_v30 = vmul.f32 0.1, %v17317_v28 }
 0x7ca   : > { %v17324_v31 = vmul.f32 0.1, %v17318_v29  ;;  %v17325_v32 = vmul.f32 0.1, %v17319_v11 }
 0x7cb   : > { %v17326_v33 = vsel %vm17320_vm14, %v17317_v28, %v17323_v30 }
 0x7cc   : > { %v17327_v9 = vsel %vm17321_vm11, %v17318_v29, %v17324_v31  ;;  %v17328_v37 = vsel %vm17322_vm1, %v17319_v11, %v17325_v32  ;;  %v17329_v38 = vmul.f32 %v17326_v33, %v31982_v34  ;;  %vm33501_vm11 = vcmp.eq.s32.totalorder %v31960_v59, 1 }
 0x7cd   : > { %v17330_v39 = vmul.f32 %v17327_v9, %v31984_v35  ;;  %v17331_v40 = vmul.f32 %v17328_v37, %v31986_v36  ;;  %vm25819_vm1 = vcmask 48128  }
 0x7ce   : > { %v17335_v41 = vrot.slane %v17329_v38, 6 }
 0x7cf   : > { %v17336_v42 = vrot.slane %v17330_v39, 6  ;;  %v17337_v13 = vrot.slane %v17331_v40, 6 }
 0x7d0   : > { %17341 = vst [vmem:[#allocation2 + $0x8] sm:$0x3c] %v17335_v41 }
 0x7d1   : > { %17342 = vst [vmem:[#allocation2 + $0x10] sm:$0x3c] %v17336_v42  ;;  %17343 = vst [vmem:[#allocation2 + $0x18] sm:$0x3c] %v17337_v13 }
 0x7d7   : > { %v17346_v43 = vld [vmem:[#allocation2 + $0x8] sm:$0x3c] }
 0x7d8   : > { %v17347_v45 = vld [vmem:[#allocation2 + $0x10] sm:$0x3c]  ;;  %v32603_v48 = vrot.slane %v17346_v43, 2  ;;  %v17348_v51 = vld [vmem:[#allocation2 + $0x18] sm:$0x3c] }
 0x7d9   : > { %v32605_v50 = vrot.slane %v17347_v45, 2  ;;  %v32611_v53 = vrot.slane %v17348_v51, 2  ;;  %v22015_v54 = vld [vmem:[#allocation2 + $0x10] sm:$0x3c]  ;;  %v22016_v55 = vld [vmem:[#allocation2 + $0x18] sm:$0x3c] }
 0x7da   : > { %17362 = vrot.lane.b32.xlu1 %v32603_v48, %s31017_s30  ;;  %v22025_v57 = vrot.slane %v22015_v54, 2  ;;  %v22026_v62 = vrot.slane %v22016_v55, 2  ;;  %v22014_v63 = vld [vmem:[#allocation2 + $0x8] sm:$0x3c] }
 0x7db   : > { %17364 = vrot.lane.b32.xlu0 %v32605_v50, %s31017_s30  ;;  %v22024_v2 = vrot.slane %v22014_v63, 2 }
 0x7de   : > { %17360 = vrot.lane.b32.xlu1 %v17356_v52, %s31017_s30 }
 0x7df   : > { %17366 = vrot.lane.b32.xlu0 %v32611_v53, %s31017_s30  ;;  %s33487_s30 = smov 108  }
 0x7e2   : > { %18292 = vrot.lane.b32.xlu1 %v32603_v48, %s31019_s21 }
 0x7e3   : > { %18294 = vrot.lane.b32.xlu0 %v32605_v50, %s31019_s21 }
 0x7e6   : > { %18290 = vrot.lane.b32.xlu1 %v17356_v52, %s31019_s21 }
 0x7e7   : > { %18296 = vrot.lane.b32.xlu0 %v32611_v53, %s31019_s21  ;;  %s33489_s21 = smov 100  }
 0x7ea   : > { %19220 = vrot.lane.b32.xlu1 %v32596_v19, %s31020_s22  ;;  %s33490_s22 = smov 110  }
 0x7eb   : > { %19224 = vrot.lane.b32.xlu0 %v32603_v48, %s31021_s11 }
 0x7ee   : > { %19226 = vrot.lane.b32.xlu1 %v32605_v50, %s31021_s11 }
 0x7ef   : > { %19222 = vrot.lane.b32.xlu0 %v17356_v52, %s31021_s11 }
 0x7f2   : > { %19228 = vrot.lane.b32.xlu1 %v32611_v53, %s31021_s11  ;;  %s33491_s11 = smov 96  }
 0x7f3   : > { %20155 = vrot.lane.b32.xlu0 %v32596_v19, %s31022_s29 }
 0x7f6   : > { %20159 = vrot.lane.b32.xlu1 %v32603_v48, %s31023_s16 }
 0x7f7   : > { %20161 = vrot.lane.b32.xlu0 %v32605_v50, %s31023_s16 }
 0x7fa   : > { %20157 = vrot.lane.b32.xlu1 %v17356_v52, %s31023_s16 }
 0x7fb   : > { %20163 = vrot.lane.b32.xlu0 %v32611_v53, %s31023_s16 }
 0x7fe   : > { %21090 = vrot.lane.b32.xlu1 %v32596_v19, %s31024_s18  ;;  %s33502_s18 = smov 122  }
 0x7ff   : > { %22018 = vrot.lane.b32.xlu0 %v32596_v19, %s33487_s30 }
 0x802   : > { %22030 = vrot.lane.b32.xlu1 %v22025_v57, %s31026_s23 }
 0x803   : > { %22032 = vrot.lane.b32.xlu0 %v22026_v62, %s31026_s23 }
 0x806   : > { %22028 = vrot.lane.b32.xlu1 %v22024_v2, %s31026_s23 }
 0x807   : > { %22034 = vrot.lane.b32.xlu0 %v22027_v1, %s31026_s23 }
 0x80a   : > { %22961 = vrot.lane.b32.xlu1 %v32596_v19, %s33488_s9 }
 0x80b   : > { %22965 = vrot.lane.b32.xlu0 %v22025_v57, %s31028_s12 }
 0x80e   : > { %22967 = vrot.lane.b32.xlu1 %v22026_v62, %s31028_s12 }
 0x80f   : > { %22963 = vrot.lane.b32.xlu0 %v22024_v2, %s31028_s12 }
 0x812   : > { %22969 = vrot.lane.b32.xlu1 %v22027_v1, %s31028_s12  ;;  %s30748_s12 = smul.u32 384, %s31100_s28  ;;  %s28669_s28 = scalar_lea.sflag [#allocation5], %s31244_s10 }
 0x813   : > { %23896 = vrot.lane.b32.xlu0 %v32596_v19, %s33489_s21 }
 0x814   : > { %s33406_s21 = scalar_lea.hbm %s33457_s7, %s30748_s12 }
 0x816   : > { %23900 = vrot.lane.b32.xlu1 %v22025_v57, %s33490_s22 }
 0x817   : > { %23902 = vrot.lane.b32.xlu0 %v22026_v62, %s33490_s22 }
 0x81a   : > { %23898 = vrot.lane.b32.xlu1 %v22024_v2, %s33490_s22 }
 0x81b   : > { %23904 = vrot.lane.b32.xlu0 %v22027_v1, %s33490_s22 }
 0x81e   : > { %24831 = vrot.lane.b32.xlu1 %v32596_v19, %s33491_s11  ;;  %s31038_s11 = smov [#allocation9]  }
 0x81f   : > { %24835 = vrot.lane.b32.xlu0 %v22025_v57, %s33485_s20  ;;  %s30944_s29 = sshll.u32 %s31038_s11, 4  ;;  %s30945_s29 = int_to_ptr.vmem [resolvable:$false] %s30944_s29 }
 0x820   : > { %s30946_s16 = scalar_lea.vmem %s30945_s29, 768 }
 0x822   : > { %24837 = vrot.lane.b32.xlu1 %v22026_v62, %s33485_s20 }
 0x823   : > { %24833 = vrot.lane.b32.xlu0 %v22024_v2, %s33485_s20 }
 0x826   : > { %24839 = vrot.lane.b32.xlu1 %v22027_v1, %s33485_s20 }
 0x84c   : > { %v17363_v7 = vpop.permute.xlu1 %17362 }
 0x84d   : > { %v17365_v8 = vpop.permute.xlu0 %17364 }
 0x84e   : > { %v17369_v10 = vsel %vm340_vm2, %v17363_v7, %v17365_v8 }
 0x84f   : > { %v17375_v14 = vsel %vm347_vm3, %v17369_v10, 0 }
 0x850   : > { %v32675_v15 = vand.u32 4294901760, %v17375_v14  ;;  %v17361_v12 = vpop.permute.xlu1 %17360 }
 0x851   : > { %v17368_v18 = vsel %vm340_vm2, %v17361_v12, %v17363_v7  ;;  %v17367_v17 = vpop.permute.xlu0 %17366 }
 0x852   : > { %v17458_v47 = vsub.f32 %v17375_v14, %v32675_v15  ;;  %v17373_v20 = vsel %vm347_vm3, %v17368_v18, 0  ;;  %v17370_v21 = vsel %vm340_vm2, %v17365_v8, %v17367_v17  ;;  %17380 = vmatprep.subr.mxu0 %v32675_v15  ;;  %vm33493_vm2 = vmmov %vm33492_vm13 }
 0x853   : > { %v32683_v22 = vand.u32 4294901760, %v17373_v20  ;;  %v17377_v23 = vsel %vm347_vm3, %v17370_v21, 0  ;;  %v18301_v43 = vsel %vm33493_vm2, %v32596_v19, 0  ;;  %vm33497_vm14 = vmmov %vm33493_vm2 }
 0x854   : > { %v32686_v24 = vand.u32 4294901760, %v17377_v23  ;;  %v17459_v46 = vand.u32 4294901760, %v17458_v47  ;;  %v18293_v9 = vpop.permute.xlu1 %18292  ;;  %v32727_v52 = vand.u32 4294901760, %v18301_v43 }
 0x855   : > { %v17464_v49 = vsub.f32 %v17373_v20, %v32683_v22  ;;  %17382 = vmatpush1.msra.mxu0 %v32683_v22  ;;  %v18295_v37 = vpop.permute.xlu0 %18294 }
 0x856   : > { %v17922_v26 = vsub.f32 %v17377_v23, %v32686_v24  ;;  %29685 = vmatpush3.msra.mxu1 %v32686_v24  ;;  %17451 = vmatmul.mubr.f32.vlgmr.msra.gmra.mrb[4].mxu0 %v17450_v25  ;;  %v17460_v27 = vsub.f32 %v17458_v47, %v17459_v46  ;;  %v18299_v38 = vsel %vm1273_vm4, %v18293_v9, %v18295_v37 }
 0x857   : > { %v17465_v28 = vand.u32 4294901760, %v17464_v49  ;;  %29687 = vmatmul.mubr.f32.vlgmr.msra.gmra.mrb[4].mxu1 %v17450_v25  ;;  %29689 = vmatprep.subr.mxu1 %v31015_v0  ;;  %v18305_v39 = vsel %vm347_vm3, %v18299_v38, 0  ;;  %v18377_v61 = vsub.f32 %v18301_v43, %v32727_v52 }
 0x858   : > { %v17923_v29 = vand.u32 4294901760, %v17922_v26  ;;  %v17461_v11 = vand.u32 4294901760, %v17460_v27  ;;  %17531 = vmatprep.mubr.f32.mxu0 %v31015_v0  ;;  %29691 = vmatprep.mubr.msk.f32.mxu1 %vm31016_vm0, %v31015_v0  ;;  %v18291_v40 = vpop.permute.xlu1 %18290  ;;  %v32712_v42 = vand.u32 4294901760, %v18305_v39 }
 0x859   : > { %v17466_v30 = vsub.f32 %v17464_v49, %v17465_v28  ;;  %v18297_v41 = vpop.permute.xlu0 %18296  ;;  %v18298_v13 = vsel %vm1273_vm4, %v18291_v40, %v18293_v9  ;;  %v18378_v2 = vand.u32 4294901760, %v18377_v61 }
 0x85a   : > { %17462 = vmatprep.subr.mxu0 %v17461_v11  ;;  %v17924_v31 = vsub.f32 %v17922_v26, %v17923_v29  ;;  %v18300_v44 = vsel %vm1273_vm4, %v18295_v37, %v18297_v41  ;;  %v18388_v45 = vsub.f32 %v18305_v39, %v32712_v42  ;;  %v18303_v51 = vsel %vm347_vm3, %v18298_v13, 0  ;;  %vm33494_vm4 = vmmov %vm33493_vm2 }
 0x85b   : > { %v17467_v32 = vand.u32 4294901760, %v17466_v30  ;;  %v18307_v19 = vsel %vm347_vm3, %v18300_v44, 0  ;;  %v32730_v54 = vand.u32 4294901760, %v18303_v51 }
 0x85c   : > { %v17925_v33 = vand.u32 4294901760, %v17924_v31  ;;  %v32732_v55 = vand.u32 4294901760, %v18307_v19  ;;  %v18389_v57 = vand.u32 4294901760, %v18388_v45 }
 0x85d   : > { %17468 = vmatpush1.msra.mxu0 %v17467_v32  ;;  %v18394_v62 = vsub.f32 %v18303_v51, %v32730_v54  ;;  %v19225_v16 = vpop.permute.xlu0 %19224 }
 0x85e   : > { %29690 = vmatpush3.msra.mxu1 %v17925_v33  ;;  %17533 = vmatmul.mubr.f32.vlgmr.msra.gmra.mrb[4].mxu0 %v32668_v4  ;;  %v18852_v63 = vsub.f32 %v18307_v19, %v32732_v55  ;;  %v18390_v1 = vsub.f32 %v18388_v45, %v18389_v57 }
 0x85f   : > { %17541 = vmatprep.subr.mxu0 %v17458_v47  ;;  %29692 = vmatmul.mubr.f32.vlgmr.msra.gmra.mrb[4].mxu1 %v32668_v4  ;;  %v18395_v3 = vand.u32 4294901760, %v18394_v62 }
 0x860   : > { %29694 = vmatprep.subr.mxu1 %v31015_v0  ;;  %17544 = vmatpush1.msra.mxu0 %v17464_v49  ;;  %v18853_v56 = vand.u32 4294901760, %v18852_v63 }
 0x861   : > { %29695 = vmatpush3.msra.mxu1 %v17922_v26  ;;  %17617 = vmatprep.subr.mxu0 %v32675_v15  ;;  %v18396_v7 = vsub.f32 %v18394_v62, %v18395_v3  ;;  %v19223_v47 = vpop.permute.xlu0 %19222 }
 0x862   : > { %17607 = vmatprep.mubr.f32.mxu0 %v31015_v0  ;;  %29696 = vmatprep.mubr.msk.f32.mxu1 %vm31016_vm0, %v31015_v0  ;;  %v18854_v10 = vsub.f32 %v18852_v63, %v18853_v56 }
 0x863   : > { %29699 = vmatprep.subr.mxu1 %v31015_v0  ;;  %v18397_v14 = vand.u32 4294901760, %v18396_v7 }
 0x865   : > { %v20156_v44 = vpop.permute.xlu0 %20155 }
 0x866   : > { %17610 = vmatmul.mubr.f32.vlgmr.msra.gmra.mrb[4].mxu0 %v17447_v5 }
 0x867   : > { %17619 = vmatpush1.msra.mxu0 %v32683_v22  ;;  %29697 = vmatmul.mubr.f32.vlgmr.msra.gmra.mrb[4].mxu1 %v17447_v5  ;;  %v18391_v5 = vand.u32 4294901760, %v18390_v1 }
 0x868   : > { %29700 = vmatpush3.msra.mxu1 %v32686_v24  ;;  %17695 = vmatprep.subr.mxu0 %v17459_v46 }
 0x869   : > { %17682 = vmatprep.mubr.f32.mxu0 %v31015_v0  ;;  %29701 = vmatprep.mubr.msk.f32.mxu1 %vm31016_vm0, %v31015_v0  ;;  %v20162_v51 = vpop.permute.xlu0 %20161 }
 0x86a   : > { %29704 = vmatprep.subr.mxu1 %v31015_v0 }
 0x86e   : > { %17686 = vmatmul.mubr.f32.vlgmr.msra.gmra.mrb[4].mxu0 %v32671_v6 }
 0x86f   : > { %17699 = vmatpush1.msra.mxu0 %v17465_v28  ;;  %29702 = vmatmul.mubr.f32.vlgmr.msra.gmra.mrb[4].mxu1 %v32671_v6  ;;  %v18379_v6 = vsub.f32 %v18377_v61, %v18378_v2 }
 0x870   : > { %29705 = vmatpush3.msra.mxu1 %v17923_v29  ;;  %17771 = vmatprep.subr.mxu0 %v32675_v15  ;;  %v18855_v15 = vand.u32 4294901760, %v18854_v10 }
 0x871   : > { %17762 = vmatprep.mubr.f32.mxu0 %v31015_v0  ;;  %29706 = vmatprep.mubr.msk.f32.mxu1 %vm31016_vm0, %v31015_v0  ;;  %v18380_v8 = vand.u32 4294901760, %v18379_v6 }
 0x872   : > { %29709 = vmatprep.subr.mxu1 %v31015_v0 }
 0x876   : > { %17764 = vmatmul.mubr.f32.vlgmr.msra.gmra.mrb[4].mxu0 %v32668_v4 }
 0x877   : > { %17773 = vmatpush1.msra.mxu0 %v32683_v22  ;;  %29707 = vmatmul.mubr.f32.vlgmr.msra.gmra.mrb[4].mxu1 %v32668_v4  ;;  %v19230_v22 = vsel %vm2214_vm5, %v19223_v47, %v19225_v16 }
 0x878   : > { %29710 = vmatpush3.msra.mxu1 %v32686_v24  ;;  %18310 = vmatprep.subr.mxu0 %v32712_v42  ;;  %v19235_v46 = vsel %vm347_vm3, %v19230_v22, 0 }
 0x879   : > { %17836 = vmatprep.mubr.f32.mxu0 %v31015_v0  ;;  %29711 = vmatprep.mubr.msk.f32.mxu1 %vm31016_vm0, %v31015_v0  ;;  %v32788_v27 = vand.u32 4294901760, %v19235_v46 }
 0x87a   : > { %29714 = vmatprep.subr.mxu1 %v31015_v0 }
 0x87b   : > { %v19326_v30 = vsub.f32 %v19235_v46, %v32788_v27 }
 0x87d   : > { %v19327_v9 = vand.u32 4294901760, %v19326_v30 }
 0x87e   : > { %17838 = vmatmul.mubr.f32.vlgmr.msra.gmra.mrb[4].mxu0 %v32668_v4 }
 0x87f   : > { %29712 = vmatmul.mubr.f32.vlgmr.msra.gmra.mrb[4].mxu1 %v32668_v4  ;;  %18312 = vmatpush1.msra.mxu0 %v32730_v54  ;;  %v19221_v4 = vpop.permute.xlu1 %19220  ;;  %v19328_v40 = vsub.f32 %v19326_v30, %v19327_v9 }
 0x880   : > { %29715 = vmatpush3.msra.mxu1 %v32732_v55  ;;  %18392 = vmatprep.subr.mxu0 %v18391_v5  ;;  %v19233_v24 = vsel %vm33494_vm4, %v19221_v4, 0 }
 0x881   : > { %18375 = vmatprep.mubr.f32.mxu0 %v31015_v0  ;;  %29716 = vmatprep.mubr.msk.f32.mxu1 %vm31016_vm0, %v31015_v0  ;;  %v32786_v26 = vand.u32 4294901760, %v19233_v24  ;;  %v19329_v13 = vand.u32 4294901760, %v19328_v40 }
 0x882   : > { %29719 = vmatprep.subr.mxu1 %v31015_v0 }
 0x883   : > { %v19227_v12 = vpop.permute.xlu1 %19226  ;;  %v19309_v11 = vsub.f32 %v19233_v24, %v32786_v26  ;;  %v21096_v24 = vsel %vm347_vm3, %v32605_v50, 0  ;;  %v21094_v50 = vsel %vm347_vm3, %v32603_v48, 0 }
 0x884   : > { %v19231_v18 = vsel %vm2214_vm5, %v19225_v16, %v19227_v12 }
 0x885   : > { %v19237_v17 = vsel %vm347_vm3, %v19231_v18, 0  ;;  %v19310_v33 = vand.u32 4294901760, %v19309_v11 }
 0x886   : > { %18381 = vmatmul.mubr.f32.vlgmr.msra.gmra.mrb[4].mxu0 %v18380_v8  ;;  %v32773_v21 = vand.u32 4294901760, %v19237_v17 }
 0x887   : > { %18398 = vmatpush1.msra.mxu0 %v18397_v14  ;;  %29717 = vmatmul.mubr.f32.vlgmr.msra.gmra.mrb[4].mxu1 %v18380_v8  ;;  %v19229_v20 = vpop.permute.xlu1 %19228  ;;  %v19311_v39 = vsub.f32 %v19309_v11, %v19310_v33 }
 0x888   : > { %29720 = vmatpush3.msra.mxu1 %v18855_v15  ;;  %18471 = vmatprep.subr.mxu0 %v18388_v45  ;;  %v19232_v23 = vsel %vm2214_vm5, %v19227_v12, %v19229_v20  ;;  %v19320_v25 = vsub.f32 %v19237_v17, %v32773_v21  ;;  %vm33495_vm5 = vmmov %vm33493_vm2 }
 0x889   : > { %18461 = vmatprep.mubr.f32.mxu0 %v31015_v0  ;;  %29721 = vmatprep.mubr.msk.f32.mxu1 %vm31016_vm0, %v31015_v0  ;;  %v19239_v49 = vsel %vm347_vm3, %v19232_v23, 0 }
 0x88a   : > { %29724 = vmatprep.subr.mxu1 %v31015_v0  ;;  %v32790_v28 = vand.u32 4294901760, %v19239_v49  ;;  %v19321_v29 = vand.u32 4294901760, %v19320_v25 }
 0x88b   : > { %v20160_v45 = vpop.permute.xlu1 %20159 }
 0x88c   : > { %v19784_v31 = vsub.f32 %v19239_v49, %v32790_v28  ;;  %v19322_v32 = vsub.f32 %v19320_v25, %v19321_v29 }
 0x88e   : > { %18463 = vmatmul.mubr.f32.vlgmr.msra.gmra.mrb[4].mxu0 %v32727_v52  ;;  %v19785_v37 = vand.u32 4294901760, %v19784_v31  ;;  %v19323_v38 = vand.u32 4294901760, %v19322_v32 }
 0x88f   : > { %18474 = vmatpush1.msra.mxu0 %v18394_v62  ;;  %29722 = vmatmul.mubr.f32.vlgmr.msra.gmra.mrb[4].mxu1 %v32727_v52 }
 0x890   : > { %29725 = vmatpush3.msra.mxu1 %v18852_v63  ;;  %18547 = vmatprep.subr.mxu0 %v32712_v42  ;;  %v19786_v41 = vsub.f32 %v19784_v31, %v19785_v37  ;;  %v20168_v63 = vsel %vm33495_vm5, %v20156_v44, 0 }
 0x891   : > { %18537 = vmatprep.mubr.f32.mxu0 %v31015_v0  ;;  %29726 = vmatprep.mubr.msk.f32.mxu1 %vm31016_vm0, %v31015_v0 }
 0x892   : > { %29729 = vmatprep.subr.mxu1 %v31015_v0  ;;  %v19787_v43 = vand.u32 4294901760, %v19786_v41 }
 0x896   : > { %18540 = vmatmul.mubr.f32.vlgmr.msra.gmra.mrb[4].mxu0 %v18377_v61 }
 0x897   : > { %18549 = vmatpush1.msra.mxu0 %v32730_v54  ;;  %29727 = vmatmul.mubr.f32.vlgmr.msra.gmra.mrb[4].mxu1 %v18377_v61 }
 0x898   : > { %29730 = vmatpush3.msra.mxu1 %v32732_v55  ;;  %18625 = vmatprep.subr.mxu0 %v18389_v57 }
 0x899   : > { %18612 = vmatprep.mubr.f32.mxu0 %v31015_v0  ;;  %29731 = vmatprep.mubr.msk.f32.mxu1 %vm31016_vm0, %v31015_v0 }
 0x89a   : > { %29734 = vmatprep.subr.mxu1 %v31015_v0 }
 0x89e   : > { %18616 = vmatmul.mubr.f32.vlgmr.msra.gmra.mrb[4].mxu0 %v18378_v2 }
 0x89f   : > { %18629 = vmatpush1.msra.mxu0 %v18395_v3  ;;  %29732 = vmatmul.mubr.f32.vlgmr.msra.gmra.mrb[4].mxu1 %v18378_v2 }
 0x8a0   : > { %29735 = vmatpush3.msra.mxu1 %v18853_v56  ;;  %18701 = vmatprep.subr.mxu0 %v32712_v42  ;;  %v19312_v42 = vand.u32 4294901760, %v19311_v39  ;;  %v32844_v56 = vand.u32 4294901760, %v20168_v63 }
 0x8a1   : > { %18692 = vmatprep.mubr.f32.mxu0 %v31015_v0  ;;  %29736 = vmatprep.mubr.msk.f32.mxu1 %vm31016_vm0, %v31015_v0 }
 0x8a2   : > { %29739 = vmatprep.subr.mxu1 %v31015_v0  ;;  %v20244_v8 = vsub.f32 %v20168_v63, %v32844_v56 }
 0x8a4   : > { %v20245_v4 = vand.u32 4294901760, %v20244_v8 }
 0x8a6   : > { %18694 = vmatmul.mubr.f32.vlgmr.msra.gmra.mrb[4].mxu0 %v32727_v52  ;;  %v20246_v17 = vsub.f32 %v20244_v8, %v20245_v4 }
 0x8a7   : > { %18703 = vmatpush1.msra.mxu0 %v32730_v54  ;;  %29737 = vmatmul.mubr.f32.vlgmr.msra.gmra.mrb[4].mxu1 %v32727_v52  ;;  %v20158_v54 = vpop.permute.xlu1 %20157 }
 0x8a8   : > { %29740 = vmatpush3.msra.mxu1 %v32732_v55  ;;  %19242 = vmatprep.subr.mxu0 %v32773_v21  ;;  %v20164_v55 = vpop.permute.xlu0 %20163  ;;  %v20165_v61 = vsel %vm3158_vm6, %v20158_v54, %v20160_v45 }
 0x8a9   : > { %18766 = vmatprep.mubr.f32.mxu0 %v31015_v0  ;;  %29741 = vmatprep.mubr.msk.f32.mxu1 %vm31016_vm0, %v31015_v0  ;;  %v20167_v62 = vsel %vm3158_vm6, %v20162_v51, %v20164_v55  ;;  %v20170_v2 = vsel %vm347_vm3, %v20165_v61, 0 }
 0x8aa   : > { %29744 = vmatprep.subr.mxu1 %v31015_v0  ;;  %v20174_v3 = vsel %vm347_vm3, %v20167_v62, 0  ;;  %v32846_v5 = vand.u32 4294901760, %v20170_v2 }
 0x8ab   : > { %v32848_v6 = vand.u32 4294901760, %v20174_v3  ;;  %v21091_v46 = vpop.permute.xlu1 %21090 }
 0x8ac   : > { %v20261_v10 = vsub.f32 %v20170_v2, %v32846_v5  ;;  %v22019_v44 = vpop.permute.xlu0 %22018 }
 0x8ad   : > { %v20719_v14 = vsub.f32 %v20174_v3, %v32848_v6  ;;  %v22039_v63 = vsel %vm33497_vm14, %v22019_v44, 0 }
 0x8ae   : > { %18768 = vmatmul.mubr.f32.vlgmr.msra.gmra.mrb[4].mxu0 %v32727_v52  ;;  %v20262_v12 = vand.u32 4294901760, %v20261_v10 }
 0x8af   : > { %29742 = vmatmul.mubr.f32.vlgmr.msra.gmra.mrb[4].mxu1 %v32727_v52  ;;  %19244 = vmatpush1.msra.mxu0 %v32788_v27  ;;  %v20166_v52 = vsel %vm3158_vm6, %v20160_v45, %v20162_v51  ;;  %v20720_v16 = vand.u32 4294901760, %v20719_v14  ;;  %vm33496_vm6 = vmmov %vm33493_vm2  ;;  %v22031_v45 = vpop.permute.xlu1 %22030 }
 0x8b0   : > { %29745 = vmatpush3.msra.mxu1 %v32790_v28  ;;  %19324 = vmatprep.subr.mxu0 %v19323_v38  ;;  %v20172_v19 = vsel %vm347_vm3, %v20166_v52, 0  ;;  %v20263_v47 = vsub.f32 %v20261_v10, %v20262_v12  ;;  %v21092_v49 = vsel %vm33496_vm6, %v21091_v46, 0  ;;  %v22033_v51 = vpop.permute.xlu0 %22032 }
 0x8b1   : > { %19307 = vmatprep.mubr.f32.mxu0 %v31015_v0  ;;  %29746 = vmatprep.mubr.msk.f32.mxu1 %vm31016_vm0, %v31015_v0  ;;  %v32831_v57 = vand.u32 4294901760, %v20172_v19  ;;  %v20721_v20 = vsub.f32 %v20719_v14, %v20720_v16  ;;  %v22037_v52 = vsel %vm5033_vm7, %v22031_v45, %v22033_v51 }
 0x8b2   : > { %29749 = vmatprep.subr.mxu1 %v31015_v0  ;;  %v20264_v22 = vand.u32 4294901760, %v20263_v47 }
 0x8b3   : > { %v20255_v1 = vsub.f32 %v20172_v19, %v32831_v57  ;;  %v20722_v23 = vand.u32 4294901760, %v20721_v20  ;;  %v22043_v19 = vsel %vm347_vm3, %v22037_v52, 0  ;;  %v22029_v54 = vpop.permute.xlu1 %22028 }
 0x8b4   : > { %v22035_v55 = vpop.permute.xlu0 %22034  ;;  %v22036_v61 = vsel %vm5033_vm7, %v22029_v54, %v22031_v45 }
 0x8b5   : > { %v20256_v7 = vand.u32 4294901760, %v20255_v1  ;;  %v22038_v62 = vsel %vm5033_vm7, %v22033_v51, %v22035_v55  ;;  %v22041_v2 = vsel %vm347_vm3, %v22036_v61, 0  ;;  %vm33498_vm7 = vmmov %vm33493_vm2 }
 0x8b6   : > { %19313 = vmatmul.mubr.f32.vlgmr.msra.gmra.mrb[4].mxu0 %v19312_v42  ;;  %v22045_v3 = vsel %vm347_vm3, %v22038_v62, 0 }
 0x8b7   : > { %19330 = vmatpush1.msra.mxu0 %v19329_v13  ;;  %29747 = vmatmul.mubr.f32.vlgmr.msra.gmra.mrb[4].mxu1 %v19312_v42  ;;  %v20257_v15 = vsub.f32 %v20255_v1, %v20256_v7 }
 0x8b8   : > { %29750 = vmatpush3.msra.mxu1 %v19787_v43  ;;  %19403 = vmatprep.subr.mxu0 %v19320_v25  ;;  %v32889_v25 = vand.u32 4294901760, %v21096_v24  ;;  %v22966_v46 = vpop.permute.xlu0 %22965 }
 0x8b9   : > { %19393 = vmatprep.mubr.f32.mxu0 %v31015_v0  ;;  %29751 = vmatprep.mubr.msk.f32.mxu1 %vm31016_vm0, %v31015_v0  ;;  %v20258_v18 = vand.u32 4294901760, %v20257_v15 }
 0x8ba   : > { %29754 = vmatprep.subr.mxu1 %v31015_v0 }
 0x8be   : > { %19395 = vmatmul.mubr.f32.vlgmr.msra.gmra.mrb[4].mxu0 %v32786_v26 }
 0x8bf   : > { %19406 = vmatpush1.msra.mxu0 %v19326_v30  ;;  %29752 = vmatmul.mubr.f32.vlgmr.msra.gmra.mrb[4].mxu1 %v32786_v26 }
 0x8c0   : > { %29755 = vmatpush3.msra.mxu1 %v19784_v31  ;;  %19479 = vmatprep.subr.mxu0 %v32773_v21 }
 0x8c1   : > { %19469 = vmatprep.mubr.f32.mxu0 %v31015_v0  ;;  %29756 = vmatprep.mubr.msk.f32.mxu1 %vm31016_vm0, %v31015_v0 }
 0x8c2   : > { %29759 = vmatprep.subr.mxu1 %v31015_v0 }
 0x8c6   : > { %19472 = vmatmul.mubr.f32.vlgmr.msra.gmra.mrb[4].mxu0 %v19309_v11 }
 0x8c7   : > { %19481 = vmatpush1.msra.mxu0 %v32788_v27  ;;  %29757 = vmatmul.mubr.f32.vlgmr.msra.gmra.mrb[4].mxu1 %v19309_v11 }
 0x8c8   : > { %29760 = vmatpush3.msra.mxu1 %v32790_v28  ;;  %19557 = vmatprep.subr.mxu0 %v19321_v29  ;;  %v32904_v29 = vand.u32 4294901760, %v21094_v50 }
 0x8c9   : > { %19544 = vmatprep.mubr.f32.mxu0 %v31015_v0  ;;  %29761 = vmatprep.mubr.msk.f32.mxu1 %vm31016_vm0, %v31015_v0 }
 0x8ca   : > { %29764 = vmatprep.subr.mxu1 %v31015_v0 }
 0x8ce   : > { %19548 = vmatmul.mubr.f32.vlgmr.msra.gmra.mrb[4].mxu0 %v19310_v33 }
 0x8cf   : > { %19561 = vmatpush1.msra.mxu0 %v19327_v9  ;;  %29762 = vmatmul.mubr.f32.vlgmr.msra.gmra.mrb[4].mxu1 %v19310_v33 }
 0x8d0   : > { %29765 = vmatpush3.msra.mxu1 %v19785_v37  ;;  %19633 = vmatprep.subr.mxu0 %v32773_v21  ;;  %v20247_v21 = vand.u32 4294901760, %v20246_v17 }
 0x8d1   : > { %19624 = vmatprep.mubr.f32.mxu0 %v31015_v0  ;;  %29766 = vmatprep.mubr.msk.f32.mxu1 %vm31016_vm0, %v31015_v0 }
 0x8d2   : > { %29769 = vmatprep.subr.mxu1 %v31015_v0 }
 0x8d6   : > { %19626 = vmatmul.mubr.f32.vlgmr.msra.gmra.mrb[4].mxu0 %v32786_v26 }
 0x8d7   : > { %19635 = vmatpush1.msra.mxu0 %v32788_v27  ;;  %29767 = vmatmul.mubr.f32.vlgmr.msra.gmra.mrb[4].mxu1 %v32786_v26  ;;  %v21098_v27 = vsel %vm347_vm3, %v32611_v53, 0  ;;  %v21185_v53 = vsub.f32 %v21094_v50, %v32904_v29 }
 0x8d8   : > { %29770 = vmatpush3.msra.mxu1 %v32790_v28  ;;  %20177 = vmatprep.subr.mxu0 %v32831_v57  ;;  %v32902_v28 = vand.u32 4294901760, %v21092_v49  ;;  %v32907_v11 = vand.u32 4294901760, %v21098_v27 }
 0x8d9   : > { %19698 = vmatprep.mubr.f32.mxu0 %v31015_v0  ;;  %29771 = vmatprep.mubr.msk.f32.mxu1 %vm31016_vm0, %v31015_v0  ;;  %v21186_v9 = vand.u32 4294901760, %v21185_v53 }
 0x8da   : > { %29774 = vmatprep.subr.mxu1 %v31015_v0  ;;  %v21168_v48 = vsub.f32 %v21092_v49, %v32902_v28  ;;  %v21643_v31 = vsub.f32 %v21098_v27, %v32907_v11 }
 0x8db   : > { %v21187_v40 = vsub.f32 %v21185_v53, %v21186_v9 }
 0x8dc   : > { %v21169_v33 = vand.u32 4294901760, %v21168_v48  ;;  %v21644_v38 = vand.u32 4294901760, %v21643_v31 }
 0x8dd   : > { %v21188_v13 = vand.u32 4294901760, %v21187_v40 }
 0x8de   : > { %19700 = vmatmul.mubr.f32.vlgmr.msra.gmra.mrb[4].mxu0 %v32786_v26  ;;  %v21170_v39 = vsub.f32 %v21168_v48, %v21169_v33  ;;  %v21645_v41 = vsub.f32 %v21643_v31, %v21644_v38 }
 0x8df   : > { %29772 = vmatmul.mubr.f32.vlgmr.msra.gmra.mrb[4].mxu1 %v32786_v26  ;;  %20179 = vmatpush1.msra.mxu0 %v32846_v5  ;;  %v21179_v26 = vsub.f32 %v21096_v24, %v32889_v25  ;;  %v22962_v24 = vpop.permute.xlu1 %22961 }
 0x8e0   : > { %29775 = vmatpush3.msra.mxu1 %v32848_v6  ;;  %20259 = vmatprep.subr.mxu0 %v20258_v18  ;;  %v21171_v42 = vand.u32 4294901760, %v21170_v39  ;;  %v21646_v43 = vand.u32 4294901760, %v21645_v41 }
 0x8e1   : > { %20242 = vmatprep.mubr.f32.mxu0 %v31015_v0  ;;  %29776 = vmatprep.mubr.msk.f32.mxu1 %vm31016_vm0, %v31015_v0  ;;  %v21180_v30 = vand.u32 4294901760, %v21179_v26 }
 0x8e2   : > { %29779 = vmatprep.subr.mxu1 %v31015_v0 }
 0x8e3   : > { %v21181_v32 = vsub.f32 %v21179_v26, %v21180_v30 }
 0x8e5   : > { %v21182_v37 = vand.u32 4294901760, %v21181_v32 }
 0x8e6   : > { %20248 = vmatmul.mubr.f32.vlgmr.msra.gmra.mrb[4].mxu0 %v20247_v21 }
 0x8e7   : > { %20265 = vmatpush1.msra.mxu0 %v20264_v22  ;;  %29777 = vmatmul.mubr.f32.vlgmr.msra.gmra.mrb[4].mxu1 %v20247_v21 }
 0x8e8   : > { %29780 = vmatpush3.msra.mxu1 %v20722_v23  ;;  %20338 = vmatprep.subr.mxu0 %v20255_v1 }
 0x8e9   : > { %20328 = vmatprep.mubr.f32.mxu0 %v31015_v0  ;;  %29781 = vmatprep.mubr.msk.f32.mxu1 %vm31016_vm0, %v31015_v0 }
 0x8ea   : > { %29784 = vmatprep.subr.mxu1 %v31015_v0 }
 0x8ee   : > { %20330 = vmatmul.mubr.f32.vlgmr.msra.gmra.mrb[4].mxu0 %v32844_v56 }
 0x8ef   : > { %20341 = vmatpush1.msra.mxu0 %v20261_v10  ;;  %29782 = vmatmul.mubr.f32.vlgmr.msra.gmra.mrb[4].mxu1 %v32844_v56 }
 0x8f0   : > { %29785 = vmatpush3.msra.mxu1 %v20719_v14  ;;  %20414 = vmatprep.subr.mxu0 %v32831_v57 }
 0x8f1   : > { %20404 = vmatprep.mubr.f32.mxu0 %v31015_v0  ;;  %29786 = vmatprep.mubr.msk.f32.mxu1 %vm31016_vm0, %v31015_v0 }
 0x8f2   : > { %29789 = vmatprep.subr.mxu1 %v31015_v0 }
 0x8f6   : > { %20407 = vmatmul.mubr.f32.vlgmr.msra.gmra.mrb[4].mxu0 %v20244_v8 }
 0x8f7   : > { %20416 = vmatpush1.msra.mxu0 %v32846_v5  ;;  %29787 = vmatmul.mubr.f32.vlgmr.msra.gmra.mrb[4].mxu1 %v20244_v8 }
 0x8f8   : > { %29790 = vmatpush3.msra.mxu1 %v32848_v6  ;;  %20492 = vmatprep.subr.mxu0 %v20256_v7 }
 0x8f9   : > { %20479 = vmatprep.mubr.f32.mxu0 %v31015_v0  ;;  %29791 = vmatprep.mubr.msk.f32.mxu1 %vm31016_vm0, %v31015_v0 }
 0x8fa   : > { %29794 = vmatprep.subr.mxu1 %v31015_v0 }
 0x8fe   : > { %20483 = vmatmul.mubr.f32.vlgmr.msra.gmra.mrb[4].mxu0 %v20245_v4 }
 0x8ff   : > { %20496 = vmatpush1.msra.mxu0 %v20262_v12  ;;  %29792 = vmatmul.mubr.f32.vlgmr.msra.gmra.mrb[4].mxu1 %v20245_v4 }
 0x900   : > { %29795 = vmatpush3.msra.mxu1 %v20720_v16  ;;  %20568 = vmatprep.subr.mxu0 %v32831_v57  ;;  %v32947_v57 = vand.u32 4294901760, %v22043_v19 }
 0x901   : > { %20559 = vmatprep.mubr.f32.mxu0 %v31015_v0  ;;  %29796 = vmatprep.mubr.msk.f32.mxu1 %vm31016_vm0, %v31015_v0 }
 0x902   : > { %29799 = vmatprep.subr.mxu1 %v31015_v0  ;;  %v22126_v1 = vsub.f32 %v22043_v19, %v32947_v57 }
 0x904   : > { %v22127_v7 = vand.u32 4294901760, %v22126_v1 }
 0x906   : > { %20561 = vmatmul.mubr.f32.vlgmr.msra.gmra.mrb[4].mxu0 %v32844_v56  ;;  %v22128_v15 = vsub.f32 %v22126_v1, %v22127_v7 }
 0x907   : > { %20570 = vmatpush1.msra.mxu0 %v32846_v5  ;;  %29797 = vmatmul.mubr.f32.vlgmr.msra.gmra.mrb[4].mxu1 %v32844_v56  ;;  %v32962_v5 = vand.u32 4294901760, %v22041_v2 }
 0x908   : > { %29800 = vmatpush3.msra.mxu1 %v32848_v6  ;;  %21101 = vmatprep.subr.mxu0 %v32889_v25  ;;  %v32964_v6 = vand.u32 4294901760, %v22045_v3  ;;  %v22129_v18 = vand.u32 4294901760, %v22128_v15 }
 0x909   : > { %20633 = vmatprep.mubr.f32.mxu0 %v31015_v0  ;;  %29801 = vmatprep.mubr.msk.f32.mxu1 %vm31016_vm0, %v31015_v0  ;;  %v22132_v10 = vsub.f32 %v22041_v2, %v32962_v5 }
 0x90a   : > { %29804 = vmatprep.subr.mxu1 %v31015_v0  ;;  %v22590_v14 = vsub.f32 %v22045_v3, %v32964_v6 }
 0x90b   : > { %v22133_v12 = vand.u32 4294901760, %v22132_v10 }
 0x90c   : > { %v22591_v16 = vand.u32 4294901760, %v22590_v14 }
 0x90d   : > { %v22134_v47 = vsub.f32 %v22132_v10, %v22133_v12 }
 0x90e   : > { %20635 = vmatmul.mubr.f32.vlgmr.msra.gmra.mrb[4].mxu0 %v32844_v56  ;;  %v22592_v20 = vsub.f32 %v22590_v14, %v22591_v16 }
 0x90f   : > { %29802 = vmatmul.mubr.f32.vlgmr.msra.gmra.mrb[4].mxu1 %v32844_v56  ;;  %21103 = vmatpush1.msra.mxu0 %v32904_v29  ;;  %v32960_v56 = vand.u32 4294901760, %v22039_v63  ;;  %v22135_v22 = vand.u32 4294901760, %v22134_v47 }
 0x910   : > { %29805 = vmatpush3.msra.mxu1 %v32907_v11  ;;  %21183 = vmatprep.subr.mxu0 %v21182_v37  ;;  %v22593_v23 = vand.u32 4294901760, %v22592_v20 }
 0x911   : > { %21166 = vmatprep.mubr.f32.mxu0 %v31015_v0  ;;  %29806 = vmatprep.mubr.msk.f32.mxu1 %vm31016_vm0, %v31015_v0  ;;  %v22115_v8 = vsub.f32 %v22039_v63, %v32960_v56 }
 0x912   : > { %29809 = vmatprep.subr.mxu1 %v31015_v0 }
 0x913   : > { %v22116_v4 = vand.u32 4294901760, %v22115_v8 }
 0x915   : > { %v22117_v17 = vsub.f32 %v22115_v8, %v22116_v4 }
 0x916   : > { %21172 = vmatmul.mubr.f32.vlgmr.msra.gmra.mrb[4].mxu0 %v21171_v42 }
 0x917   : > { %21189 = vmatpush1.msra.mxu0 %v21188_v13  ;;  %29807 = vmatmul.mubr.f32.vlgmr.msra.gmra.mrb[4].mxu1 %v21171_v42  ;;  %v22118_v21 = vand.u32 4294901760, %v22117_v17 }
 0x918   : > { %29810 = vmatpush3.msra.mxu1 %v21646_v43  ;;  %21262 = vmatprep.subr.mxu0 %v21179_v26  ;;  %v22964_v26 = vpop.permute.xlu0 %22963 }
 0x919   : > { %21252 = vmatprep.mubr.f32.mxu0 %v31015_v0  ;;  %29811 = vmatprep.mubr.msk.f32.mxu1 %vm31016_vm0, %v31015_v0 }
 0x91a   : > { %29814 = vmatprep.subr.mxu1 %v31015_v0 }
 0x91e   : > { %21254 = vmatmul.mubr.f32.vlgmr.msra.gmra.mrb[4].mxu0 %v32902_v28 }
 0x91f   : > { %21265 = vmatpush1.msra.mxu0 %v21185_v53  ;;  %29812 = vmatmul.mubr.f32.vlgmr.msra.gmra.mrb[4].mxu1 %v32902_v28 }
 0x920   : > { %29815 = vmatpush3.msra.mxu1 %v21643_v31  ;;  %21338 = vmatprep.subr.mxu0 %v32889_v25 }
 0x921   : > { %21328 = vmatprep.mubr.f32.mxu0 %v31015_v0  ;;  %29816 = vmatprep.mubr.msk.f32.mxu1 %vm31016_vm0, %v31015_v0 }
 0x922   : > { %29819 = vmatprep.subr.mxu1 %v31015_v0 }
 0x926   : > { %21331 = vmatmul.mubr.f32.vlgmr.msra.gmra.mrb[4].mxu0 %v21168_v48 }
 0x927   : > { %21340 = vmatpush1.msra.mxu0 %v32904_v29  ;;  %29817 = vmatmul.mubr.f32.vlgmr.msra.gmra.mrb[4].mxu1 %v21168_v48 }
 0x928   : > { %29820 = vmatpush3.msra.mxu1 %v32907_v11  ;;  %21416 = vmatprep.subr.mxu0 %v21180_v30  ;;  %v22974_v30 = vsel %vm33498_vm7, %v22962_v24, 0 }
 0x929   : > { %21403 = vmatprep.mubr.f32.mxu0 %v31015_v0  ;;  %29821 = vmatprep.mubr.msk.f32.mxu1 %vm31016_vm0, %v31015_v0  ;;  %v33018_v32 = vand.u32 4294901760, %v22974_v30 }
 0x92a   : > { %29824 = vmatprep.subr.mxu1 %v31015_v0 }
 0x92e   : > { %21407 = vmatmul.mubr.f32.vlgmr.msra.gmra.mrb[4].mxu0 %v21169_v33 }
 0x92f   : > { %21420 = vmatpush1.msra.mxu0 %v21186_v9  ;;  %29822 = vmatmul.mubr.f32.vlgmr.msra.gmra.mrb[4].mxu1 %v21169_v33 }
 0x930   : > { %29825 = vmatpush3.msra.mxu1 %v21644_v38  ;;  %21492 = vmatprep.subr.mxu0 %v32889_v25  ;;  %v22968_v25 = vpop.permute.xlu1 %22967  ;;  %v23050_v38 = vsub.f32 %v22974_v30, %v33018_v32 }
 0x931   : > { %21483 = vmatprep.mubr.f32.mxu0 %v31015_v0  ;;  %29826 = vmatprep.mubr.msk.f32.mxu1 %vm31016_vm0, %v31015_v0  ;;  %v22972_v49 = vsel %vm5977_vm8, %v22966_v46, %v22968_v25 }
 0x932   : > { %29829 = vmatprep.subr.mxu1 %v31015_v0  ;;  %v22978_v50 = vsel %vm347_vm3, %v22972_v49, 0  ;;  %v23051_v42 = vand.u32 4294901760, %v23050_v38 }
 0x934   : > { %v22970_v27 = vpop.permute.xlu1 %22969  ;;  %v23052_v45 = vsub.f32 %v23050_v38, %v23051_v42 }
 0x936   : > { %21485 = vmatmul.mubr.f32.vlgmr.msra.gmra.mrb[4].mxu0 %v32902_v28  ;;  %v23053_v19 = vand.u32 4294901760, %v23052_v45 }
 0x937   : > { %21494 = vmatpush1.msra.mxu0 %v32904_v29  ;;  %29827 = vmatmul.mubr.f32.vlgmr.msra.gmra.mrb[4].mxu1 %v32902_v28  ;;  %v22971_v29 = vsel %vm5977_vm8, %v22964_v26, %v22966_v46 }
 0x938   : > { %29830 = vmatpush3.msra.mxu1 %v32907_v11  ;;  %22048 = vmatprep.subr.mxu0 %v32947_v57  ;;  %v22973_v11 = vsel %vm5977_vm8, %v22968_v25, %v22970_v27  ;;  %v22976_v53 = vsel %vm347_vm3, %v22971_v29, 0  ;;  %v23901_v61 = vpop.permute.xlu1 %23900  ;;  %vm33499_vm8 = vmmov %vm33493_vm2 }
 0x939   : > { %21557 = vmatprep.mubr.f32.mxu0 %v31015_v0  ;;  %29831 = vmatprep.mubr.msk.f32.mxu1 %vm31016_vm0, %v31015_v0  ;;  %v22980_v31 = vsel %vm347_vm3, %v22973_v11, 0  ;;  %v33020_v33 = vand.u32 4294901760, %v22976_v53 }
 0x93a   : > { %29834 = vmatprep.subr.mxu1 %v31015_v0  ;;  %v33022_v9 = vand.u32 4294901760, %v22980_v31 }
 0x93b   : > { %v23067_v39 = vsub.f32 %v22976_v53, %v33020_v33 }
 0x93c   : > { %v23525_v40 = vsub.f32 %v22980_v31, %v33022_v9  ;;  %v23899_v2 = vpop.permute.xlu1 %23898 }
 0x93d   : > { %v23068_v13 = vand.u32 4294901760, %v23067_v39 }
 0x93e   : > { %21559 = vmatmul.mubr.f32.vlgmr.msra.gmra.mrb[4].mxu0 %v32902_v28  ;;  %v23526_v43 = vand.u32 4294901760, %v23525_v40 }
 0x93f   : > { %29832 = vmatmul.mubr.f32.vlgmr.msra.gmra.mrb[4].mxu1 %v32902_v28  ;;  %22050 = vmatpush1.msra.mxu0 %v32962_v5  ;;  %v33005_v28 = vand.u32 4294901760, %v22978_v50  ;;  %v23069_v51 = vsub.f32 %v23067_v39, %v23068_v13 }
 0x940   : > { %29835 = vmatpush3.msra.mxu1 %v32964_v6  ;;  %22130 = vmatprep.subr.mxu0 %v22129_v18  ;;  %v23527_v52 = vsub.f32 %v23525_v40, %v23526_v43 }
 0x941   : > { %22113 = vmatprep.mubr.f32.mxu0 %v31015_v0  ;;  %29836 = vmatprep.mubr.msk.f32.mxu1 %vm31016_vm0, %v31015_v0  ;;  %v23061_v48 = vsub.f32 %v22978_v50, %v33005_v28  ;;  %v23070_v54 = vand.u32 4294901760, %v23069_v51 }
 0x942   : > { %29839 = vmatprep.subr.mxu1 %v31015_v0  ;;  %v23528_v55 = vand.u32 4294901760, %v23527_v52 }
 0x943   : > { %v23062_v37 = vand.u32 4294901760, %v23061_v48 }
 0x945   : > { %v23063_v41 = vsub.f32 %v23061_v48, %v23062_v37 }
 0x946   : > { %22119 = vmatmul.mubr.f32.vlgmr.msra.gmra.mrb[4].mxu0 %v22118_v21 }
 0x947   : > { %22136 = vmatpush1.msra.mxu0 %v22135_v22  ;;  %29837 = vmatmul.mubr.f32.vlgmr.msra.gmra.mrb[4].mxu1 %v22118_v21  ;;  %v23064_v44 = vand.u32 4294901760, %v23063_v41 }
 0x948   : > { %29840 = vmatpush3.msra.mxu1 %v22593_v23  ;;  %22209 = vmatprep.subr.mxu0 %v22126_v1 }
 0x949   : > { %22199 = vmatprep.mubr.f32.mxu0 %v31015_v0  ;;  %29841 = vmatprep.mubr.msk.f32.mxu1 %vm31016_vm0, %v31015_v0 }
 0x94a   : > { %29844 = vmatprep.subr.mxu1 %v31015_v0 }
 0x94e   : > { %22201 = vmatmul.mubr.f32.vlgmr.msra.gmra.mrb[4].mxu0 %v32960_v56 }
 0x94f   : > { %22212 = vmatpush1.msra.mxu0 %v22132_v10  ;;  %29842 = vmatmul.mubr.f32.vlgmr.msra.gmra.mrb[4].mxu1 %v32960_v56 }
 0x950   : > { %29845 = vmatpush3.msra.mxu1 %v22590_v14  ;;  %22285 = vmatprep.subr.mxu0 %v32947_v57 }
 0x951   : > { %22275 = vmatprep.mubr.f32.mxu0 %v31015_v0  ;;  %29846 = vmatprep.mubr.msk.f32.mxu1 %vm31016_vm0, %v31015_v0 }
 0x952   : > { %29849 = vmatprep.subr.mxu1 %v31015_v0 }
 0x956   : > { %22278 = vmatmul.mubr.f32.vlgmr.msra.gmra.mrb[4].mxu0 %v22115_v8 }
 0x957   : > { %22287 = vmatpush1.msra.mxu0 %v32962_v5  ;;  %29847 = vmatmul.mubr.f32.vlgmr.msra.gmra.mrb[4].mxu1 %v22115_v8 }
 0x958   : > { %29850 = vmatpush3.msra.mxu1 %v32964_v6  ;;  %22363 = vmatprep.subr.mxu0 %v22127_v7 }
 0x959   : > { %22350 = vmatprep.mubr.f32.mxu0 %v31015_v0  ;;  %29851 = vmatprep.mubr.msk.f32.mxu1 %vm31016_vm0, %v31015_v0 }
 0x95a   : > { %29854 = vmatprep.subr.mxu1 %v31015_v0 }
 0x95e   : > { %22354 = vmatmul.mubr.f32.vlgmr.msra.gmra.mrb[4].mxu0 %v22116_v4 }
 0x95f   : > { %22367 = vmatpush1.msra.mxu0 %v22133_v12  ;;  %29852 = vmatmul.mubr.f32.vlgmr.msra.gmra.mrb[4].mxu1 %v22116_v4 }
 0x960   : > { %29855 = vmatpush3.msra.mxu1 %v22591_v16  ;;  %22439 = vmatprep.subr.mxu0 %v32947_v57  ;;  %v23897_v57 = vpop.permute.xlu0 %23896 }
 0x961   : > { %22430 = vmatprep.mubr.f32.mxu0 %v31015_v0  ;;  %29856 = vmatprep.mubr.msk.f32.mxu1 %vm31016_vm0, %v31015_v0  ;;  %v23909_v7 = vsel %vm33499_vm8, %v23897_v57, 0 }
 0x962   : > { %29859 = vmatprep.subr.mxu1 %v31015_v0  ;;  %v33076_v15 = vand.u32 4294901760, %v23909_v7 }
 0x964   : > { %v23903_v62 = vpop.permute.xlu0 %23902  ;;  %v23985_v18 = vsub.f32 %v23909_v7, %v33076_v15 }
 0x965   : > { %v23907_v63 = vsel %vm6921_vm9, %v23901_v61, %v23903_v62 }
 0x966   : > { %22432 = vmatmul.mubr.f32.vlgmr.msra.gmra.mrb[4].mxu0 %v32960_v56  ;;  %v23913_v1 = vsel %vm347_vm3, %v23907_v63, 0  ;;  %v23986_v21 = vand.u32 4294901760, %v23985_v18 }
 0x967   : > { %22441 = vmatpush1.msra.mxu0 %v32962_v5  ;;  %29857 = vmatmul.mubr.f32.vlgmr.msra.gmra.mrb[4].mxu1 %v32960_v56  ;;  %v23906_v5 = vsel %vm6921_vm9, %v23899_v2, %v23901_v61 }
 0x968   : > { %29860 = vmatpush3.msra.mxu1 %v32964_v6  ;;  %22983 = vmatprep.subr.mxu0 %v33005_v28  ;;  %v23905_v3 = vpop.permute.xlu0 %23904  ;;  %v23911_v10 = vsel %vm347_vm3, %v23906_v5, 0  ;;  %v23987_v25 = vsub.f32 %v23985_v18, %v23986_v21 }
 0x969   : > { %22504 = vmatprep.mubr.f32.mxu0 %v31015_v0  ;;  %29861 = vmatprep.mubr.msk.f32.mxu1 %vm31016_vm0, %v31015_v0  ;;  %v23908_v6 = vsel %vm6921_vm9, %v23903_v62, %v23905_v3  ;;  %v33078_v4 = vand.u32 4294901760, %v23911_v10  ;;  %vm33500_vm9 = vmmov %vm33493_vm2 }
 0x96a   : > { %29864 = vmatprep.subr.mxu1 %v31015_v0  ;;  %v23915_v14 = vsel %vm347_vm3, %v23908_v6, 0  ;;  %v23988_v50 = vand.u32 4294901760, %v23987_v25 }
 0x96b   : > { %v33080_v12 = vand.u32 4294901760, %v23915_v14  ;;  %v24002_v17 = vsub.f32 %v23911_v10, %v33078_v4 }
 0x96c   : > { %v24836_v11 = vpop.permute.xlu0 %24835 }
 0x96d   : > { %v24460_v47 = vsub.f32 %v23915_v14, %v33080_v12  ;;  %v24003_v22 = vand.u32 4294901760, %v24002_v17 }
 0x96e   : > { %22506 = vmatmul.mubr.f32.vlgmr.msra.gmra.mrb[4].mxu0 %v32960_v56 }
 0x96f   : > { %29862 = vmatmul.mubr.f32.vlgmr.msra.gmra.mrb[4].mxu1 %v32960_v56  ;;  %22985 = vmatpush1.msra.mxu0 %v33020_v33  ;;  %v33063_v56 = vand.u32 4294901760, %v23913_v1  ;;  %v24461_v23 = vand.u32 4294901760, %v24460_v47  ;;  %v24004_v46 = vsub.f32 %v24002_v17, %v24003_v22 }
 0x970   : > { %29865 = vmatpush3.msra.mxu1 %v33022_v9  ;;  %23065 = vmatprep.subr.mxu0 %v23064_v44  ;;  %v24834_v53 = vpop.permute.xlu0 %24833 }
 0x971   : > { %23048 = vmatprep.mubr.f32.mxu0 %v31015_v0  ;;  %29866 = vmatprep.mubr.msk.f32.mxu1 %vm31016_vm0, %v31015_v0  ;;  %v23996_v8 = vsub.f32 %v23913_v1, %v33063_v56  ;;  %v24462_v49 = vsub.f32 %v24460_v47, %v24461_v23  ;;  %v24005_v26 = vand.u32 4294901760, %v24004_v46  ;;  %v33210_v46 = vld [vmem:[%s33455_s5] sm:$0xff] }
 0x972   : > { %29869 = vmatprep.subr.mxu1 %v31015_v0 }
 0x973   : > { %v23997_v16 = vand.u32 4294901760, %v23996_v8  ;;  %v24463_v27 = vand.u32 4294901760, %v24462_v49 }
 0x975   : > { %v23998_v20 = vsub.f32 %v23996_v8, %v23997_v16 }
 0x976   : > { %23054 = vmatmul.mubr.f32.vlgmr.msra.gmra.mrb[4].mxu0 %v23053_v19 }
 0x977   : > { %23071 = vmatpush1.msra.mxu0 %v23070_v54  ;;  %29867 = vmatmul.mubr.f32.vlgmr.msra.gmra.mrb[4].mxu1 %v23053_v19  ;;  %v23999_v24 = vand.u32 4294901760, %v23998_v20 }
 0x978   : > { %29870 = vmatpush3.msra.mxu1 %v23528_v55  ;;  %23144 = vmatprep.subr.mxu0 %v23061_v48 }
 0x979   : > { %23134 = vmatprep.mubr.f32.mxu0 %v31015_v0  ;;  %29871 = vmatprep.mubr.msk.f32.mxu1 %vm31016_vm0, %v31015_v0 }
 0x97a   : > { %29874 = vmatprep.subr.mxu1 %v31015_v0 }
 0x97e   : > { %23136 = vmatmul.mubr.f32.vlgmr.msra.gmra.mrb[4].mxu0 %v33018_v32 }
 0x97f   : > { %23147 = vmatpush1.msra.mxu0 %v23067_v39  ;;  %29872 = vmatmul.mubr.f32.vlgmr.msra.gmra.mrb[4].mxu1 %v33018_v32 }
 0x980   : > { %29875 = vmatpush3.msra.mxu1 %v23525_v40  ;;  %23220 = vmatprep.subr.mxu0 %v33005_v28 }
 0x981   : > { %23210 = vmatprep.mubr.f32.mxu0 %v31015_v0  ;;  %29876 = vmatprep.mubr.msk.f32.mxu1 %vm31016_vm0, %v31015_v0 }
 0x982   : > { %29879 = vmatprep.subr.mxu1 %v31015_v0 }
 0x986   : > { %23213 = vmatmul.mubr.f32.vlgmr.msra.gmra.mrb[4].mxu0 %v23050_v38 }
 0x987   : > { %23222 = vmatpush1.msra.mxu0 %v33020_v33  ;;  %29877 = vmatmul.mubr.f32.vlgmr.msra.gmra.mrb[4].mxu1 %v23050_v38 }
 0x988   : > { %29880 = vmatpush3.msra.mxu1 %v33022_v9  ;;  %23298 = vmatprep.subr.mxu0 %v23062_v37 }
 0x989   : > { %23285 = vmatprep.mubr.f32.mxu0 %v31015_v0  ;;  %29881 = vmatprep.mubr.msk.f32.mxu1 %vm31016_vm0, %v31015_v0 }
 0x98a   : > { %29884 = vmatprep.subr.mxu1 %v31015_v0 }
 0x98e   : > { %23289 = vmatmul.mubr.f32.vlgmr.msra.gmra.mrb[4].mxu0 %v23051_v42 }
 0x98f   : > { %23302 = vmatpush1.msra.mxu0 %v23068_v13  ;;  %29882 = vmatmul.mubr.f32.vlgmr.msra.gmra.mrb[4].mxu1 %v23051_v42 }
 0x990   : > { %29885 = vmatpush3.msra.mxu1 %v23526_v43  ;;  %23374 = vmatprep.subr.mxu0 %v33005_v28  ;;  %v24832_v28 = vpop.permute.xlu1 %24831 }
 0x991   : > { %23365 = vmatprep.mubr.f32.mxu0 %v31015_v0  ;;  %29886 = vmatprep.mubr.msk.f32.mxu1 %vm31016_vm0, %v31015_v0  ;;  %v24844_v37 = vsel %vm33500_vm9, %v24832_v28, 0 }
 0x992   : > { %29889 = vmatprep.subr.mxu1 %v31015_v0  ;;  %v33134_v41 = vand.u32 4294901760, %v24844_v37 }
 0x994   : > { %v24838_v29 = vpop.permute.xlu1 %24837  ;;  %v24920_v44 = vsub.f32 %v24844_v37, %v33134_v41 }
 0x995   : > { %v24842_v30 = vsel %vm7865_vm10, %v24836_v11, %v24838_v29 }
 0x996   : > { %23367 = vmatmul.mubr.f32.vlgmr.msra.gmra.mrb[4].mxu0 %v33018_v32  ;;  %v24848_v48 = vsel %vm347_vm3, %v24842_v30, 0  ;;  %v24921_v19 = vand.u32 4294901760, %v24920_v44 }
 0x997   : > { %23376 = vmatpush1.msra.mxu0 %v33020_v33  ;;  %29887 = vmatmul.mubr.f32.vlgmr.msra.gmra.mrb[4].mxu1 %v33018_v32  ;;  %v24841_v33 = vsel %vm7865_vm10, %v24834_v53, %v24836_v11 }
 0x998   : > { %29890 = vmatpush3.msra.mxu1 %v33022_v9  ;;  %23918 = vmatprep.subr.mxu0 %v33063_v56  ;;  %v24840_v31 = vpop.permute.xlu1 %24839  ;;  %v24846_v39 = vsel %vm347_vm3, %v24841_v33, 0  ;;  %v24922_v61 = vsub.f32 %v24920_v44, %v24921_v19 }
 0x999   : > { %23439 = vmatprep.mubr.f32.mxu0 %v31015_v0  ;;  %29891 = vmatprep.mubr.msk.f32.mxu1 %vm31016_vm0, %v31015_v0  ;;  %v24843_v9 = vsel %vm7865_vm10, %v24838_v29, %v24840_v31  ;;  %v33136_v42 = vand.u32 4294901760, %v24846_v39  ;;  %vm25769_vm10 = vcmask 1045504  }
 0x99a   : > { %29894 = vmatprep.subr.mxu1 %v31015_v0  ;;  %v24850_v40 = vsel %vm347_vm3, %v24843_v9, 0  ;;  %v24923_v1 = vand.u32 4294901760, %v24922_v61 }
 0x99b   : > { %v33138_v13 = vand.u32 4294901760, %v24850_v40  ;;  %v24937_v45 = vsub.f32 %v24846_v39, %v33136_v42 }
 0x99d   : > { %v25395_v51 = vsub.f32 %v24850_v40, %v33138_v13  ;;  %v24938_v54 = vand.u32 4294901760, %v24937_v45 }
 0x99e   : > { %23441 = vmatmul.mubr.f32.vlgmr.msra.gmra.mrb[4].mxu0 %v33018_v32 }
 0x99f   : > { %29892 = vmatmul.mubr.f32.vlgmr.msra.gmra.mrb[4].mxu1 %v33018_v32  ;;  %23920 = vmatpush1.msra.mxu0 %v33078_v4  ;;  %v33121_v32 = vand.u32 4294901760, %v24848_v48  ;;  %v25396_v55 = vand.u32 4294901760, %v25395_v51  ;;  %v24939_v62 = vsub.f32 %v24937_v45, %v24938_v54 }
 0x9a0   : > { %29895 = vmatpush3.msra.mxu1 %v33080_v12  ;;  %24000 = vmatprep.subr.mxu0 %v23999_v24 }
 0x9a1   : > { %23983 = vmatprep.mubr.f32.mxu0 %v31015_v0  ;;  %29896 = vmatprep.mubr.msk.f32.mxu1 %vm31016_vm0, %v31015_v0  ;;  %v24931_v38 = vsub.f32 %v24848_v48, %v33121_v32  ;;  %v25397_v63 = vsub.f32 %v25395_v51, %v25396_v55  ;;  %v24940_v2 = vand.u32 4294901760, %v24939_v62 }
 0x9a2   : > { %29899 = vmatprep.subr.mxu1 %v31015_v0 }
 0x9a3   : > { %v24932_v43 = vand.u32 4294901760, %v24931_v38  ;;  %v25398_v3 = vand.u32 4294901760, %v25397_v63 }
 0x9a5   : > { %v24933_v52 = vsub.f32 %v24931_v38, %v24932_v43 }
 0x9a6   : > { %23989 = vmatmul.mubr.f32.vlgmr.msra.gmra.mrb[4].mxu0 %v23988_v50 }
 0x9a7   : > { %24006 = vmatpush1.msra.mxu0 %v24005_v26  ;;  %29897 = vmatmul.mubr.f32.vlgmr.msra.gmra.mrb[4].mxu1 %v23988_v50  ;;  %v24934_v57 = vand.u32 4294901760, %v24933_v52 }
 0x9a8   : > { %29900 = vmatpush3.msra.mxu1 %v24463_v27  ;;  %24079 = vmatprep.subr.mxu0 %v23996_v8 }
 0x9a9   : > { %24069 = vmatprep.mubr.f32.mxu0 %v31015_v0  ;;  %29901 = vmatprep.mubr.msk.f32.mxu1 %vm31016_vm0, %v31015_v0 }
 0x9aa   : > { %29904 = vmatprep.subr.mxu1 %v31015_v0 }
 0x9ae   : > { %24071 = vmatmul.mubr.f32.vlgmr.msra.gmra.mrb[4].mxu0 %v33076_v15 }
 0x9af   : > { %24082 = vmatpush1.msra.mxu0 %v24002_v17  ;;  %29902 = vmatmul.mubr.f32.vlgmr.msra.gmra.mrb[4].mxu1 %v33076_v15 }
 0x9b0   : > { %29905 = vmatpush3.msra.mxu1 %v24460_v47  ;;  %24155 = vmatprep.subr.mxu0 %v33063_v56 }
 0x9b1   : > { %24145 = vmatprep.mubr.f32.mxu0 %v31015_v0  ;;  %29906 = vmatprep.mubr.msk.f32.mxu1 %vm31016_vm0, %v31015_v0 }
 0x9b2   : > { %29909 = vmatprep.subr.mxu1 %v31015_v0 }
 0x9b6   : > { %24148 = vmatmul.mubr.f32.vlgmr.msra.gmra.mrb[4].mxu0 %v23985_v18 }
 0x9b7   : > { %24157 = vmatpush1.msra.mxu0 %v33078_v4  ;;  %29907 = vmatmul.mubr.f32.vlgmr.msra.gmra.mrb[4].mxu1 %v23985_v18 }
 0x9b8   : > { %29910 = vmatpush3.msra.mxu1 %v33080_v12  ;;  %24233 = vmatprep.subr.mxu0 %v23997_v16 }
 0x9b9   : > { %24220 = vmatprep.mubr.f32.mxu0 %v31015_v0  ;;  %29911 = vmatprep.mubr.msk.f32.mxu1 %vm31016_vm0, %v31015_v0 }
 0x9ba   : > { %29914 = vmatprep.subr.mxu1 %v31015_v0 }
 0x9be   : > { %24224 = vmatmul.mubr.f32.vlgmr.msra.gmra.mrb[4].mxu0 %v23986_v21 }
 0x9bf   : > { %24237 = vmatpush1.msra.mxu0 %v24003_v22  ;;  %29912 = vmatmul.mubr.f32.vlgmr.msra.gmra.mrb[4].mxu1 %v23986_v21 }
 0x9c0   : > { %29915 = vmatpush3.msra.mxu1 %v24461_v23  ;;  %24309 = vmatprep.subr.mxu0 %v33063_v56 }
 0x9c1   : > { %24300 = vmatprep.mubr.f32.mxu0 %v31015_v0  ;;  %29916 = vmatprep.mubr.msk.f32.mxu1 %vm31016_vm0, %v31015_v0 }
 0x9c2   : > { %29919 = vmatprep.subr.mxu1 %v31015_v0 }
 0x9c6   : > { %24302 = vmatmul.mubr.f32.vlgmr.msra.gmra.mrb[4].mxu0 %v33076_v15 }
 0x9c7   : > { %24311 = vmatpush1.msra.mxu0 %v33078_v4  ;;  %29917 = vmatmul.mubr.f32.vlgmr.msra.gmra.mrb[4].mxu1 %v33076_v15 }
 0x9c8   : > { %29920 = vmatpush3.msra.mxu1 %v33080_v12  ;;  %24853 = vmatprep.subr.mxu0 %v33121_v32 }
 0x9c9   : > { %24374 = vmatprep.mubr.f32.mxu0 %v31015_v0  ;;  %29921 = vmatprep.mubr.msk.f32.mxu1 %vm31016_vm0, %v31015_v0 }
 0x9ca   : > { %29924 = vmatprep.subr.mxu1 %v31015_v0 }
 0x9ce   : > { %24376 = vmatmul.mubr.f32.vlgmr.msra.gmra.mrb[4].mxu0 %v33076_v15 }
 0x9cf   : > { %29922 = vmatmul.mubr.f32.vlgmr.msra.gmra.mrb[4].mxu1 %v33076_v15  ;;  %24855 = vmatpush1.msra.mxu0 %v33136_v42 }
 0x9d0   : > { %29925 = vmatpush3.msra.mxu1 %v33138_v13  ;;  %24935 = vmatprep.subr.mxu0 %v24934_v57 }
 0x9d1   : > { %24918 = vmatprep.mubr.f32.mxu0 %v31015_v0  ;;  %29926 = vmatprep.mubr.msk.f32.mxu1 %vm31016_vm0, %v31015_v0 }
 0x9d2   : > { %29929 = vmatprep.subr.mxu1 %v31015_v0 }
 0x9d6   : > { %24924 = vmatmul.mubr.f32.vlgmr.msra.gmra.mrb[4].mxu0 %v24923_v1 }
 0x9d7   : > { %24941 = vmatpush1.msra.mxu0 %v24940_v2  ;;  %29927 = vmatmul.mubr.f32.vlgmr.msra.gmra.mrb[4].mxu1 %v24923_v1 }
 0x9d8   : > { %29930 = vmatpush3.msra.mxu1 %v25398_v3  ;;  %25014 = vmatprep.subr.mxu0 %v24931_v38 }
 0x9d9   : > { %25004 = vmatprep.mubr.f32.mxu0 %v31015_v0  ;;  %29931 = vmatprep.mubr.msk.f32.mxu1 %vm31016_vm0, %v31015_v0 }
 0x9da   : > { %29934 = vmatprep.subr.mxu1 %v31015_v0 }
 0x9de   : > { %25006 = vmatmul.mubr.f32.vlgmr.msra.gmra.mrb[4].mxu0 %v33134_v41 }
 0x9df   : > { %25017 = vmatpush1.msra.mxu0 %v24937_v45  ;;  %29932 = vmatmul.mubr.f32.vlgmr.msra.gmra.mrb[4].mxu1 %v33134_v41 }
 0x9e0   : > { %29935 = vmatpush3.msra.mxu1 %v25395_v51  ;;  %25090 = vmatprep.subr.mxu0 %v33121_v32 }
 0x9e1   : > { %25080 = vmatprep.mubr.f32.mxu0 %v31015_v0  ;;  %29936 = vmatprep.mubr.msk.f32.mxu1 %vm31016_vm0, %v31015_v0 }
 0x9e2   : > { %29939 = vmatprep.subr.mxu1 %v31015_v0 }
 0x9e6   : > { %25083 = vmatmul.mubr.f32.vlgmr.msra.gmra.mrb[4].mxu0 %v24920_v44 }
 0x9e7   : > { %25092 = vmatpush1.msra.mxu0 %v33136_v42  ;;  %29937 = vmatmul.mubr.f32.vlgmr.msra.gmra.mrb[4].mxu1 %v24920_v44 }
 0x9e8   : > { %29940 = vmatpush3.msra.mxu1 %v33138_v13  ;;  %25168 = vmatprep.subr.mxu0 %v24932_v43 }
 0x9e9   : > { %25155 = vmatprep.mubr.f32.mxu0 %v31015_v0  ;;  %29941 = vmatprep.mubr.msk.f32.mxu1 %vm31016_vm0, %v31015_v0 }
 0x9ea   : > { %29944 = vmatprep.subr.mxu1 %v31015_v0 }
 0x9ee   : > { %25159 = vmatmul.mubr.f32.vlgmr.msra.gmra.mrb[4].mxu0 %v24921_v19 }
 0x9ef   : > { %25172 = vmatpush1.msra.mxu0 %v24938_v54  ;;  %29942 = vmatmul.mubr.f32.vlgmr.msra.gmra.mrb[4].mxu1 %v24921_v19 }
 0x9f0   : > { %29945 = vmatpush3.msra.mxu1 %v25396_v55  ;;  %25244 = vmatprep.subr.mxu0 %v33121_v32 }
 0x9f1   : > { %25235 = vmatprep.mubr.f32.mxu0 %v31015_v0  ;;  %29946 = vmatprep.mubr.msk.f32.mxu1 %vm31016_vm0, %v31015_v0 }
 0x9f2   : > { %29949 = vmatprep.subr.mxu1 %v31015_v0 }
 0x9f6   : > { %25237 = vmatmul.mubr.f32.vlgmr.msra.gmra.mrb[4].mxu0 %v33134_v41 }
 0x9f7   : > { %25246 = vmatpush1.msra.mxu0 %v33136_v42  ;;  %29947 = vmatmul.mubr.f32.vlgmr.msra.gmra.mrb[4].mxu1 %v33134_v41 }
 0x9f8   : > { %29950 = vmatpush3.msra.mxu1 %v33138_v13  ;;  %25309 = vmatprep.mubr.f32.mxu0 %v31015_v0 }
 0x9f9   : > { %29951 = vmatprep.mubr.msk.f32.mxu1 %vm31016_vm0, %v31015_v0  ;;  %29954 = vmatprep.subr.mxu1 %v31015_v0 }
 0x9fe   : > { %25311 = vmatmul.mubr.f32.vlgmr.msra.gmra.mrb[4].mxu0 %v33134_v41 }
 0x9ff   : > { %29952 = vmatmul.mubr.f32.vlgmr.msra.gmra.mrb[4].mxu1 %v33134_v41  ;;  %25897 = vmatprep.mubr.f32.mxu0 %v31015_v0 }
 0xa00   : > { %29956 = vmatprep.mubr.msk.f32.mxu1 %vm31016_vm0, %v31015_v0 }
 0xad1   : > { %v25312_v56 = vpop.f32.mrb[4].mxu0 }
 0xad2   : > { %v25766_v5 = vsel %vm8804_vm12, %v25312_v56, 0.0  ;;  %v25759_v6 = vpop.f32.mrb[4].mxu1  ;;  %v25314_v7 = vpop.f32.mrb[5].mxu0 }
 0xad3   : > { %v25770_v8 = vsel %vm25769_vm10, %v25766_v5, 0.0  ;;  %v25777_v10 = vmul.f32 %v25766_v5, %v25766_v5  ;;  %v25768_v14 = vsel %vm8806_vm15, %v25759_v6, 0.0  ;;  %v25767_v15 = vsel %vm33501_vm11, %v25314_v7, 0.0  ;;  %v29953_v4 = vpop.f32.mrb[5].mxu1 }
 0xad4   : > { %v25779_v12 = vmul.f32 %v25768_v14, %v25768_v14  ;;  %v25771_v16 = vsel %vm25769_vm10, %v25767_v15, 0.0  ;;  %v25778_v18 = vmul.f32 %v25767_v15, %v25767_v15  ;;  %v25773_v20 = vsel %vm25769_vm10, %v25768_v14, 0.0 }
 0xad5   : > { %v25780_v17 = vsel %vm25769_vm10, %v25777_v10, 0.0  ;;  %v25772_v47 = vadd.f32 %v25771_v16, %v25770_v8  ;;  %v25814_v16 = vld [vmem:[#allocation2 + $0x10] sm:$0x3f] }
 0xad6   : > { %v25781_v21 = vsel %vm25769_vm10, %v25778_v18, 0.0  ;;  %v25783_v24 = vsel %vm25769_vm10, %v25779_v12, 0.0  ;;  %v26748_v18 = vsel %vm25769_vm10, %v25814_v16, 0 }
 0xad7   : > { %v25782_v22 = vadd.f32 %v25781_v21, %v25780_v17  ;;  %v25774_v23 = vadd.f32 %v25773_v20, %v25772_v47  ;;  %v26742_v17 = vsel %vm25819_vm1, %v33210_v46, 0  ;;  %v33263_v47 = vand.u32 4294901760, %v26748_v18  ;;  %v25815_v20 = vld [vmem:[#allocation2 + $0x18] sm:$0x3f]  ;;  %v25813_v21 = vld [vmem:[#allocation2 + $0x8] sm:$0x3f] }
 0xad9   : > { %25775 = vadd.xlane.f32.xlu0 %v25774_v23  ;;  %v25784_v25 = vadd.f32 %v25783_v24, %v25782_v22  ;;  %v33268_v22 = vand.u32 4294901760, %v26742_v17  ;;  %v26751_v23 = vsel %vm25769_vm10, %v25815_v20, 0  ;;  %v26745_v24 = vsel %vm25769_vm10, %v25813_v21, 0 }
 0xadb   : > { %25785 = vadd.xlane.f32.xlu1 %v25784_v25  ;;  %v26832_v25 = vsub.f32 %v26748_v18, %v33263_v47 }
 0xaef   : > { %25817 = vrot.lane.b32.xlu0 %v33210_v46, %s33502_s18  ;;  %v33274_v46 = vand.u32 4294901760, %v26751_v23 }
 0xb66   : > { %v25776_v49 = vpop.xlane.xlu0 %25775 }
 0xb67   : > { %v25787_v50 = vmul.f32 0.00390625, %v25776_v49  ;;  %v26821_v49 = vsub.f32 %v26742_v17, %v33268_v22 }
 0xb68   : > { %v25786_v26 = vpop.xlane.xlu1 %25785 }
 0xb69   : > { %v25788_v27 = vmul.f32 0.00390625, %v25786_v26  ;;  %v25789_v28 = vmul.f32 %v25787_v50, %v25787_v50  ;;  %v25794_v33 = vsub.f32 %v25766_v5, %v25787_v50  ;;  %v25795_v9 = vsub.f32 %v25767_v15, %v25787_v50 }
 0xb6a   : > { %v25818_v48 = vpop.permute.xlu0 %25817  ;;  %v25796_v37 = vsub.f32 %v25768_v14, %v25787_v50  ;;  %v33278_v50 = vand.u32 4294901760, %v26745_v24  ;;  %v26833_v26 = vand.u32 4294901760, %v26832_v25 }
 0xb6b   : > { %v25790_v29 = vsub.f32 %v25788_v27, %v25789_v28  ;;  %v25820_v53 = vsel %vm25819_vm1, %v25818_v48, 0  ;;  %v27296_v27 = vsub.f32 %v26751_v23, %v33274_v46  ;;  %v26822_v28 = vand.u32 4294901760, %v26821_v49 }
 0xb6c   : > { %v33215_v31 = vand.u32 4294901760, %v25820_v53 }
 0xb6d   : > { %v25791_v11 = vmax.f32 %v25790_v29, 0.0  ;;  %v26838_v29 = vsub.f32 %v26745_v24, %v33278_v50  ;;  %v26823_v48 = vsub.f32 %v26821_v49, %v26822_v28 }
 0xb6e   : > { %v33218_v32 = vsub.f32 %v25820_v53, %v33215_v31 }
 0xb6f   : > { %v25792_v30 = vadd.f32 1e-05, %v25791_v11  ;;  %v26834_v11 = vsub.f32 %v26832_v25, %v26833_v26  ;;  %v26839_v53 = vand.u32 4294901760, %v26838_v29 }
 0xb70   : > { %v33221_v42 = vand.u32 4294901760, %v33218_v32 }
 0xb71   : > { %30848 = vrsqrt.f32 %v25792_v30  ;;  %v27297_v30 = vand.u32 4294901760, %v27296_v27 }
 0xb72   : > { %v25901_v55 = vsub.f32 %v33218_v32, %v33221_v42 }
 0xb7b   : > { %v30849_v38 = vpop.eup %30848 }
 0xb7c   : > { %v25798_v39 = vmul.f32 %v30849_v38, %v25795_v9  ;;  %v25799_v40 = vmul.f32 %v30849_v38, %v25796_v37  ;;  %v25797_v41 = vmul.f32 %v30849_v38, %v25794_v33  ;;  %v27298_v33 = vsub.f32 %v27296_v27, %v27297_v30 }
 0xb7d   : > { %v26824_v9 = vand.u32 4294901760, %v26823_v48  ;;  %v26840_v37 = vsub.f32 %v26838_v29, %v26839_v53 }
 0xb7e   : > { %vm25801_vm13 = vcmp.ge.f32.partialorder %v25798_v39, 0.0  ;;  %v25804_v13 = vmul.f32 0.1, %v25798_v39  ;;  %vm25802_vm2 = vcmp.ge.f32.partialorder %v25799_v40, 0.0  ;;  %v25805_v43 = vmul.f32 0.1, %v25799_v40 }
 0xb7f   : > { %vm25800_vm4 = vcmp.ge.f32.partialorder %v25797_v41, 0.0  ;;  %v25803_v44 = vmul.f32 0.1, %v25797_v41  ;;  %v27299_v38 = vand.u32 4294901760, %v27298_v33 }
 0xb80   : > { %v25807_v45 = vsel %vm25801_vm13, %v25798_v39, %v25804_v13  ;;  %v25808_v51 = vsel %vm25802_vm2, %v25799_v40, %v25805_v43  ;;  %v26841_v39 = vand.u32 4294901760, %v26840_v37 }
 0xb81   : > { %v25810_v52 = vmul.f32 %v25807_v45, %v31984_v35  ;;  %v25811_v19 = vmul.f32 %v25808_v51, %v31986_v36  ;;  %v25806_v54 = vsel %vm25800_vm4, %v25797_v41, %v25803_v44  ;;  %v25902_v35 = vand.u32 4294901760, %v25901_v55  ;;  %v27664_v41 = vld [vmem:[%s33456_s6] sm:$0xff] }
 0xb82   : > { %v25809_v57 = vmul.f32 %v25806_v54, %v31982_v34  ;;  %v27671_v43 = vsel %vm33495_vm5, %v27664_v41, 0 }
 0xb83   : > { %v25826_v61 = vsel %vm25769_vm10, %v25810_v52, 0  ;;  %v25829_v62 = vsel %vm25769_vm10, %v25811_v19, 0  ;;  %v33326_v52 = vand.u32 4294901760, %v27671_v43 }
 0xb84   : > { %v25831_v63 = vand.u32 4294901760, %v25826_v61  ;;  %v33230_v1 = vand.u32 4294901760, %v25829_v62  ;;  %v25823_v2 = vsel %vm25769_vm10, %v25809_v57, 0 }
 0xb85   : > { %v33233_v3 = vand.u32 4294901760, %v25823_v2  ;;  %v27747_v55 = vsub.f32 %v27671_v43, %v33326_v52 }
 0xb86   : > { %25832 = vmatprep.subr.mxu0 %v25831_v63  ;;  %29955 = vmatpush3.msra.mxu1 %v33230_v1  ;;  %v26374_v36 = vsub.f32 %v25829_v62, %v33230_v1  ;;  %v25910_v56 = vsub.f32 %v25826_v61, %v25831_v63 }
 0xb87   : > { %25834 = vmatpush1.msra.mxu0 %v33233_v3  ;;  %v25916_v34 = vsub.f32 %v25823_v2, %v33233_v3  ;;  %29957 = vmatmul.mubr.f32.vlgmr.msra.gmra.mrb[6].mxu1 %v25902_v35 }
 0xb88   : > { %25903 = vmatmul.mubr.f32.vlgmr.msra.gmra.mrb[6].mxu0 %v25902_v35  ;;  %29959 = vmatprep.subr.mxu1 %v31015_v0  ;;  %v25911_v5 = vand.u32 4294901760, %v25910_v56  ;;  %v26375_v6 = vand.u32 4294901760, %v26374_v36 }
 0xb89   : > { %29961 = vmatprep.mubr.msk.f32.mxu1 %vm31016_vm0, %v31015_v0  ;;  %v25917_v7 = vand.u32 4294901760, %v25916_v34  ;;  %25983 = vmatprep.mubr.f32.mxu0 %v31015_v0 }
 0xb8a   : > { %v25912_v8 = vsub.f32 %v25910_v56, %v25911_v5  ;;  %v26376_v10 = vsub.f32 %v26374_v36, %v26375_v6 }
 0xb8b   : > { %v25918_v14 = vsub.f32 %v25916_v34, %v25917_v7 }
 0xb8c   : > { %v25913_v15 = vand.u32 4294901760, %v25912_v8  ;;  %v26377_v4 = vand.u32 4294901760, %v26376_v10 }
 0xb8d   : > { %v25919_v12 = vand.u32 4294901760, %v25918_v14 }
 0xb8e   : > { %25914 = vmatprep.subr.mxu0 %v25913_v15  ;;  %29960 = vmatpush3.msra.mxu1 %v26377_v4 }
 0xb8f   : > { %25920 = vmatpush1.msra.mxu0 %v25919_v12  ;;  %29962 = vmatmul.mubr.f32.vlgmr.msra.gmra.mrb[6].mxu1 %v33215_v31 }
 0xb90   : > { %29964 = vmatprep.subr.mxu1 %v31015_v0  ;;  %25985 = vmatmul.mubr.f32.vlgmr.msra.gmra.mrb[6].mxu0 %v33215_v31 }
 0xb91   : > { %25993 = vmatprep.subr.mxu0 %v25910_v56  ;;  %29965 = vmatpush3.msra.mxu1 %v26374_v36 }
 0xb92   : > { %25996 = vmatpush1.msra.mxu0 %v25916_v34  ;;  %29966 = vmatprep.mubr.msk.f32.mxu1 %vm31016_vm0, %v31015_v0 }
 0xb93   : > { %26069 = vmatprep.subr.mxu0 %v25831_v63  ;;  %29969 = vmatprep.subr.mxu1 %v31015_v0 }
 0xb94   : > { %26059 = vmatprep.mubr.f32.mxu0 %v31015_v0 }
 0xb97   : > { %29967 = vmatmul.mubr.f32.vlgmr.msra.gmra.mrb[6].mxu1 %v33218_v32 }
 0xb98   : > { %29970 = vmatpush3.msra.mxu1 %v33230_v1  ;;  %26062 = vmatmul.mubr.f32.vlgmr.msra.gmra.mrb[6].mxu0 %v33218_v32  ;;  %v26835_v32 = vand.u32 4294901760, %v26834_v11 }
 0xb99   : > { %26071 = vmatpush1.msra.mxu0 %v33233_v3  ;;  %29971 = vmatprep.mubr.msk.f32.mxu1 %vm31016_vm0, %v31015_v0 }
 0xb9a   : > { %26147 = vmatprep.subr.mxu0 %v25911_v5  ;;  %29974 = vmatprep.subr.mxu1 %v31015_v0 }
 0xb9b   : > { %26134 = vmatprep.mubr.f32.mxu0 %v31015_v0 }
 0xb9f   : > { %29972 = vmatmul.mubr.f32.vlgmr.msra.gmra.mrb[6].mxu1 %v33221_v42 }
 0xba0   : > { %29975 = vmatpush3.msra.mxu1 %v26375_v6  ;;  %26138 = vmatmul.mubr.f32.vlgmr.msra.gmra.mrb[6].mxu0 %v33221_v42  ;;  %v27666_v42 = vld [vmem:[%s31248_s13 + $0xc] sm:$0xf] }
 0xba1   : > { %26151 = vmatpush1.msra.mxu0 %v25917_v7  ;;  %29976 = vmatprep.mubr.msk.f32.mxu1 %vm31016_vm0, %v31015_v0  ;;  %v27677_v44 = vsel %vm347_vm3, %v27666_v42, 0 }
 0xba2   : > { %26223 = vmatprep.subr.mxu0 %v25831_v63  ;;  %29979 = vmatprep.subr.mxu1 %v31015_v0  ;;  %v33328_v19 = vand.u32 4294901760, %v27677_v44  ;;  %v27748_v63 = vand.u32 4294901760, %v27747_v55 }
 0xba3   : > { %26214 = vmatprep.mubr.f32.mxu0 %v31015_v0 }
 0xba4   : > { %v28222_v61 = vsub.f32 %v27677_v44, %v33328_v19  ;;  %v27749_v35 = vsub.f32 %v27747_v55, %v27748_v63 }
 0xba6   : > { %v28223_v2 = vand.u32 4294901760, %v28222_v61  ;;  %v27750_v5 = vand.u32 4294901760, %v27749_v35 }
 0xba7   : > { %29977 = vmatmul.mubr.f32.vlgmr.msra.gmra.mrb[6].mxu1 %v33215_v31 }
 0xba8   : > { %29980 = vmatpush3.msra.mxu1 %v33230_v1  ;;  %26216 = vmatmul.mubr.f32.vlgmr.msra.gmra.mrb[6].mxu0 %v33215_v31  ;;  %v28224_v56 = vsub.f32 %v28222_v61, %v28223_v2 }
 0xba9   : > { %26225 = vmatpush1.msra.mxu0 %v33233_v3  ;;  %29981 = vmatprep.mubr.msk.f32.mxu1 %vm31016_vm0, %v31015_v0 }
 0xbaa   : > { %26754 = vmatprep.subr.mxu0 %v33263_v47  ;;  %29984 = vmatprep.subr.mxu1 %v31015_v0  ;;  %v28225_v7 = vand.u32 4294901760, %v28224_v56 }
 0xbab   : > { %26288 = vmatprep.mubr.f32.mxu0 %v31015_v0 }
 0xbaf   : > { %29982 = vmatmul.mubr.f32.vlgmr.msra.gmra.mrb[6].mxu1 %v33215_v31 }
 0xbb0   : > { %29985 = vmatpush3.msra.mxu1 %v33274_v46  ;;  %26290 = vmatmul.mubr.f32.vlgmr.msra.gmra.mrb[6].mxu0 %v33215_v31  ;;  %v27665_v31 = vld [vmem:[%s31248_s13 + $0x4] sm:$0xff]  ;;  %s30747_s13 = smul.u32 24, %s31244_s10 }
 0xbb1   : > { %26756 = vmatpush1.msra.mxu0 %v33278_v50  ;;  %29986 = vmatprep.mubr.msk.f32.mxu1 %vm31016_vm0, %v31015_v0  ;;  %v27669_v40 = vcombine.high %v27665_v31, %v27665_v31  ;;  %v27673_v45 = vsel %vm347_vm3, %v27665_v31, 0 }
 0xbb2   : > { %26836 = vmatprep.subr.mxu0 %v26835_v32  ;;  %29989 = vmatprep.subr.mxu1 %v31015_v0  ;;  %v33332_v54 = vand.u32 4294901760, %v27673_v45  ;;  %s319_s20 = scalar_lea.vmem [#allocation9], %s30747_s13 }
 0xbb3   : > { %26819 = vmatprep.mubr.f32.mxu0 %v31015_v0  ;;  %v27675_v13 = vsel %vm347_vm3, %v27669_v40, 0  ;;  %vm33503_vm3 = vmmov %vm33501_vm11  ;;  %s28683_s19 = sshll.u32 %s319_s20, 4  ;;  %s33408_s19 = int_to_ptr.vmem [resolvable:$true] %s28683_s19 }
 0xbb4   : > { %v33324_v51 = vand.u32 4294901760, %v27675_v13  ;;  %v27764_v62 = vsub.f32 %v27673_v45, %v33332_v54  ;;  %s30940_s22 = scalar_lea.vmem %s33408_s19, 384  ;;  %p30947_p8 = scmp.lt.s32.totalorder %s33408_s19, %s30945_s29 }
 0xbb5   : > { %p30941_p2 = scmp.ne.s32.totalorder %s33408_s19, %s30940_s22  ;;  %p30948_p11 = scmp.lt.s32.totalorder %s30946_s16, %s30940_s22 }
 0xbb6   : > { %v27758_v57 = vsub.f32 %v27675_v13, %v33324_v51  ;;  %v27765_v3 = vand.u32 4294901760, %v27764_v62 }
 0xbb7   : > { %29987 = vmatmul.mubr.f32.vlgmr.msra.gmra.mrb[6].mxu1 %v26824_v9  ;;  %p30942_p1 = pnand %p30941_p2, %p31198_p6  ;;  %p30949_p3 = por %p30948_p11, %p30947_p8 }
 0xbb8   : > { %29990 = vmatpush3.msra.mxu1 %v27299_v38  ;;  %26825 = vmatmul.mubr.f32.vlgmr.msra.gmra.mrb[6].mxu0 %v26824_v9  ;;  %v27759_v1 = vand.u32 4294901760, %v27758_v57  ;;  %v27766_v34 = vsub.f32 %v27764_v62, %v27765_v3 }
 0xbb9   : > { %26842 = vmatpush1.msra.mxu0 %v26841_v39  ;;  %29991 = vmatprep.mubr.msk.f32.mxu1 %vm31016_vm0, %v31015_v0  ;;  %p30943_p4 = pneg %p30942_p1 }
 0xbba   : > { %26915 = vmatprep.subr.mxu0 %v26832_v25  ;;  %29994 = vmatprep.subr.mxu1 %v31015_v0  ;;  %v27760_v36 = vsub.f32 %v27758_v57, %v27759_v1  ;;  %v27767_v8 = vand.u32 4294901760, %v27766_v34 }
 0xbbb   : > { %26905 = vmatprep.mubr.f32.mxu0 %v31015_v0  ;;  %p30950_p7 = pnand %p30949_p3, %p30943_p4 }
 0xbbc   : > { %v27761_v6 = vand.u32 4294901760, %v27760_v36 }
 0xbbf   : > { %29992 = vmatmul.mubr.f32.vlgmr.msra.gmra.mrb[6].mxu1 %v33268_v22 }
 0xbc0   : > { %29995 = vmatpush3.msra.mxu1 %v27296_v27  ;;  %26907 = vmatmul.mubr.f32.vlgmr.msra.gmra.mrb[6].mxu0 %v33268_v22 }
 0xbc1   : > { %26918 = vmatpush1.msra.mxu0 %v26838_v29  ;;  %29996 = vmatprep.mubr.msk.f32.mxu1 %vm31016_vm0, %v31015_v0 }
 0xbc2   : > { %26991 = vmatprep.subr.mxu0 %v33263_v47  ;;  %29999 = vmatprep.subr.mxu1 %v31015_v0 }
 0xbc3   : > { %26981 = vmatprep.mubr.f32.mxu0 %v31015_v0 }
 0xbc7   : > { %29997 = vmatmul.mubr.f32.vlgmr.msra.gmra.mrb[6].mxu1 %v26821_v49 }
 0xbc8   : > { %30000 = vmatpush3.msra.mxu1 %v33274_v46  ;;  %26984 = vmatmul.mubr.f32.vlgmr.msra.gmra.mrb[6].mxu0 %v26821_v49 }
 0xbc9   : > { %26993 = vmatpush1.msra.mxu0 %v33278_v50  ;;  %30001 = vmatprep.mubr.msk.f32.mxu1 %vm31016_vm0, %v31015_v0 }
 0xbca   : > { %27069 = vmatprep.subr.mxu0 %v26833_v26  ;;  %30004 = vmatprep.subr.mxu1 %v31015_v0 }
 0xbcb   : > { %27056 = vmatprep.mubr.f32.mxu0 %v31015_v0 }
 0xbcf   : > { %30002 = vmatmul.mubr.f32.vlgmr.msra.gmra.mrb[6].mxu1 %v26822_v28 }
 0xbd0   : > { %30005 = vmatpush3.msra.mxu1 %v27297_v30  ;;  %27060 = vmatmul.mubr.f32.vlgmr.msra.gmra.mrb[6].mxu0 %v26822_v28 }
 0xbd1   : > { %27073 = vmatpush1.msra.mxu0 %v26839_v53  ;;  %30006 = vmatprep.mubr.msk.f32.mxu1 %vm31016_vm0, %v31015_v0 }
 0xbd2   : > { %27145 = vmatprep.subr.mxu0 %v33263_v47  ;;  %30009 = vmatprep.subr.mxu1 %v31015_v0 }
 0xbd3   : > { %27136 = vmatprep.mubr.f32.mxu0 %v31015_v0 }
 0xbd7   : > { %30007 = vmatmul.mubr.f32.vlgmr.msra.gmra.mrb[6].mxu1 %v33268_v22 }
 0xbd8   : > { %30010 = vmatpush3.msra.mxu1 %v33274_v46  ;;  %27138 = vmatmul.mubr.f32.vlgmr.msra.gmra.mrb[6].mxu0 %v33268_v22 }
 0xbd9   : > { %27147 = vmatpush1.msra.mxu0 %v33278_v50  ;;  %30011 = vmatprep.mubr.msk.f32.mxu1 %vm31016_vm0, %v31015_v0 }
 0xbda   : > { %27210 = vmatprep.mubr.f32.mxu0 %v31015_v0  ;;  %30014 = vmatprep.subr.mxu1 %v31015_v0 }
 0xbdb   : > { %27680 = vmatprep.subr.mxu0 %v33324_v51 }
 0xbdf   : > { %30012 = vmatmul.mubr.f32.vlgmr.msra.gmra.mrb[6].mxu1 %v33268_v22 }
 0xbe0   : > { %27212 = vmatmul.mubr.f32.vlgmr.msra.gmra.mrb[6].mxu0 %v33268_v22  ;;  %30015 = vmatpush3.msra.mxu1 %v33328_v19 }
 0xbe1   : > { %30016 = vmatprep.mubr.msk.f32.mxu1 %vm31016_vm0, %v31015_v0  ;;  %27682 = vmatpush1.msra.mxu0 %v33332_v54 }
 0xbe2   : > { %27745 = vmatprep.mubr.f32.mxu0 %v31015_v0  ;;  %30019 = vmatprep.subr.mxu1 %v31015_v0 }
 0xbe3   : > { %30017 = vmatmul.mubr.f32.vlgmr.msra.gmra.mrb[8].mxu1 %v27750_v5  ;;  %27762 = vmatprep.subr.mxu0 %v27761_v6 }
 0xbe4   : > { %27751 = vmatmul.mubr.f32.vlgmr.msra.gmra.mrb[8].mxu0 %v27750_v5  ;;  %30020 = vmatpush3.msra.mxu1 %v28225_v7 }
 0xbe5   : > { %30021 = vmatprep.mubr.msk.f32.mxu1 %vm31016_vm0, %v31015_v0  ;;  %27768 = vmatpush1.msra.mxu0 %v27767_v8 }
 0xbe6   : > { %27831 = vmatprep.mubr.f32.mxu0 %v31015_v0  ;;  %30024 = vmatprep.subr.mxu1 %v31015_v0 }
 0xbe7   : > { %27841 = vmatprep.subr.mxu0 %v27758_v57 }
 0xbeb   : > { %30022 = vmatmul.mubr.f32.vlgmr.msra.gmra.mrb[8].mxu1 %v33326_v52 }
 0xbec   : > { %27833 = vmatmul.mubr.f32.vlgmr.msra.gmra.mrb[8].mxu0 %v33326_v52  ;;  %30025 = vmatpush3.msra.mxu1 %v28222_v61 }
 0xbed   : > { %30026 = vmatprep.mubr.msk.f32.mxu1 %vm31016_vm0, %v31015_v0  ;;  %27844 = vmatpush1.msra.mxu0 %v27764_v62 }
 0xbee   : > { %27907 = vmatprep.mubr.f32.mxu0 %v31015_v0  ;;  %30029 = vmatprep.subr.mxu1 %v31015_v0 }
 0xbef   : > { %27917 = vmatprep.subr.mxu0 %v33324_v51 }
 0xbf3   : > { %30027 = vmatmul.mubr.f32.vlgmr.msra.gmra.mrb[8].mxu1 %v27747_v55 }
 0xbf4   : > { %27910 = vmatmul.mubr.f32.vlgmr.msra.gmra.mrb[8].mxu0 %v27747_v55  ;;  %30030 = vmatpush3.msra.mxu1 %v33328_v19 }
 0xbf5   : > { %30031 = vmatprep.mubr.msk.f32.mxu1 %vm31016_vm0, %v31015_v0  ;;  %27919 = vmatpush1.msra.mxu0 %v33332_v54 }
 0xbf6   : > { %27982 = vmatprep.mubr.f32.mxu0 %v31015_v0  ;;  %30034 = vmatprep.subr.mxu1 %v31015_v0 }
 0xbf7   : > { %27995 = vmatprep.subr.mxu0 %v27759_v1 }
 0xbfb   : > { %30032 = vmatmul.mubr.f32.vlgmr.msra.gmra.mrb[8].mxu1 %v27748_v63 }
 0xbfc   : > { %27986 = vmatmul.mubr.f32.vlgmr.msra.gmra.mrb[8].mxu0 %v27748_v63  ;;  %30035 = vmatpush3.msra.mxu1 %v28223_v2 }
 0xbfd   : > { %30036 = vmatprep.mubr.msk.f32.mxu1 %vm31016_vm0, %v31015_v0  ;;  %27999 = vmatpush1.msra.mxu0 %v27765_v3 }
 0xbfe   : > { %28062 = vmatprep.mubr.f32.mxu0 %v31015_v0  ;;  %30039 = vmatprep.subr.mxu1 %v31015_v0 }
 0xbff   : > { %28071 = vmatprep.subr.mxu0 %v33324_v51 }
 0xc03   : > { %30037 = vmatmul.mubr.f32.vlgmr.msra.gmra.mrb[8].mxu1 %v33326_v52 }
 0xc04   : > { %28064 = vmatmul.mubr.f32.vlgmr.msra.gmra.mrb[8].mxu0 %v33326_v52  ;;  %30040 = vmatpush3.msra.mxu1 %v33328_v19 }
 0xc05   : > { %30041 = vmatprep.mubr.msk.f32.mxu1 %vm31016_vm0, %v31015_v0  ;;  %28073 = vmatpush1.msra.mxu0 %v33332_v54  ;;  %vm33504_vm0 = vmmov %vm33503_vm3 }
 0xc06   : > { %28136 = vmatprep.mubr.f32.mxu0 %v31015_v0 }
 0xc0b   : > { %30042 = vmatmul.mubr.f32.vlgmr.msra.gmra.mrb[8].mxu1 %v33326_v52 }
 0xc0c   : > { %28138 = vmatmul.mubr.f32.vlgmr.msra.gmra.mrb[8].mxu0 %v33326_v52 }
 0xcb2   : > { %v27660_v10 = vpop.f32.mrb[6].mxu1 }
 0xcb3   : > { %v27213_v14 = vpop.f32.mrb[6].mxu0  ;;  %v30013_v15 = vpop.f32.mrb[7].mxu1  ;;  %v28592_v0 = vsel %vm8806_vm15, %v27660_v10, 0.0 }
 0xcb4   : > { %v28590_v4 = vsel %vm8804_vm12, %v27213_v14, 0.0  ;;  %v27215_v12 = vpop.f32.mrb[7].mxu0  ;;  %v28599_v22 = vmul.f32 %v28592_v0, %v28592_v0 }
 0xcb5   : > { %v28597_v16 = vmul.f32 %v28590_v4, %v28590_v4  ;;  %v28591_v18 = vsel %vm33503_vm3, %v27215_v12, 0.0 }
 0xcb6   : > { %v28593_v17 = vadd.f32 %v28591_v18, %v28590_v4  ;;  %v28598_v47 = vmul.f32 %v28591_v18, %v28591_v18 }
 0xcb8   : > { %v28600_v20 = vadd.f32 %v28598_v47, %v28597_v16  ;;  %v28594_v21 = vadd.f32 %v28593_v17, %v28592_v0 }
 0xcba   : > { %28595 = vadd.xlane.f32.xlu1 %v28594_v21  ;;  %v28601_v23 = vadd.f32 %v28600_v20, %v28599_v22 }
 0xcbe   : > { %28602 = vadd.xlane.f32.xlu1 %v28601_v23 }
 0xcde   : > { %v28586_v24 = vpop.f32.mrb[8].mxu1 }
 0xcdf   : > { %v28139_v25 = vpop.f32.mrb[8].mxu0  ;;  %v30043_v46 = vpop.f32.mrb[9].mxu1  ;;  %v28628_v11 = vsel %vm8806_vm15, %v28586_v24, 0.0 }
 0xce0   : > { %v28626_v49 = vsel %vm8804_vm12, %v28139_v25, 0.0  ;;  %v28141_v50 = vpop.f32.mrb[9].mxu0  ;;  %v28635_v53 = vmul.f32 %v28628_v11, %v28628_v11 }
 0xce1   : > { %v28633_v26 = vmul.f32 %v28626_v49, %v28626_v49  ;;  %v28627_v27 = vsel %vm33504_vm0, %v28141_v50, 0.0 }
 0xce2   : > { %v28629_v28 = vadd.f32 %v28627_v27, %v28626_v49  ;;  %v28634_v29 = vmul.f32 %v28627_v27, %v28627_v27 }
 0xce4   : > { %v28636_v30 = vadd.f32 %v28634_v29, %v28633_v26  ;;  %v28630_v48 = vadd.f32 %v28629_v28, %v28628_v11 }
 0xce6   : > { %28631 = vadd.xlane.f32.xlu1 %v28630_v48  ;;  %v28637_v32 = vadd.f32 %v28636_v30, %v28635_v53 }
 0xcea   : > { %28638 = vadd.xlane.f32.xlu1 %v28637_v32 }
 0xd47   : > { %v28596_v33 = vpop.xlane.xlu1 %28595 }
 0xd48   : > { %v28604_v58 = vmul.f32 0.00390625, %v28596_v33 }
 0xd4a   : > { %v28606_v38 = vmul.f32 %v28604_v58, %v28604_v58  ;;  %v28611_v52 = vsub.f32 %v28590_v4, %v28604_v58  ;;  %v28612_v19 = vsub.f32 %v28591_v18, %v28604_v58  ;;  %v28613_v54 = vsub.f32 %v28592_v0, %v28604_v58 }
 0xd4b   : > { %v28603_v9 = vpop.xlane.xlu1 %28602 }
 0xd4c   : > { %v28605_v37 = vmul.f32 0.00390625, %v28603_v9 }
 0xd4e   : > { %v28607_v39 = vsub.f32 %v28605_v37, %v28606_v38 }
 0xd50   : > { %v28608_v31 = vmax.f32 %v28607_v39, 0.0 }
 0xd52   : > { %v28609_v41 = vadd.f32 1e-05, %v28608_v31 }
 0xd54   : > { %30850 = vrsqrt.f32 %v28609_v41 }
 0xd5e   : > { %v30851_v51 = vpop.eup %30850 }
 0xd5f   : > { %v28614_v55 = vmul.f32 %v30851_v51, %v28611_v52  ;;  %v28615_v57 = vmul.f32 %v30851_v51, %v28612_v19  ;;  %v28616_v61 = vmul.f32 %v30851_v51, %v28613_v54 }
 0xd61   : > { %v28620_v3 = vmul.f32 0.1, %v28614_v55  ;;  %v28621_v35 = vmul.f32 0.1, %v28615_v57  ;;  %vm28617_vm12 = vcmp.ge.f32.partialorder %v28614_v55, 0.0  ;;  %vm28618_vm15 = vcmp.ge.f32.partialorder %v28615_v57, 0.0 }
 0xd62   : > { %vm28619_vm6 = vcmp.ge.f32.partialorder %v28616_v61, 0.0  ;;  %v28622_v5 = vmul.f32 0.1, %v28616_v61 }
 0xd63   : > { %v28623_v10 = vsel %vm28617_vm12, %v28614_v55, %v28620_v3  ;;  %v28624_v14 = vsel %vm28618_vm15, %v28615_v57, %v28621_v35 }
 0xd64   : > { %v28625_v4 = vsel %vm28619_vm6, %v28616_v61, %v28622_v5 }
 0xd73   : > { %v28632_v59 = vpop.xlane.xlu1 %28631 }
 0xd74   : > { %v28640_v40 = vmul.f32 0.00390625, %v28632_v59 }
 0xd76   : > { %v28642_v60 = vmul.f32 %v28640_v40, %v28640_v40  ;;  %v28647_v62 = vsub.f32 %v28626_v49, %v28640_v40  ;;  %v28648_v63 = vsub.f32 %v28627_v27, %v28640_v40  ;;  %v28649_v1 = vsub.f32 %v28628_v11, %v28640_v40 }
 0xd77   : > { %v28639_v42 = vpop.xlane.xlu1 %28638 }
 0xd78   : > { %v28641_v13 = vmul.f32 0.00390625, %v28639_v42 }
 0xd7a   : > { %v28643_v43 = vsub.f32 %v28641_v13, %v28642_v60 }
 0xd7c   : > { %v28644_v44 = vmax.f32 %v28643_v43, 0.0 }
 0xd7e   : > { %v28645_v45 = vadd.f32 1e-05, %v28644_v44 }
 0xd80   : > { %30852 = vrsqrt.f32 %v28645_v45 }
 0xd8a   : > { %v30853_v2 = vpop.eup %30852 }
 0xd8b   : > { %v28650_v36 = vmul.f32 %v30853_v2, %v28647_v62  ;;  %v28651_v56 = vmul.f32 %v30853_v2, %v28648_v63  ;;  %v28652_v34 = vmul.f32 %v30853_v2, %v28649_v1 }
 0xd8d   : > { %vm28653_vm14 = vcmp.ge.f32.partialorder %v28650_v36, 0.0  ;;  %vm28654_vm7 = vcmp.ge.f32.partialorder %v28651_v56, 0.0  ;;  %vm28655_vm8 = vcmp.ge.f32.partialorder %v28652_v34, 0.0  ;;  %v28656_v6 = vmul.f32 0.1, %v28650_v36 }
 0xd8e   : > { %v28657_v7 = vmul.f32 0.1, %v28651_v56  ;;  %v28658_v8 = vmul.f32 0.1, %v28652_v34 }
 0xd8f   : > { %v28659_v15 = vsel %vm28653_vm14, %v28650_v36, %v28656_v6 }
 0xd90   : > { %v28660_v12 = vsel %vm28654_vm7, %v28651_v56, %v28657_v7  ;;  %v28661_v16 = vsel %vm28655_vm8, %v28652_v34, %v28658_v8  ;;  %v28662_v18 = vadd.f32 %v28659_v15, %v28623_v10 }
 0xd91   : > { %v28663_v17 = vadd.f32 %v28660_v12, %v28624_v14  ;;  %v28664_v47 = vadd.f32 %v28661_v16, %v28625_v4 }
 0xd92   : > { %28665 = vst [vmem:[%s319_s20] sm:$0xff] %v28662_v18 }
 0xd93   : > { %28666 = vst [vmem:[%s319_s20 + $0x8] sm:$0xff] %v28663_v17  ;;  %28667 = vst [vmem:[%s319_s20 + $0x10] sm:$0xff] %v28664_v47 }
 0xd94   : > { %30953 = shalt.err (!%p30950_p7)
}
 0xd95   : > { %s30954_s10 = scalar_lea.hbm %s33406_s21, 384  ;;  %s30958_s2 = scalar_lea.hbm %s33457_s7, 768 }
 0xd96   : > { %p30955_p10 = scmp.ne.s32.totalorder %s33406_s21, %s30954_s10  ;;  %p30959_p0 = scmp.lt.u32.totalorder %s33406_s21, %s33457_s7 }
 0xd97   : > { %p30960_p12 = scmp.lt.u32.totalorder %s30958_s2, %s30954_s10  ;;  %p30962_p2 = scmp.lt.u32.totalorder %s30954_s10, %s33406_s21 }
 0xd98   : > { %p30956_p13 = pnand %p30955_p10, %p31198_p6 }
 0xd99   : > { %p30961_p9 = por %p30960_p12, %p30959_p0 }
 0xd9a   : > { %p30957_p5 = pneg %p30956_p13 }
 0xd9b   : > { %p30963_p1 = por %p30962_p2, %p30961_p9 }
 0xd9d   : > { %p30964_p4 = pnand %p30963_p1, %p30957_p5 }
 0xd9f   : > { %30967 = shalt.err (!%p30964_p4)
}
 0xda0   : > { %30759 = dma.vmem_to_hbm [thread:$0]  (%p31198_p6), %s33408_s19, 384, %s33406_s21, %s28669_s28  }
 0xda1 PF: > { %s28695_s20 = sand.u32 1, %s30998_s24   ;;  %p33505_p8 = scmp.ne.s32.totalorder %s33474_s8, 0 }
 0xda2   : > { %p33506_p11 = scmp.ge.s32.totalorder %s31010_s27, 2  ;;  %s28696_s30 = scalar_lea.sflag [#allocation5], %s28695_s20 }
 0xda4   : > { %p30773_p3 = pnand %p33506_p11, %p33505_p8 }
 0xda6   : > { %30993 = dma.done.wait (!%p30773_p3), %s28696_s30, 384  }
 0xda7   : > { %30995 = vsyncadd (!%p30773_p3), %s28696_s30, 4294966912  ;;  %p21_p7 = scmp.ge.s32.totalorder %s31135_s15, 4   ;;  %s33507_s24 = smov %s31002_s25 }
 0xda8   : > { %s33508_s25 = smov %s31006_s26  ;;  %s33509_s26 = smov %s31194_s14 }
 0xda9   : > { %s33510_s27 = smov %s31135_s15  ;;  %23 = sbr.rel (!%p21_p7) target bundleno = 8 (0x8), region = 101 }
 0xdb0   :  { %28701 = vsyncpa [#allocation4], 1 }
 0xdb1   :  { %28703 = vsyncpa [#allocation4 + $0x1], 1 }
 0xdb2   :  { %28704 = vsyncpa [#allocation7], 1 }
 0xdb3   :  { %28705 = vsyncpa [#allocation5], 1 }
 0xdb4   :  { %28707 = vsyncpa [#allocation5 + $0x1], 1 }

</bundles_post_ra>
